<compile_context>
chip_gen: v7x
topology: tpu7x:2x2x1
jax: 0.10.0
libtpu: 0.0.40
codegen_flags: <defaults>
</compile_context>

<pallas_src>
import jax
import jax.numpy as jnp
from jax.experimental import pallas as pl
from jax.experimental.pallas import tpu as pltpu

BN_EPS = 1e-5
C_IN = 256
HW = 64                 # 8 * 8 spatial positions
K_DIM = C_IN * HW       # flattened (channel, spatial) contraction dim = 16384
OUT_LANES = 128         # lane-dense fc2 output width


def _round_up(x, m):
    return ((x + m - 1) // m) * m


def outblock_critic_kernel(x_ref, wk_ref, bc_ref, w1_ref, b1_ref, w2_ref,
                           b2_ref, out_ref):
    # x_ref : [TB, 16384] f32   -- NCHW tile, flat index = c*64 + h*8 + w
    # wk_ref: [16384, 64] bf16  -- kron(w_conv * bn_scale, I_64)
    # bc_ref: [1, 64]     f32   -- folded conv+BN bias (broadcast row)
    # w1_ref: [64, 64]    f32   -- fc1 weight, stored (in, out)
    # b1_ref: [1, 64]     f32
    # w2_ref: [64, 128]   f32   -- fc2 weight replicated across 128 lanes
    # b2_ref: [1, 128]    f32
    # out_ref:[TB, 128]   bf16  -- every lane holds the same value

    # In-kernel f32 -> bf16 cast (VPU, hidden under the input DMA).
    x = x_ref[...].astype(jnp.bfloat16)

    # 1x1 conv (+ folded BN) on the MXU: [TB,16384] @ [16384,64] -> [TB,64] f32.
    v = jnp.dot(x, wk_ref[...], preferred_element_type=jnp.float32)
    v = jnp.maximum(v + bc_ref[...], 0.0)                       # ReLU

    # fc1 + ReLU (tiny f32 MXU matmul).
    h = jnp.dot(v, w1_ref[...], preferred_element_type=jnp.float32)
    h = jnp.maximum(h + b1_ref[...], 0.0)                       # (TB, 64)

    # fc2 (weight replicated over lanes -> lane-dense store) + tanh.
    o = jnp.dot(h, w2_ref[...], preferred_element_type=jnp.float32)
    out_ref[...] = jnp.tanh(o + b2_ref[...]).astype(out_ref.dtype)


def prepare_outblock_params(w_conv, b_conv, w_fc1, b_fc1, w_fc2, b_fc2,
                            gamma, beta, r_mean, r_var):
    """Fold conv1x1 + eval-mode BN into MXU-ready weights. Call ONCE at load."""
    scale = gamma * jax.lax.rsqrt(r_var + BN_EPS)
    bias0 = (b_conv - r_mean) * scale + beta

    # Block-diagonal conv weight: Wk[c*64+s, j] = w_conv[c]*scale * (s == j).
    wk = jnp.kron((w_conv * scale).astype(jnp.float32).reshape(C_IN, 1),
                  jnp.eye(HW, dtype=jnp.float32)).astype(jnp.bfloat16)

    bc_vec = jnp.full((1, HW), bias0, dtype=jnp.float32)
    w1_mat = w_fc1.astype(jnp.float32)                       # (in, out) = (64, 64)
    b1_vec = b_fc1.reshape(1, HW).astype(jnp.float32)
    w2_rep = jnp.tile(w_fc2.reshape(HW, 1).astype(jnp.float32), (1, OUT_LANES))
    b2_vec = jnp.full((1, OUT_LANES), b_fc2, dtype=jnp.float32)
    return wk, bc_vec, w1_mat, b1_vec, w2_rep, b2_vec


def outblock_critic(x_nchw, params, *, tb=None):
    """x_nchw: [B, 256, 8, 8] f32 (native PyTorch layout). Returns [B, 1] f32."""
    B = x_nchw.shape[0]
    assert x_nchw.shape[1:] == (C_IN, 8, 8)
    wk, bc_vec, w1_mat, b1_vec, w2_rep, b2_vec = params

    # --- batch tile selection -------------------------------------------------
    # Default: >=2 tiles whenever B > 16 (both v7x TCs get work), multiple of 16
    # for clean (16,128)/(8,128) block tiling, capped at 256 so the f32 input
    # double-buffer fits v7x's 64 MiB VMEM.  v5e/v6e callers may pass tb<=512.
    if tb is None:
        tb = B if B <= 16 else min(256, _round_up(pl.cdiv(B, 2), 16))
    else:
        tb = min(tb, B)
        if tb != B and tb % 16 != 0:
            raise ValueError(
                "tb must be a multiple of 16 (sublane tiling) when tb < B")
    num_tiles = pl.cdiv(B, tb)

    # Native layout, free reshape (no dtype cast -> no extra HBM pass):
    # x2d[b, c*64 + s] = x_nchw[b, c, h, w] with s = h*8 + w.
    x2d = x_nchw.reshape(B, K_DIM)

    # VMEM budget derived from the tile (input double-buffered + resident
    # weights + output tile), so large tb on v5e/v6e raises the limit itself.
    itemsize = x2d.dtype.itemsize
    vmem_needed = (2 * tb * K_DIM * itemsize      # input tile (double-buffered)
                   + 2 * K_DIM * HW * 2           # wk (bf16)
                   + 2 * tb * OUT_LANES * 2       # output tile (bf16)
                   + (HW * HW + 4 * HW + 4 * OUT_LANES) * 4 * 2)  # small consts
    vmem_limit = max(48 * 1024 * 1024, int(vmem_needed * 1.25))

    def const(i):                      # weights stay resident across tiles
        return (0, 0)

    out = pl.pallas_call(
        outblock_critic_kernel,
        out_shape=jax.ShapeDtypeStruct((B, OUT_LANES), jnp.bfloat16),
        grid=(num_tiles,),
        in_specs=[
            pl.BlockSpec((tb, K_DIM), lambda i: (i, 0)),   # x tile (pipelined)
            pl.BlockSpec((K_DIM, HW), const),              # conv+BN weight
            pl.BlockSpec((1, HW), const),                  # conv+BN bias
            pl.BlockSpec((HW, HW), const),                 # fc1 weight
            pl.BlockSpec((1, HW), const),                  # fc1 bias
            pl.BlockSpec((HW, OUT_LANES), const),          # fc2 weight (repl.)
            pl.BlockSpec((1, OUT_LANES), const),           # fc2 bias
        ],
        out_specs=pl.BlockSpec((tb, OUT_LANES), lambda i: (i, 0)),
        compiler_params=pltpu.CompilerParams(
            dimension_semantics=("parallel",),
            vmem_limit_bytes=vmem_limit),
    )(x2d, wk, bc_vec, w1_mat, b1_vec, w2_rep, b2_vec)

    return out[:, :1].astype(jnp.float32)                  # (B, 1)


def reference_jax(x_nchw, w_conv, b_conv, w_fc1, b_fc1, w_fc2, b_fc2,
                  gamma, beta, r_mean, r_var):
    """Pure-JAX f32 reference mirroring the PyTorch forward (eval-mode BN)."""
    B = x_nchw.shape[0]
    v = jnp.einsum('bchw,c->bhw', x_nchw, w_conv) + b_conv        # (B, 8, 8)
    v = (v - r_mean) / jnp.sqrt(r_var + BN_EPS) * gamma + beta
    v = jnp.maximum(v, 0.0)
    v = v.reshape(B, HW)
    v = jnp.maximum(v @ w_fc1 + b_fc1, 0.0)
    v = jnp.tanh(v @ w_fc2.reshape(HW, 1) + b_fc2)
    return v                                                       # (B, 1)


if __name__ == "__main__":
    key = jax.random.PRNGKey(0)
    kx, kc, k1, kb1, k2, kb2 = jax.random.split(key, 6)

    # Small batch; channels/spatial are fixed by the module (256, 8x8).
    B = 32
    x_nchw = jax.random.normal(kx, (B, C_IN, 8, 8), jnp.float32)

    # Deterministic synthetic parameters (shapes match the nn.Module).
    w_conv = jax.random.normal(kc, (C_IN,), jnp.float32) * 0.05     # Conv2d(256,1,1)
    b_conv = jnp.float32(0.01)
    w_fc1 = jax.random.normal(k1, (HW, HW), jnp.float32) * 0.05     # Linear(64,64), (in,out)
    b_fc1 = jax.random.normal(kb1, (HW,), jnp.float32) * 0.05
    w_fc2 = jax.random.normal(k2, (HW,), jnp.float32) * 0.05        # Linear(64,1)
    b_fc2 = jnp.float32(0.02)
    gamma, beta = jnp.float32(1.2), jnp.float32(0.1)                # BN affine
    r_mean, r_var = jnp.float32(0.05), jnp.float32(0.9)             # BN running stats

    params = prepare_outblock_params(w_conv, b_conv, w_fc1, b_fc1, w_fc2,
                                     b_fc2, gamma, beta, r_mean, r_var)

    # Default tiling: B=32 -> tb=16 -> 2 full tiles (multi-step grid).
    out = outblock_critic(x_nchw, params)
    out = jax.block_until_ready(out)
    ref = reference_jax(x_nchw, w_conv, b_conv, w_fc1, b_fc1, w_fc2, b_fc2,
                        gamma, beta, r_mean, r_var)
    assert out.shape == (B, 1)
    # bf16 activations / output with f32 accumulation -> bf16-class tolerance.
    assert jnp.allclose(out, ref, atol=2e-2, rtol=2e-2), (out, ref)

    # Also exercise a partial last tile (B=24, tb=16 -> 2 tiles, 2nd masked).
    Bp = 24
    xp = x_nchw[:Bp]
    outp = jax.block_until_ready(outblock_critic(xp, params, tb=16))
    refp = ref[:Bp]
    assert outp.shape == (Bp, 1)
    assert jnp.allclose(outp, refp, atol=2e-2, rtol=2e-2), (outp, refp)

    print("KERNEL_OK")
</pallas_src>

<mosaic_0001>
module attributes {stable_mosaic.version = 11 : i64} {
  func.func @outblock_critic_kernel(%arg0: i32, %arg1: memref<16x16384xf32, #tpu.memory_space<vmem>>, %arg2: memref<16384x64xbf16, #tpu.memory_space<vmem>>, %arg3: memref<1x64xf32, #tpu.memory_space<vmem>>, %arg4: memref<64x64xf32, #tpu.memory_space<vmem>>, %arg5: memref<1x64xf32, #tpu.memory_space<vmem>>, %arg6: memref<64x128xf32, #tpu.memory_space<vmem>>, %arg7: memref<1x128xf32, #tpu.memory_space<vmem>>, %arg8: memref<16x128xbf16, #tpu.memory_space<vmem>>) attributes {dimension_semantics = [#tpu.dimension_semantics<parallel>], iteration_bounds = array<i64: 2>, scalar_prefetch = 0 : i64, scratch_operands = 0 : i64, tpu.core_type = #tpu.core_type<tc>, window_params = [{transform_indices = @transform_0, window_bounds = array<i64: 16, 16384>}, {pipeline_mode = #tpu.pipeline_mode<synchronous>, transform_indices = @transform_1, window_bounds = array<i64: 16384, 64>}, {pipeline_mode = #tpu.pipeline_mode<synchronous>, transform_indices = @transform_2, window_bounds = array<i64: 1, 64>}, {pipeline_mode = #tpu.pipeline_mode<synchronous>, transform_indices = @transform_3, window_bounds = array<i64: 64, 64>}, {pipeline_mode = #tpu.pipeline_mode<synchronous>, transform_indices = @transform_4, window_bounds = array<i64: 1, 64>}, {pipeline_mode = #tpu.pipeline_mode<synchronous>, transform_indices = @transform_5, window_bounds = array<i64: 64, 128>}, {pipeline_mode = #tpu.pipeline_mode<synchronous>, transform_indices = @transform_6, window_bounds = array<i64: 1, 128>}, {transform_indices = @transform_7, window_bounds = array<i64: 16, 128>}]} {
    %c0 = arith.constant 0 : index
    %c0_0 = arith.constant 0 : index
    %0 = vector.load %arg1[%c0, %c0_0] : memref<16x16384xf32, #tpu.memory_space<vmem>>, vector<16x16384xf32>
    %1 = arith.truncf %0 : vector<16x16384xf32> to vector<16x16384xbf16>
    %c0_1 = arith.constant 0 : index
    %c0_2 = arith.constant 0 : index
    %2 = vector.load %arg2[%c0_1, %c0_2] : memref<16384x64xbf16, #tpu.memory_space<vmem>>, vector<16384x64xbf16>
    %cst = arith.constant dense<0.000000e+00> : vector<16x64xf32>
    %3 = tpu.matmul %1, %2, %cst {dimension_numbers = #tpu.dot_dimension_numbers<[1], [0], [0], [1], [0, 0, 1, 1], [], []>} : vector<16x16384xbf16>, vector<16384x64xbf16>, vector<16x64xf32> -> vector<16x64xf32>
    %c0_3 = arith.constant 0 : index
    %c0_4 = arith.constant 0 : index
    %4 = vector.load %arg3[%c0_3, %c0_4] : memref<1x64xf32, #tpu.memory_space<vmem>>, vector<1x64xf32>
    %5 = vector.broadcast %4 : vector<1x64xf32> to vector<16x64xf32>
    %6 = arith.addf %3, %5 : vector<16x64xf32>
    %cst_5 = arith.constant 0.000000e+00 : f32
    %7 = vector.broadcast %cst_5 : f32 to vector<16x64xf32>
    %8 = arith.maximumf %6, %7 : vector<16x64xf32>
    %c0_6 = arith.constant 0 : index
    %c0_7 = arith.constant 0 : index
    %9 = vector.load %arg4[%c0_6, %c0_7] : memref<64x64xf32, #tpu.memory_space<vmem>>, vector<64x64xf32>
    %cst_8 = arith.constant dense<0.000000e+00> : vector<16x64xf32>
    %10 = tpu.matmul %8, %9, %cst_8 {dimension_numbers = #tpu.dot_dimension_numbers<[1], [0], [0], [1], [0, 0, 1, 1], [], []>} : vector<16x64xf32>, vector<64x64xf32>, vector<16x64xf32> -> vector<16x64xf32>
    %c0_9 = arith.constant 0 : index
    %c0_10 = arith.constant 0 : index
    %11 = vector.load %arg5[%c0_9, %c0_10] : memref<1x64xf32, #tpu.memory_space<vmem>>, vector<1x64xf32>
    %12 = vector.broadcast %11 : vector<1x64xf32> to vector<16x64xf32>
    %13 = arith.addf %10, %12 : vector<16x64xf32>
    %cst_11 = arith.constant 0.000000e+00 : f32
    %14 = vector.broadcast %cst_11 : f32 to vector<16x64xf32>
    %15 = arith.maximumf %13, %14 : vector<16x64xf32>
    %c0_12 = arith.constant 0 : index
    %c0_13 = arith.constant 0 : index
    %16 = vector.load %arg6[%c0_12, %c0_13] : memref<64x128xf32, #tpu.memory_space<vmem>>, vector<64x128xf32>
    %cst_14 = arith.constant dense<0.000000e+00> : vector<16x128xf32>
    %17 = tpu.matmul %15, %16, %cst_14 {dimension_numbers = #tpu.dot_dimension_numbers<[1], [0], [0], [1], [0, 0, 1, 1], [], []>} : vector<16x64xf32>, vector<64x128xf32>, vector<16x128xf32> -> vector<16x128xf32>
    %c0_15 = arith.constant 0 : index
    %c0_16 = arith.constant 0 : index
    %18 = vector.load %arg7[%c0_15, %c0_16] : memref<1x128xf32, #tpu.memory_space<vmem>>, vector<1x128xf32>
    %19 = vector.broadcast %18 : vector<1x128xf32> to vector<16x128xf32>
    %20 = arith.addf %17, %19 : vector<16x128xf32>
    %21 = math.tanh %20 : vector<16x128xf32>
    %22 = arith.truncf %21 : vector<16x128xf32> to vector<16x128xbf16>
    %c0_17 = arith.constant 0 : index
    %c0_18 = arith.constant 0 : index
    %23 = vector.load %arg8[%c0_17, %c0_18] : memref<16x128xbf16, #tpu.memory_space<vmem>>, vector<16x128xbf16>
    tpu.vector_store %arg8[%c0_17, %c0_18], %22 {strides = array<i32>} : memref<16x128xbf16, #tpu.memory_space<vmem>>, vector<16x128xbf16>,
    return
  }
  func.func @transform_0(%arg0: i32) -> (i32, i32) {
    %c0_i32 = arith.constant 0 : i32
    %c0_i32_0 = arith.constant 0 : i32
    return %arg0, %c0_i32 : i32, i32
  }
  func.func @transform_1(%arg0: i32) -> (i32, i32) {
    %c0_i32 = arith.constant 0 : i32
    %c0_i32_0 = arith.constant 0 : i32
    %c0_i32_1 = arith.constant 0 : i32
    return %c0_i32, %c0_i32_0 : i32, i32
  }
  func.func @transform_2(%arg0: i32) -> (i32, i32) {
    %c0_i32 = arith.constant 0 : i32
    %c0_i32_0 = arith.constant 0 : i32
    %c0_i32_1 = arith.constant 0 : i32
    return %c0_i32, %c0_i32_0 : i32, i32
  }
  func.func @transform_3(%arg0: i32) -> (i32, i32) {
    %c0_i32 = arith.constant 0 : i32
    %c0_i32_0 = arith.constant 0 : i32
    %c0_i32_1 = arith.constant 0 : i32
    return %c0_i32, %c0_i32_0 : i32, i32
  }
  func.func @transform_4(%arg0: i32) -> (i32, i32) {
    %c0_i32 = arith.constant 0 : i32
    %c0_i32_0 = arith.constant 0 : i32
    %c0_i32_1 = arith.constant 0 : i32
    return %c0_i32, %c0_i32_0 : i32, i32
  }
  func.func @transform_5(%arg0: i32) -> (i32, i32) {
    %c0_i32 = arith.constant 0 : i32
    %c0_i32_0 = arith.constant 0 : i32
    %c0_i32_1 = arith.constant 0 : i32
    return %c0_i32, %c0_i32_0 : i32, i32
  }
  func.func @transform_6(%arg0: i32) -> (i32, i32) {
    %c0_i32 = arith.constant 0 : i32
    %c0_i32_0 = arith.constant 0 : i32
    %c0_i32_1 = arith.constant 0 : i32
    return %c0_i32, %c0_i32_0 : i32, i32
  }
  func.func @transform_7(%arg0: i32) -> (i32, i32) {
    %c0_i32 = arith.constant 0 : i32
    %c0_i32_0 = arith.constant 0 : i32
    return %arg0, %c0_i32 : i32, i32
  }
}

</mosaic_0001>

<bundles_post_ra>
// kernel: tpu_custom_call.1
= control target key start
LH: loop header
LB: loop body
LE: loop exit
PB: predicated region body
PF: predicated region fallthrough
CT: control target
= control target key end

     0   :  { %12 = vsyncpa [#allocation3], 0  ;;  %s19148_s0 = inlined_call_operand.vmem [shape: f32[32,16384], index: 0, kind: input, shape index: {}]   ;;  %s19149_s1 = inlined_call_operand.vmem [shape: bf16[16384,64], index: 1, kind: input, shape index: {}]   ;;  %s19150_s2 = inlined_call_operand.vmem [shape: f32[1,64], index: 2, kind: input, shape index: {}]   ;;  %s19151_s3 = inlined_call_operand.vmem [shape: f32[64,64], index: 3, kind: input, shape index: {}]   ;;  %s19152_s4 = inlined_call_operand.vmem [shape: f32[1,64], index: 4, kind: input, shape index: {}]   ;;  %s19153_s5 = inlined_call_operand.vmem [shape: f32[64,128], index: 5, kind: input, shape index: {}]   ;;  %s19154_s6 = inlined_call_operand.vmem [shape: f32[1,128], index: 6, kind: input, shape index: {}]   ;;  %s19155_s7 = inlined_call_operand.hbm [shape: bf16[32,128], index: 7, kind: output, shape index: {}]  }
   0x1   :  { %14 = vsyncpa [#allocation3 + $0x1], 0  ;;  %s15505_s24 = smov 0   ;;  %s15507_s25 = smov 0  }
   0x2   :  { %s15509_s26 = smov 0   ;;  %s15511_s27 = smov 0  }
   0x3 LB: > { %s15526_s28 = sadd.s32 4294967295, %s15460_s27   ;;  %s11776_s29 = sadd.s32 4294967294, %s15460_s27   ;;  %s15460_s27 = sphi %s15511_s27, %s19161_s27   ;;  %s15456_s26 = sphi %s15509_s26, %s19160_s26   ;;  %s15452_s25 = sphi %s15507_s25, %s19159_s25   ;;  %s15448_s24 = sphi %s15505_s24, %s19158_s24  }
   0x4   : > { %s15530_s30 = sadd.s32 1, %s15460_s27   ;;  %s179_s8 = sadd.s32 1, %s15456_s26 }
   0x5   : > { %s176_s9 = ssub.s32 %s15460_s27, %s15530_s30  ;;  %p189_p0 = scmp.ne.s32.totalorder %s15456_s26, %s15452_s25 }
   0x6   : > { %p177_p1 = scmp.eq.s32.totalorder %s176_s9, 0  ;;  %p190_p2 = scmp.eq.s32.totalorder %s15526_s28, 1 }
   0x7   : > { %p195_p3 = scmp.ne.s32.totalorder %s15452_s25, %s15448_s24  ;;  %p196_p4 = scmp.eq.s32.totalorder %s11776_s29, 1 }
   0x8   : > { %s15541_s10 = scalar_select %p177_p1, %s15456_s26, %s179_s8  }
   0x9   : > { %p15543_p5 = por %p190_p2, %p189_p0  ;;  %p15547_p6 = por %p196_p4, %p195_p3 }
   0xa   : > { %p11779_p7 = scmp.ge.s32.totalorder %s15460_s27, 1  ;;  %p242_p8 = scmp.lt.s32.totalorder %s15460_s27, 3 }
   0xc   : > { %p243_p9 = pnand %p11779_p7, %p242_p8 }
   0xd   : > { %v14370_v0 = vld [vmem:[%s19149_s1 + $0x40] sm:$0xff] (!%p243_p9)   ;;  %v14374_v4 = vld [vmem:[%s19149_s1 + $0x48] sm:$0xff] (!%p243_p9)   ;;  %v14378_v8 = vld [vmem:[%s19149_s1 + $0x50] sm:$0xff] (!%p243_p9)   ;;  %s11781_s17 = sshll.u32 (!%p243_p9), %s15526_s28, 1  ;;  %vm11508_vm0 = vcmask (!%p243_p9), 523264   ;;  %s272_s18 = sand.u32 (!%p243_p9), 1, %s15452_s25  }
   0xe   : > { %246 = sbr.rel (%p243_p9) target bundleno = 1740 (0x6cc), region = 48  ;;  %v14371_v1 = vld [vmem:[%s19149_s1 + $0xc0] sm:$0xff] (!%p243_p9)   ;;  %12831 = vmatprep.subr.bf16.mxu0 (!%p243_p9), %v14370_v0  ;;  %v14375_v5 = vld [vmem:[%s19149_s1 + $0xc8] sm:$0xff] (!%p243_p9)   ;;  %v14379_v9 = vld [vmem:[%s19149_s1 + $0xd0] sm:$0xff] (!%p243_p9)   ;;  %p276_p10 = scmp.lt.s32.totalorder (!%p243_p9), %s11781_s17, 3 }
   0xf   : > { %v14372_v2 = vld [vmem:[%s19149_s1] sm:$0xff] (!%p243_p9)   ;;  %12853 = vmatprep.subr.bf16.mxu1 (!%p243_p9), %v14371_v1  ;;  %v14376_v6 = vld [vmem:[%s19149_s1 + $0x8] sm:$0xff] (!%p243_p9)   ;;  %v14380_v10 = vld [vmem:[%s19149_s1 + $0x10] sm:$0xff] (!%p243_p9)   ;;  %s11780_s19 = sshll.u32 (!%p243_p9), %s272_s18, 3  ;;  %s12825_s20 = sshll.u32 (!%p243_p9), %s15526_s28, 7 }
  0x10   : > { %v14373_v3 = vld [vmem:[%s19149_s1 + $0x80] sm:$0xff] (!%p243_p9)   ;;  %12832 = vmatpush3.bf16.msra.mxu0 (!%p243_p9), %v14372_v2  ;;  %v14377_v7 = vld [vmem:[%s19149_s1 + $0x88] sm:$0xff] (!%p243_p9)   ;;  %v14381_v11 = vld [vmem:[%s19149_s1 + $0x90] sm:$0xff] (!%p243_p9)   ;;  %s274_s21 = scalar_lea.vmem (!%p243_p9), [#allocation2], %s11780_s19  ;;  %s19103_s29 = scalar_lea.hbm (!%p243_p9), %s19155_s7, %s12825_s20 }
  0x11   : > { %12854 = vmatpush3.bf16.msra.mxu1 (!%p243_p9), %v14373_v3  ;;  %12833 = vmatprep.subr.bf16.mxu0 (!%p243_p9), %v14374_v4  ;;  %v14382_v12 = vld [vmem:[%s19149_s1 + $0x58] sm:$0xff] (!%p243_p9)   ;;  %v14386_v16 = vld [vmem:[%s19149_s1 + $0x60] sm:$0xff] (!%p243_p9)   ;;  %v14390_v20 = vld [vmem:[%s19149_s1 + $0x68] sm:$0xff] (!%p243_p9)   ;;  %s11714_s22 = sshll.u32 (!%p243_p9), %s274_s21, 4  ;;  %s19107_s8 = scalar_lea.sflag (!%p243_p9), [#allocation3], %s272_s18  ;;  %s19105_s22 = int_to_ptr.vmem [resolvable:$true] %s11714_s22 }
  0x12   : > { %12855 = vmatprep.subr.bf16.mxu1 (!%p243_p9), %v14375_v5  ;;  %v14383_v13 = vld [vmem:[%s19149_s1 + $0xd8] sm:$0xff] (!%p243_p9)   ;;  %v14387_v17 = vld [vmem:[%s19149_s1 + $0xe0] sm:$0xff] (!%p243_p9)   ;;  %v14391_v21 = vld [vmem:[%s19149_s1 + $0xe8] sm:$0xff] (!%p243_p9)   ;;  %s15398_s9 = scalar_lea.vmem (!%p243_p9), %s19105_s22, 128  ;;  %s15462_s28 = smov (!%p243_p9), [#allocation2]  }
  0x13   : > { %v14384_v14 = vld [vmem:[%s19149_s1 + $0x18] sm:$0xff] (!%p243_p9)   ;;  %v14388_v18 = vld [vmem:[%s19149_s1 + $0x20] sm:$0xff] (!%p243_p9)   ;;  %v14392_v22 = vld [vmem:[%s19149_s1 + $0x28] sm:$0xff] (!%p243_p9)   ;;  %p15399_p11 = scmp.ne.s32.totalorder (!%p243_p9), %s19105_s22, %s15398_s9 }
  0x14   : > { %12834 = vmatpush3.bf16.msra.mxu0 (!%p243_p9), %v14376_v6  ;;  %v14385_v15 = vld [vmem:[%s19149_s1 + $0x98] sm:$0xff] (!%p243_p9)   ;;  %v14389_v19 = vld [vmem:[%s19149_s1 + $0xa0] sm:$0xff] (!%p243_p9)   ;;  %v14393_v23 = vld [vmem:[%s19149_s1 + $0xa8] sm:$0xff] (!%p243_p9)  }
  0x15   : > { %12856 = vmatpush3.bf16.msra.mxu1 %v14377_v7  ;;  %12835 = vmatprep.subr.bf16.mxu0 %v14378_v8  ;;  %s19163_s17 = smov (!%p276_p10, %s11781_s17), 3  ;;  %v14394_v24 = vld [vmem:[%s19149_s1 + $0x70] sm:$0xff]   ;;  %v14398_v28 = vld [vmem:[%s19149_s1 + $0x78] sm:$0xff]   ;;  %v14402_v44 = vld [vmem:[%s19149_s1 + $0x140] sm:$0xff]   ;;  %p15400_p12 = pnand %p15399_p11, %p15543_p5 }
  0x16   : > { %12857 = vmatprep.subr.bf16.mxu1 %v14379_v9  ;;  %v14395_v25 = vld [vmem:[%s19149_s1 + $0xf0] sm:$0xff]   ;;  %s12822_s13 = sshll.u32 %s19163_s17, 10  ;;  %v14399_v29 = vld [vmem:[%s19149_s1 + $0xf8] sm:$0xff]   ;;  %v14403_v45 = vld [vmem:[%s19149_s1 + $0x1c0] sm:$0xff]  }
  0x17   : > { %v14396_v26 = vld [vmem:[%s19149_s1 + $0x30] sm:$0xff]   ;;  %s15647_s23 = scalar_lea.vmem %s19148_s0, %s12822_s13  ;;  %v14400_v30 = vld [vmem:[%s19149_s1 + $0x38] sm:$0xff]   ;;  %v14404_v46 = vld [vmem:[%s19149_s1 + $0x100] sm:$0xff]   ;;  %p15401_p13 = pneg %p15400_p12 }
  0x18   : > { %12836 = vmatpush3.bf16.msra.mxu0 %v14380_v10  ;;  %v14397_v27 = vld [vmem:[%s19149_s1 + $0xb0] sm:$0xff]   ;;  %v14401_v31 = vld [vmem:[%s19149_s1 + $0xb8] sm:$0xff]   ;;  %v285_v32 = vld [vmem:[%s15647_s23 + $0x8] sm:$0xff]  ;;  %s15402_s13 = sshll.u32 %s15462_s28, 4  ;;  %s15403_s13 = int_to_ptr.vmem [resolvable:$false] %s15402_s13 }
  0x19   : > { %12858 = vmatpush3.bf16.msra.mxu1 %v14381_v11  ;;  %12837 = vmatprep.subr.bf16.mxu0 %v14382_v12  ;;  %v413_v33 = vld [vmem:[%s15647_s23 + $0x408] sm:$0xff]  ;;  %v287_v34 = vld [vmem:[%s15647_s23 + $0x18] sm:$0xff]  ;;  %v284_v37 = vld [vmem:[%s15647_s23] sm:$0xff]  ;;  %s15404_s14 = scalar_lea.vmem %s15403_s13, 256  ;;  %p15405_p0 = scmp.lt.s32.totalorder %s19105_s22, %s15403_s13 }
  0x1a   : > { %12859 = vmatprep.subr.bf16.mxu1 %v14383_v13  ;;  %v541_v35 = vpack.c.bf16 %v413_v33, %v285_v32  ;;  %v415_v36 = vld [vmem:[%s15647_s23 + $0x418] sm:$0xff]  ;;  %v412_v38 = vld [vmem:[%s15647_s23 + $0x400] sm:$0xff]  ;;  %v286_v41 = vld [vmem:[%s15647_s23 + $0x10] sm:$0xff]  ;;  %p15406_p1 = scmp.lt.s32.totalorder %s15404_s14, %s15398_s9 }
  0x1b   : > { %v543_v39 = vpack.c.bf16 %v415_v36, %v287_v34  ;;  %v540_v40 = vpack.c.bf16 %v412_v38, %v284_v37  ;;  %v414_v42 = vld [vmem:[%s15647_s23 + $0x410] sm:$0xff]  ;;  %v14405_v47 = vld [vmem:[%s19149_s1 + $0x180] sm:$0xff]   ;;  %v14406_v48 = vld [vmem:[%s19149_s1 + $0x148] sm:$0xff]  }
  0x1c   : > { %12838 = vmatpush3.bf16.msra.mxu0 %v14384_v14  ;;  %8899 = vmatprep.mubr.bf16.mxu0 %v541_v35  ;;  %v542_v43 = vpack.c.bf16 %v414_v42, %v286_v41  ;;  %v14407_v49 = vld [vmem:[%s19149_s1 + $0x1c8] sm:$0xff]   ;;  %v14410_v52 = vld [vmem:[%s19149_s1 + $0x150] sm:$0xff]   ;;  %v14414_v56 = vld [vmem:[%s19149_s1 + $0x158] sm:$0xff]   ;;  %p15407_p2 = por %p15406_p1, %p15405_p0 }
  0x1d   : > { %12860 = vmatpush3.bf16.msra.mxu1 %v14385_v15  ;;  %12839 = vmatprep.subr.bf16.mxu0 %v14386_v16  ;;  %v14408_v50 = vld [vmem:[%s19149_s1 + $0x108] sm:$0xff]   ;;  %v14411_v53 = vld [vmem:[%s19149_s1 + $0x1d0] sm:$0xff]   ;;  %v14415_v57 = vld [vmem:[%s19149_s1 + $0x1d8] sm:$0xff]  }
  0x1e   : > { %12861 = vmatprep.subr.bf16.mxu1 %v14387_v17  ;;  %8940 = vmatprep.mubr.bf16.mxu1 %v543_v39  ;;  %v14409_v51 = vld [vmem:[%s19149_s1 + $0x188] sm:$0xff]   ;;  %v14412_v54 = vld [vmem:[%s19149_s1 + $0x110] sm:$0xff]   ;;  %v14416_v58 = vld [vmem:[%s19149_s1 + $0x118] sm:$0xff]   ;;  %p15408_p3 = pnand %p15407_p2, %p15401_p13 }
  0x1f   : > { %v14413_v55 = vld [vmem:[%s19149_s1 + $0x190] sm:$0xff]   ;;  %v14417_v59 = vld [vmem:[%s19149_s1 + $0x198] sm:$0xff]   ;;  %v14418_v60 = vld [vmem:[%s19149_s1 + $0x160] sm:$0xff]  }
  0x20   : > { %12840 = vmatpush3.bf16.msra.mxu0 %v14388_v18  ;;  %v14419_v61 = vld [vmem:[%s19149_s1 + $0x1e0] sm:$0xff]   ;;  %v14422_v0 = vld [vmem:[%s19149_s1 + $0x168] sm:$0xff]   ;;  %v14426_v4 = vld [vmem:[%s19149_s1 + $0x170] sm:$0xff]  }
  0x21   : > { %12862 = vmatpush3.bf16.msra.mxu1 %v14389_v19  ;;  %12841 = vmatprep.subr.bf16.mxu0 %v14390_v20  ;;  %v14420_v62 = vld [vmem:[%s19149_s1 + $0x120] sm:$0xff]   ;;  %v14423_v1 = vld [vmem:[%s19149_s1 + $0x1e8] sm:$0xff]   ;;  %v14427_v5 = vld [vmem:[%s19149_s1 + $0x1f0] sm:$0xff]  }
  0x22   : > { %12863 = vmatprep.subr.bf16.mxu1 %v14391_v21  ;;  %v14421_v63 = vld [vmem:[%s19149_s1 + $0x1a0] sm:$0xff]   ;;  %v14424_v2 = vld [vmem:[%s19149_s1 + $0x128] sm:$0xff]   ;;  %v14428_v6 = vld [vmem:[%s19149_s1 + $0x130] sm:$0xff]  }
  0x23   : > { %v14425_v3 = vld [vmem:[%s19149_s1 + $0x1a8] sm:$0xff]   ;;  %v14429_v7 = vld [vmem:[%s19149_s1 + $0x1b0] sm:$0xff]   ;;  %v14430_v8 = vld [vmem:[%s19149_s1 + $0x178] sm:$0xff]  }
  0x24   : > { %12842 = vmatpush3.bf16.msra.mxu0 %v14392_v22  ;;  %v14431_v9 = vld [vmem:[%s19149_s1 + $0x1f8] sm:$0xff]   ;;  %v289_v12 = vld [vmem:[%s15647_s23 + $0x28] sm:$0xff]  ;;  %v288_v18 = vld [vmem:[%s15647_s23 + $0x20] sm:$0xff] }
  0x25   : > { %12864 = vmatpush3.bf16.msra.mxu1 %v14393_v23  ;;  %12843 = vmatprep.subr.bf16.mxu0 %v14394_v24  ;;  %v14432_v10 = vld [vmem:[%s19149_s1 + $0x138] sm:$0xff]   ;;  %v417_v13 = vld [vmem:[%s15647_s23 + $0x428] sm:$0xff]  ;;  %v416_v19 = vld [vmem:[%s15647_s23 + $0x420] sm:$0xff] }
  0x26   : > { %12865 = vmatprep.subr.bf16.mxu1 %v14395_v25  ;;  %v14433_v11 = vld [vmem:[%s19149_s1 + $0x1b8] sm:$0xff]   ;;  %v545_v16 = vpack.c.bf16 %v417_v13, %v289_v12  ;;  %v290_v20 = vld [vmem:[%s15647_s23 + $0x30] sm:$0xff]  ;;  %v544_v21 = vpack.c.bf16 %v416_v19, %v288_v18  ;;  %v14434_v24 = vld [vmem:[%s19149_s1 + $0x240] sm:$0xff]  }
  0x27   : > { %v291_v14 = vld [vmem:[%s15647_s23 + $0x38] sm:$0xff]  ;;  %v418_v22 = vld [vmem:[%s15647_s23 + $0x430] sm:$0xff]  ;;  %v14435_v25 = vld [vmem:[%s19149_s1 + $0x2c0] sm:$0xff]  }
  0x28   : > { %12844 = vmatpush3.bf16.msra.mxu0 %v14396_v26  ;;  %v419_v15 = vld [vmem:[%s15647_s23 + $0x438] sm:$0xff]  ;;  %v546_v23 = vpack.c.bf16 %v418_v22, %v290_v20  ;;  %v14436_v26 = vld [vmem:[%s19149_s1 + $0x200] sm:$0xff]   ;;  %v14442_v32 = vld [vmem:[%s19149_s1 + $0x250] sm:$0xff]  }
  0x29   : > { %12866 = vmatpush3.bf16.msra.mxu1 %v14397_v27  ;;  %12845 = vmatprep.subr.bf16.mxu0 %v14398_v28  ;;  %v547_v17 = vpack.c.bf16 %v419_v15, %v291_v14  ;;  %v14437_v27 = vld [vmem:[%s19149_s1 + $0x280] sm:$0xff]   ;;  %v14438_v28 = vld [vmem:[%s19149_s1 + $0x248] sm:$0xff]   ;;  %v14443_v33 = vld [vmem:[%s19149_s1 + $0x2d0] sm:$0xff]  }
  0x2a   : > { %12867 = vmatprep.subr.bf16.mxu1 %v14399_v29  ;;  %v14439_v29 = vld [vmem:[%s19149_s1 + $0x2c8] sm:$0xff]   ;;  %v14444_v34 = vld [vmem:[%s19149_s1 + $0x210] sm:$0xff]   ;;  %v14446_v36 = vld [vmem:[%s19149_s1 + $0x258] sm:$0xff]  }
  0x2b   : > { %v14445_v35 = vld [vmem:[%s19149_s1 + $0x290] sm:$0xff]   ;;  %v14447_v37 = vld [vmem:[%s19149_s1 + $0x2d8] sm:$0xff]   ;;  %v14451_v41 = vld [vmem:[%s19149_s1 + $0x2e0] sm:$0xff]  }
  0x2c   : > { %12846 = vmatpush3.bf16.msra.mxu0 %v14400_v30  ;;  %v14440_v30 = vld [vmem:[%s19149_s1 + $0x208] sm:$0xff]   ;;  %v14448_v38 = vld [vmem:[%s19149_s1 + $0x218] sm:$0xff]   ;;  %v14452_v42 = vld [vmem:[%s19149_s1 + $0x220] sm:$0xff]  }
  0x2d   : > { %12868 = vmatpush3.bf16.msra.mxu1 %v14401_v31  ;;  %12875 = vmatprep.subr.bf16.mxu0 %v14402_v44  ;;  %v14441_v31 = vld [vmem:[%s19149_s1 + $0x288] sm:$0xff]   ;;  %v14449_v39 = vld [vmem:[%s19149_s1 + $0x298] sm:$0xff]   ;;  %v14474_v12 = vld [vmem:[%s19149_s1 + $0x350] sm:$0xff]  }
  0x2e   : > { %12897 = vmatprep.subr.bf16.mxu1 %v14403_v45  ;;  %v14454_v44 = vld [vmem:[%s19149_s1 + $0x268] sm:$0xff]   ;;  %v14475_v13 = vld [vmem:[%s19149_s1 + $0x3d0] sm:$0xff]   ;;  %v14480_v18 = vld [vmem:[%s19149_s1 + $0x318] sm:$0xff]  }
  0x2f   : > { %8900 = vmatmul.mubr.bf16.vlgmr.msra.gmra.mrb[0].mxu0 %v540_v40  ;;  %v14450_v40 = vld [vmem:[%s19149_s1 + $0x260] sm:$0xff]   ;;  %v14455_v45 = vld [vmem:[%s19149_s1 + $0x2e8] sm:$0xff]   ;;  %v14476_v14 = vld [vmem:[%s19149_s1 + $0x310] sm:$0xff]  }
  0x30   : > { %8941 = vmatmul.mubr.bf16.vlgmr.msra.gmra.mrb[0].mxu1 %v542_v43  ;;  %12876 = vmatpush3.bf16.msra.mxu0 %v14404_v46  ;;  %v14453_v43 = vld [vmem:[%s19149_s1 + $0x2a0] sm:$0xff]   ;;  %v14456_v46 = vld [vmem:[%s19149_s1 + $0x228] sm:$0xff]   ;;  %v14477_v15 = vld [vmem:[%s19149_s1 + $0x390] sm:$0xff]  }
  0x31   : > { %12898 = vmatpush3.bf16.msra.mxu1 %v14405_v47  ;;  %12877 = vmatprep.subr.bf16.mxu0 %v14406_v48  ;;  %v14457_v47 = vld [vmem:[%s19149_s1 + $0x2a8] sm:$0xff]   ;;  %v14458_v48 = vld [vmem:[%s19149_s1 + $0x270] sm:$0xff]   ;;  %v14481_v19 = vld [vmem:[%s19149_s1 + $0x398] sm:$0xff]  }
  0x32   : > { %12899 = vmatprep.subr.bf16.mxu1 %v14407_v49  ;;  %8981 = vmatprep.mubr.bf16.mxu0 %v545_v16  ;;  %v14459_v49 = vld [vmem:[%s19149_s1 + $0x2f0] sm:$0xff]   ;;  %v14478_v16 = vld [vmem:[%s19149_s1 + $0x358] sm:$0xff]   ;;  %v14482_v20 = vld [vmem:[%s19149_s1 + $0x360] sm:$0xff]  }
  0x33   : > { %9022 = vmatprep.mubr.bf16.mxu1 %v547_v17  ;;  %v14479_v17 = vld [vmem:[%s19149_s1 + $0x3d8] sm:$0xff]   ;;  %v14484_v22 = vld [vmem:[%s19149_s1 + $0x320] sm:$0xff]  }
  0x34   : > { %12878 = vmatpush3.bf16.msra.mxu0 %v14408_v50  ;;  %v14460_v50 = vld [vmem:[%s19149_s1 + $0x230] sm:$0xff]  }
  0x35   : > { %12900 = vmatpush3.bf16.msra.mxu1 %v14409_v51  ;;  %12879 = vmatprep.subr.bf16.mxu0 %v14410_v52  ;;  %v14461_v51 = vld [vmem:[%s19149_s1 + $0x2b0] sm:$0xff]   ;;  %v14462_v52 = vld [vmem:[%s19149_s1 + $0x278] sm:$0xff]  }
  0x36   : > { %12901 = vmatprep.subr.bf16.mxu1 %v14411_v53  ;;  %v14463_v53 = vld [vmem:[%s19149_s1 + $0x2f8] sm:$0xff]  }
  0x38   : > { %12880 = vmatpush3.bf16.msra.mxu0 %v14412_v54  ;;  %v14464_v54 = vld [vmem:[%s19149_s1 + $0x238] sm:$0xff]  }
  0x39   : > { %12902 = vmatpush3.bf16.msra.mxu1 %v14413_v55  ;;  %12881 = vmatprep.subr.bf16.mxu0 %v14414_v56  ;;  %v14465_v55 = vld [vmem:[%s19149_s1 + $0x2b8] sm:$0xff]   ;;  %v293_v56 = vld [vmem:[%s15647_s23 + $0x48] sm:$0xff] }
  0x3a   : > { %12903 = vmatprep.subr.bf16.mxu1 %v14415_v57  ;;  %v421_v57 = vld [vmem:[%s15647_s23 + $0x448] sm:$0xff] }
  0x3c   : > { %12882 = vmatpush3.bf16.msra.mxu0 %v14416_v58  ;;  %v549_v58 = vpack.c.bf16 %v421_v57, %v293_v56  ;;  %v14506_v56 = vld [vmem:[%s19149_s1 + $0x450] sm:$0xff]  }
  0x3d   : > { %12904 = vmatpush3.bf16.msra.mxu1 %v14417_v59  ;;  %12883 = vmatprep.subr.bf16.mxu0 %v14418_v60  ;;  %v295_v59 = vld [vmem:[%s15647_s23 + $0x58] sm:$0xff]  ;;  %v14507_v57 = vld [vmem:[%s19149_s1 + $0x4d0] sm:$0xff]  }
  0x3e   : > { %12905 = vmatprep.subr.bf16.mxu1 %v14419_v61  ;;  %v423_v60 = vld [vmem:[%s15647_s23 + $0x458] sm:$0xff]  ;;  %v292_v61 = vld [vmem:[%s15647_s23 + $0x40] sm:$0xff] }
  0x40   : > { %12884 = vmatpush3.bf16.msra.mxu0 %v14420_v62  ;;  %v551_v62 = vpack.c.bf16 %v423_v60, %v295_v59  ;;  %v14509_v59 = vld [vmem:[%s19149_s1 + $0x490] sm:$0xff]   ;;  %v14510_v60 = vld [vmem:[%s19149_s1 + $0x458] sm:$0xff]  }
  0x41   : > { %12906 = vmatpush3.bf16.msra.mxu1 %v14421_v63  ;;  %12885 = vmatprep.subr.bf16.mxu0 %v14422_v0  ;;  %v420_v63 = vld [vmem:[%s15647_s23 + $0x440] sm:$0xff]  ;;  %v294_v0 = vld [vmem:[%s15647_s23 + $0x50] sm:$0xff] }
  0x42   : > { %12907 = vmatprep.subr.bf16.mxu1 %v14423_v1  ;;  %v422_v1 = vld [vmem:[%s15647_s23 + $0x450] sm:$0xff] }
  0x44   : > { %12886 = vmatpush3.bf16.msra.mxu0 %v14424_v2  ;;  %v548_v2 = vpack.c.bf16 %v420_v63, %v292_v61  ;;  %v14511_v61 = vld [vmem:[%s19149_s1 + $0x4d8] sm:$0xff]  }
  0x45   : > { %12908 = vmatpush3.bf16.msra.mxu1 %v14425_v3  ;;  %12887 = vmatprep.subr.bf16.mxu0 %v14426_v4  ;;  %v550_v3 = vpack.c.bf16 %v422_v1, %v294_v0  ;;  %v14466_v4 = vld [vmem:[%s19149_s1 + $0x340] sm:$0xff]   ;;  %v14513_v63 = vld [vmem:[%s19149_s1 + $0x498] sm:$0xff]  }
  0x46   : > { %12909 = vmatprep.subr.bf16.mxu1 %v14427_v5  ;;  %v14467_v5 = vld [vmem:[%s19149_s1 + $0x3c0] sm:$0xff]  }
  0x47   : > { %v14514_v0 = vld [vmem:[%s19149_s1 + $0x460] sm:$0xff]  }
  0x48   : > { %12888 = vmatpush3.bf16.msra.mxu0 %v14428_v6  ;;  %v14468_v6 = vld [vmem:[%s19149_s1 + $0x300] sm:$0xff]  }
  0x49   : > { %12910 = vmatpush3.bf16.msra.mxu1 %v14429_v7  ;;  %12889 = vmatprep.subr.bf16.mxu0 %v14430_v8  ;;  %v14469_v7 = vld [vmem:[%s19149_s1 + $0x380] sm:$0xff]   ;;  %v14470_v8 = vld [vmem:[%s19149_s1 + $0x348] sm:$0xff]  }
  0x4a   : > { %12911 = vmatprep.subr.bf16.mxu1 %v14431_v9  ;;  %v14471_v9 = vld [vmem:[%s19149_s1 + $0x3c8] sm:$0xff]   ;;  %v14515_v1 = vld [vmem:[%s19149_s1 + $0x4e0] sm:$0xff]  }
  0x4c   : > { %12890 = vmatpush3.bf16.msra.mxu0 %v14432_v10  ;;  %v14472_v10 = vld [vmem:[%s19149_s1 + $0x308] sm:$0xff]  }
  0x4d   : > { %12912 = vmatpush3.bf16.msra.mxu1 %v14433_v11  ;;  %12919 = vmatprep.subr.bf16.mxu0 %v14434_v24  ;;  %v14473_v11 = vld [vmem:[%s19149_s1 + $0x388] sm:$0xff]  }
  0x4e   : > { %12941 = vmatprep.subr.bf16.mxu1 %v14435_v25  ;;  %v14486_v24 = vld [vmem:[%s19149_s1 + $0x368] sm:$0xff]  }
  0x4f   : > { %8982 = vmatmul.mubr.bf16.vlgmr.msra.gmra.mrb[4].mxu0 %v544_v21  ;;  %v14483_v21 = vld [vmem:[%s19149_s1 + $0x3e0] sm:$0xff]   ;;  %v14487_v25 = vld [vmem:[%s19149_s1 + $0x3e8] sm:$0xff]  }
  0x50   : > { %9023 = vmatmul.mubr.bf16.vlgmr.msra.gmra.mrb[4].mxu1 %v546_v23  ;;  %12920 = vmatpush3.bf16.msra.mxu0 %v14436_v26  ;;  %v14485_v23 = vld [vmem:[%s19149_s1 + $0x3a0] sm:$0xff]   ;;  %v14488_v26 = vld [vmem:[%s19149_s1 + $0x328] sm:$0xff]  }
  0x51   : > { %12942 = vmatpush3.bf16.msra.mxu1 %v14437_v27  ;;  %12921 = vmatprep.subr.bf16.mxu0 %v14438_v28  ;;  %v14489_v27 = vld [vmem:[%s19149_s1 + $0x3a8] sm:$0xff]   ;;  %v14490_v28 = vld [vmem:[%s19149_s1 + $0x370] sm:$0xff]  }
  0x52   : > { %12943 = vmatprep.subr.bf16.mxu1 %v14439_v29  ;;  %9063 = vmatprep.mubr.bf16.mxu0 %v549_v58  ;;  %v14491_v29 = vld [vmem:[%s19149_s1 + $0x3f0] sm:$0xff]  }
  0x53   : > { %9104 = vmatprep.mubr.bf16.mxu1 %v551_v62  ;;  %v14508_v58 = vld [vmem:[%s19149_s1 + $0x410] sm:$0xff]   ;;  %v14512_v62 = vld [vmem:[%s19149_s1 + $0x418] sm:$0xff]  }
  0x54   : > { %12922 = vmatpush3.bf16.msra.mxu0 %v14440_v30  ;;  %v14492_v30 = vld [vmem:[%s19149_s1 + $0x330] sm:$0xff]  }
  0x55   : > { %12944 = vmatpush3.bf16.msra.mxu1 %v14441_v31  ;;  %12923 = vmatprep.subr.bf16.mxu0 %v14442_v32  ;;  %v14493_v31 = vld [vmem:[%s19149_s1 + $0x3b0] sm:$0xff]   ;;  %v14494_v32 = vld [vmem:[%s19149_s1 + $0x378] sm:$0xff]  }
  0x56   : > { %12945 = vmatprep.subr.bf16.mxu1 %v14443_v33  ;;  %v14495_v33 = vld [vmem:[%s19149_s1 + $0x3f8] sm:$0xff]  }
  0x58   : > { %12924 = vmatpush3.bf16.msra.mxu0 %v14444_v34  ;;  %v14496_v34 = vld [vmem:[%s19149_s1 + $0x338] sm:$0xff]  }
  0x59   : > { %12946 = vmatpush3.bf16.msra.mxu1 %v14445_v35  ;;  %12925 = vmatprep.subr.bf16.mxu0 %v14446_v36  ;;  %v14497_v35 = vld [vmem:[%s19149_s1 + $0x3b8] sm:$0xff]   ;;  %v297_v36 = vld [vmem:[%s15647_s23 + $0x68] sm:$0xff] }
  0x5a   : > { %12947 = vmatprep.subr.bf16.mxu1 %v14447_v37  ;;  %v425_v37 = vld [vmem:[%s15647_s23 + $0x468] sm:$0xff] }
  0x5c   : > { %12926 = vmatpush3.bf16.msra.mxu0 %v14448_v38  ;;  %v299_v38 = vld [vmem:[%s15647_s23 + $0x78] sm:$0xff] }
  0x5d   : > { %12948 = vmatpush3.bf16.msra.mxu1 %v14449_v39  ;;  %12927 = vmatprep.subr.bf16.mxu0 %v14450_v40  ;;  %v553_v39 = vpack.c.bf16 %v425_v37, %v297_v36  ;;  %v427_v40 = vld [vmem:[%s15647_s23 + $0x478] sm:$0xff]  ;;  %v14538_v36 = vld [vmem:[%s19149_s1 + $0x550] sm:$0xff]  }
  0x5e   : > { %12949 = vmatprep.subr.bf16.mxu1 %v14451_v41  ;;  %v296_v41 = vld [vmem:[%s15647_s23 + $0x60] sm:$0xff]  ;;  %v14539_v37 = vld [vmem:[%s19149_s1 + $0x5d0] sm:$0xff]  }
  0x60   : > { %12928 = vmatpush3.bf16.msra.mxu0 %v14452_v42  ;;  %v424_v42 = vld [vmem:[%s15647_s23 + $0x460] sm:$0xff] }
  0x61   : > { %12950 = vmatpush3.bf16.msra.mxu1 %v14453_v43  ;;  %12929 = vmatprep.subr.bf16.mxu0 %v14454_v44  ;;  %v555_v43 = vpack.c.bf16 %v427_v40, %v299_v38  ;;  %v552_v44 = vpack.c.bf16 %v424_v42, %v296_v41  ;;  %v14540_v38 = vld [vmem:[%s19149_s1 + $0x510] sm:$0xff]   ;;  %v14542_v40 = vld [vmem:[%s19149_s1 + $0x558] sm:$0xff]  }
  0x62   : > { %12951 = vmatprep.subr.bf16.mxu1 %v14455_v45  ;;  %v298_v45 = vld [vmem:[%s15647_s23 + $0x70] sm:$0xff]  ;;  %v14543_v41 = vld [vmem:[%s19149_s1 + $0x5d8] sm:$0xff]  }
  0x63   : > { %v14544_v42 = vld [vmem:[%s19149_s1 + $0x518] sm:$0xff]  }
  0x64   : > { %12930 = vmatpush3.bf16.msra.mxu0 %v14456_v46  ;;  %v426_v46 = vld [vmem:[%s15647_s23 + $0x470] sm:$0xff] }
  0x65   : > { %12952 = vmatpush3.bf16.msra.mxu1 %v14457_v47  ;;  %12931 = vmatprep.subr.bf16.mxu0 %v14458_v48  ;;  %v554_v47 = vpack.c.bf16 %v426_v46, %v298_v45  ;;  %v14498_v48 = vld [vmem:[%s19149_s1 + $0x440] sm:$0xff]  }
  0x66   : > { %12953 = vmatprep.subr.bf16.mxu1 %v14459_v49  ;;  %v14499_v49 = vld [vmem:[%s19149_s1 + $0x4c0] sm:$0xff]  }
  0x67   : > { %v14547_v45 = vld [vmem:[%s19149_s1 + $0x5e0] sm:$0xff]  }
  0x68   : > { %12932 = vmatpush3.bf16.msra.mxu0 %v14460_v50  ;;  %v14500_v50 = vld [vmem:[%s19149_s1 + $0x400] sm:$0xff]  }
  0x69   : > { %12954 = vmatpush3.bf16.msra.mxu1 %v14461_v51  ;;  %12933 = vmatprep.subr.bf16.mxu0 %v14462_v52  ;;  %v14501_v51 = vld [vmem:[%s19149_s1 + $0x480] sm:$0xff]   ;;  %v14502_v52 = vld [vmem:[%s19149_s1 + $0x448] sm:$0xff]  }
  0x6a   : > { %12955 = vmatprep.subr.bf16.mxu1 %v14463_v53  ;;  %v14503_v53 = vld [vmem:[%s19149_s1 + $0x4c8] sm:$0xff]   ;;  %v14548_v46 = vld [vmem:[%s19149_s1 + $0x520] sm:$0xff]  }
  0x6c   : > { %12934 = vmatpush3.bf16.msra.mxu0 %v14464_v54  ;;  %v14504_v54 = vld [vmem:[%s19149_s1 + $0x408] sm:$0xff]  }
  0x6d   : > { %12956 = vmatpush3.bf16.msra.mxu1 %v14465_v55  ;;  %12963 = vmatprep.subr.bf16.mxu0 %v14466_v4  ;;  %v14505_v55 = vld [vmem:[%s19149_s1 + $0x488] sm:$0xff]  }
  0x6e   : > { %12985 = vmatprep.subr.bf16.mxu1 %v14467_v5  ;;  %v14518_v4 = vld [vmem:[%s19149_s1 + $0x468] sm:$0xff]  }
  0x6f   : > { %9064 = vmatmul.mubr.bf16.vlgmr.msra.gmra.mrb[8].mxu0 %v548_v2  ;;  %v14516_v2 = vld [vmem:[%s19149_s1 + $0x420] sm:$0xff]   ;;  %v14519_v5 = vld [vmem:[%s19149_s1 + $0x4e8] sm:$0xff]  }
  0x70   : > { %9105 = vmatmul.mubr.bf16.vlgmr.msra.gmra.mrb[8].mxu1 %v550_v3  ;;  %12964 = vmatpush3.bf16.msra.mxu0 %v14468_v6  ;;  %v14517_v3 = vld [vmem:[%s19149_s1 + $0x4a0] sm:$0xff]   ;;  %v14520_v6 = vld [vmem:[%s19149_s1 + $0x428] sm:$0xff]  }
  0x71   : > { %12986 = vmatpush3.bf16.msra.mxu1 %v14469_v7  ;;  %12965 = vmatprep.subr.bf16.mxu0 %v14470_v8  ;;  %v14521_v7 = vld [vmem:[%s19149_s1 + $0x4a8] sm:$0xff]   ;;  %v14522_v8 = vld [vmem:[%s19149_s1 + $0x470] sm:$0xff]  }
  0x72   : > { %12987 = vmatprep.subr.bf16.mxu1 %v14471_v9  ;;  %9145 = vmatprep.mubr.bf16.mxu0 %v553_v39  ;;  %v14523_v9 = vld [vmem:[%s19149_s1 + $0x4f0] sm:$0xff]  }
  0x73   : > { %9186 = vmatprep.mubr.bf16.mxu1 %v555_v43  ;;  %v14541_v39 = vld [vmem:[%s19149_s1 + $0x590] sm:$0xff]   ;;  %v14545_v43 = vld [vmem:[%s19149_s1 + $0x598] sm:$0xff]  }
  0x74   : > { %12966 = vmatpush3.bf16.msra.mxu0 %v14472_v10  ;;  %v14524_v10 = vld [vmem:[%s19149_s1 + $0x430] sm:$0xff]  }
  0x75   : > { %12988 = vmatpush3.bf16.msra.mxu1 %v14473_v11  ;;  %12967 = vmatprep.subr.bf16.mxu0 %v14474_v12  ;;  %v14525_v11 = vld [vmem:[%s19149_s1 + $0x4b0] sm:$0xff]   ;;  %v14526_v12 = vld [vmem:[%s19149_s1 + $0x478] sm:$0xff]  }
  0x76   : > { %12989 = vmatprep.subr.bf16.mxu1 %v14475_v13  ;;  %v14527_v13 = vld [vmem:[%s19149_s1 + $0x4f8] sm:$0xff]  }
  0x78   : > { %12968 = vmatpush3.bf16.msra.mxu0 %v14476_v14  ;;  %v14528_v14 = vld [vmem:[%s19149_s1 + $0x438] sm:$0xff]  }
  0x79   : > { %12990 = vmatpush3.bf16.msra.mxu1 %v14477_v15  ;;  %12969 = vmatprep.subr.bf16.mxu0 %v14478_v16  ;;  %v14529_v15 = vld [vmem:[%s19149_s1 + $0x4b8] sm:$0xff]   ;;  %v301_v16 = vld [vmem:[%s15647_s23 + $0x88] sm:$0xff] }
  0x7a   : > { %12991 = vmatprep.subr.bf16.mxu1 %v14479_v17  ;;  %v429_v17 = vld [vmem:[%s15647_s23 + $0x488] sm:$0xff] }
  0x7c   : > { %12970 = vmatpush3.bf16.msra.mxu0 %v14480_v18  ;;  %v303_v18 = vld [vmem:[%s15647_s23 + $0x98] sm:$0xff] }
  0x7d   : > { %12992 = vmatpush3.bf16.msra.mxu1 %v14481_v19  ;;  %12971 = vmatprep.subr.bf16.mxu0 %v14482_v20  ;;  %v431_v19 = vld [vmem:[%s15647_s23 + $0x498] sm:$0xff]  ;;  %v557_v20 = vpack.c.bf16 %v429_v17, %v301_v16  ;;  %v14570_v16 = vld [vmem:[%s19149_s1 + $0x650] sm:$0xff]  }
  0x7e   : > { %12993 = vmatprep.subr.bf16.mxu1 %v14483_v21  ;;  %v559_v21 = vpack.c.bf16 %v431_v19, %v303_v18  ;;  %v14571_v17 = vld [vmem:[%s19149_s1 + $0x6d0] sm:$0xff]  }
  0x7f   : > { %v14572_v18 = vld [vmem:[%s19149_s1 + $0x610] sm:$0xff]  }
  0x80   : > { %12972 = vmatpush3.bf16.msra.mxu0 %v14484_v22  ;;  %v300_v22 = vld [vmem:[%s15647_s23 + $0x80] sm:$0xff]  ;;  %v14573_v19 = vld [vmem:[%s19149_s1 + $0x690] sm:$0xff]  }
  0x81   : > { %12994 = vmatpush3.bf16.msra.mxu1 %v14485_v23  ;;  %12973 = vmatprep.subr.bf16.mxu0 %v14486_v24  ;;  %v428_v23 = vld [vmem:[%s15647_s23 + $0x480] sm:$0xff]  ;;  %v302_v24 = vld [vmem:[%s15647_s23 + $0x90] sm:$0xff] }
  0x82   : > { %12995 = vmatprep.subr.bf16.mxu1 %v14487_v25  ;;  %v556_v25 = vpack.c.bf16 %v428_v23, %v300_v22  ;;  %v14576_v22 = vld [vmem:[%s19149_s1 + $0x618] sm:$0xff]  }
  0x83   : > { %v14577_v23 = vld [vmem:[%s19149_s1 + $0x698] sm:$0xff]  }
  0x84   : > { %12974 = vmatpush3.bf16.msra.mxu0 %v14488_v26  ;;  %v430_v26 = vld [vmem:[%s15647_s23 + $0x490] sm:$0xff] }
  0x85   : > { %12996 = vmatpush3.bf16.msra.mxu1 %v14489_v27  ;;  %12975 = vmatprep.subr.bf16.mxu0 %v14490_v28  ;;  %v558_v27 = vpack.c.bf16 %v430_v26, %v302_v24  ;;  %v14530_v28 = vld [vmem:[%s19149_s1 + $0x540] sm:$0xff]  }
  0x86   : > { %12997 = vmatprep.subr.bf16.mxu1 %v14491_v29  ;;  %v14531_v29 = vld [vmem:[%s19149_s1 + $0x5c0] sm:$0xff]  }
  0x87   : > { %v14578_v24 = vld [vmem:[%s19149_s1 + $0x660] sm:$0xff]  }
  0x88   : > { %12976 = vmatpush3.bf16.msra.mxu0 %v14492_v30  ;;  %v14532_v30 = vld [vmem:[%s19149_s1 + $0x500] sm:$0xff]  }
  0x89   : > { %12998 = vmatpush3.bf16.msra.mxu1 %v14493_v31  ;;  %12977 = vmatprep.subr.bf16.mxu0 %v14494_v32  ;;  %v14533_v31 = vld [vmem:[%s19149_s1 + $0x580] sm:$0xff]   ;;  %v14534_v32 = vld [vmem:[%s19149_s1 + $0x548] sm:$0xff]  }
  0x8a   : > { %12999 = vmatprep.subr.bf16.mxu1 %v14495_v33  ;;  %v14535_v33 = vld [vmem:[%s19149_s1 + $0x5c8] sm:$0xff]   ;;  %v14580_v26 = vld [vmem:[%s19149_s1 + $0x620] sm:$0xff]  }
  0x8c   : > { %12978 = vmatpush3.bf16.msra.mxu0 %v14496_v34  ;;  %v14536_v34 = vld [vmem:[%s19149_s1 + $0x508] sm:$0xff]  }
  0x8d   : > { %13000 = vmatpush3.bf16.msra.mxu1 %v14497_v35  ;;  %13007 = vmatprep.subr.bf16.mxu0 %v14498_v48  ;;  %v14537_v35 = vld [vmem:[%s19149_s1 + $0x588] sm:$0xff]  }
  0x8e   : > { %13029 = vmatprep.subr.bf16.mxu1 %v14499_v49  ;;  %v14550_v48 = vld [vmem:[%s19149_s1 + $0x568] sm:$0xff]  }
  0x8f   : > { %9146 = vmatmul.mubr.bf16.vlgmr.msra.gmra.mrb[12].mxu0 %v552_v44  ;;  %v14546_v44 = vld [vmem:[%s19149_s1 + $0x560] sm:$0xff]   ;;  %v14551_v49 = vld [vmem:[%s19149_s1 + $0x5e8] sm:$0xff]  }
  0x90   : > { %9187 = vmatmul.mubr.bf16.vlgmr.msra.gmra.mrb[12].mxu1 %v554_v47  ;;  %13008 = vmatpush3.bf16.msra.mxu0 %v14500_v50  ;;  %v14549_v47 = vld [vmem:[%s19149_s1 + $0x5a0] sm:$0xff]   ;;  %v14552_v50 = vld [vmem:[%s19149_s1 + $0x528] sm:$0xff]  }
  0x91   : > { %13030 = vmatpush3.bf16.msra.mxu1 %v14501_v51  ;;  %13009 = vmatprep.subr.bf16.mxu0 %v14502_v52  ;;  %v14553_v51 = vld [vmem:[%s19149_s1 + $0x5a8] sm:$0xff]   ;;  %v14554_v52 = vld [vmem:[%s19149_s1 + $0x570] sm:$0xff]  }
  0x92   : > { %13031 = vmatprep.subr.bf16.mxu1 %v14503_v53  ;;  %9227 = vmatprep.mubr.bf16.mxu0 %v557_v20  ;;  %v14555_v53 = vld [vmem:[%s19149_s1 + $0x5f0] sm:$0xff]   ;;  %v14574_v20 = vld [vmem:[%s19149_s1 + $0x658] sm:$0xff]  }
  0x93   : > { %9268 = vmatprep.mubr.bf16.mxu1 %v559_v21  ;;  %v14575_v21 = vld [vmem:[%s19149_s1 + $0x6d8] sm:$0xff]  }
  0x94   : > { %13010 = vmatpush3.bf16.msra.mxu0 %v14504_v54  ;;  %v14556_v54 = vld [vmem:[%s19149_s1 + $0x530] sm:$0xff]  }
  0x95   : > { %13032 = vmatpush3.bf16.msra.mxu1 %v14505_v55  ;;  %13011 = vmatprep.subr.bf16.mxu0 %v14506_v56  ;;  %v14557_v55 = vld [vmem:[%s19149_s1 + $0x5b0] sm:$0xff]   ;;  %v14558_v56 = vld [vmem:[%s19149_s1 + $0x578] sm:$0xff]  }
  0x96   : > { %13033 = vmatprep.subr.bf16.mxu1 %v14507_v57  ;;  %v14559_v57 = vld [vmem:[%s19149_s1 + $0x5f8] sm:$0xff]  }
  0x98   : > { %13012 = vmatpush3.bf16.msra.mxu0 %v14508_v58  ;;  %v14560_v58 = vld [vmem:[%s19149_s1 + $0x538] sm:$0xff]  }
  0x99   : > { %13034 = vmatpush3.bf16.msra.mxu1 %v14509_v59  ;;  %13013 = vmatprep.subr.bf16.mxu0 %v14510_v60  ;;  %v14561_v59 = vld [vmem:[%s19149_s1 + $0x5b8] sm:$0xff]   ;;  %v305_v60 = vld [vmem:[%s15647_s23 + $0xa8] sm:$0xff] }
  0x9a   : > { %13035 = vmatprep.subr.bf16.mxu1 %v14511_v61  ;;  %v433_v61 = vld [vmem:[%s15647_s23 + $0x4a8] sm:$0xff] }
  0x9c   : > { %13014 = vmatpush3.bf16.msra.mxu0 %v14512_v62  ;;  %v561_v62 = vpack.c.bf16 %v433_v61, %v305_v60  ;;  %v14600_v60 = vld [vmem:[%s19149_s1 + $0x708] sm:$0xff]  }
  0x9d   : > { %13036 = vmatpush3.bf16.msra.mxu1 %v14513_v63  ;;  %13015 = vmatprep.subr.bf16.mxu0 %v14514_v0  ;;  %v307_v63 = vld [vmem:[%s15647_s23 + $0xb8] sm:$0xff] }
  0x9e   : > { %13037 = vmatprep.subr.bf16.mxu1 %v14515_v1  ;;  %v435_v0 = vld [vmem:[%s15647_s23 + $0x4b8] sm:$0xff]  ;;  %v304_v1 = vld [vmem:[%s15647_s23 + $0xa0] sm:$0xff] }
  0xa0   : > { %13016 = vmatpush3.bf16.msra.mxu0 %v14516_v2  ;;  %v563_v2 = vpack.c.bf16 %v435_v0, %v307_v63 }
  0xa1   : > { %13038 = vmatpush3.bf16.msra.mxu1 %v14517_v3  ;;  %13017 = vmatprep.subr.bf16.mxu0 %v14518_v4  ;;  %v432_v3 = vld [vmem:[%s15647_s23 + $0x4a0] sm:$0xff]  ;;  %v306_v4 = vld [vmem:[%s15647_s23 + $0xb0] sm:$0xff] }
  0xa2   : > { %13039 = vmatprep.subr.bf16.mxu1 %v14519_v5  ;;  %v434_v5 = vld [vmem:[%s15647_s23 + $0x4b0] sm:$0xff] }
  0xa4   : > { %13018 = vmatpush3.bf16.msra.mxu0 %v14520_v6  ;;  %v560_v6 = vpack.c.bf16 %v432_v3, %v304_v1  ;;  %v14602_v1 = vld [vmem:[%s19149_s1 + $0x750] sm:$0xff]  }
  0xa5   : > { %13040 = vmatpush3.bf16.msra.mxu1 %v14521_v7  ;;  %13019 = vmatprep.subr.bf16.mxu0 %v14522_v8  ;;  %v562_v7 = vpack.c.bf16 %v434_v5, %v306_v4  ;;  %v14562_v8 = vld [vmem:[%s19149_s1 + $0x640] sm:$0xff]   ;;  %v14603_v4 = vld [vmem:[%s19149_s1 + $0x7d0] sm:$0xff]  }
  0xa6   : > { %13041 = vmatprep.subr.bf16.mxu1 %v14523_v9  ;;  %v14563_v9 = vld [vmem:[%s19149_s1 + $0x6c0] sm:$0xff]  }
  0xa8   : > { %13020 = vmatpush3.bf16.msra.mxu0 %v14524_v10  ;;  %v14564_v10 = vld [vmem:[%s19149_s1 + $0x600] sm:$0xff]  }
  0xa9   : > { %13042 = vmatpush3.bf16.msra.mxu1 %v14525_v11  ;;  %13021 = vmatprep.subr.bf16.mxu0 %v14526_v12  ;;  %v14565_v11 = vld [vmem:[%s19149_s1 + $0x680] sm:$0xff]   ;;  %v14566_v12 = vld [vmem:[%s19149_s1 + $0x648] sm:$0xff]  }
  0xaa   : > { %13043 = vmatprep.subr.bf16.mxu1 %v14527_v13  ;;  %v14567_v13 = vld [vmem:[%s19149_s1 + $0x6c8] sm:$0xff]  }
  0xac   : > { %13022 = vmatpush3.bf16.msra.mxu0 %v14528_v14  ;;  %v14568_v14 = vld [vmem:[%s19149_s1 + $0x608] sm:$0xff]  }
  0xad   : > { %13044 = vmatpush3.bf16.msra.mxu1 %v14529_v15  ;;  %13051 = vmatprep.subr.bf16.mxu0 %v14530_v28  ;;  %v14569_v15 = vld [vmem:[%s19149_s1 + $0x688] sm:$0xff]  }
  0xae   : > { %13073 = vmatprep.subr.bf16.mxu1 %v14531_v29  ;;  %v14582_v28 = vld [vmem:[%s19149_s1 + $0x668] sm:$0xff]  }
  0xaf   : > { %9228 = vmatmul.mubr.bf16.vlgmr.msra.gmra.mrb[16].mxu0 %v556_v25  ;;  %v14579_v25 = vld [vmem:[%s19149_s1 + $0x6e0] sm:$0xff]   ;;  %v14583_v29 = vld [vmem:[%s19149_s1 + $0x6e8] sm:$0xff]  }
  0xb0   : > { %9269 = vmatmul.mubr.bf16.vlgmr.msra.gmra.mrb[16].mxu1 %v558_v27  ;;  %13052 = vmatpush3.bf16.msra.mxu0 %v14532_v30  ;;  %v14581_v27 = vld [vmem:[%s19149_s1 + $0x6a0] sm:$0xff]   ;;  %v14584_v30 = vld [vmem:[%s19149_s1 + $0x628] sm:$0xff]  }
  0xb1   : > { %13074 = vmatpush3.bf16.msra.mxu1 %v14533_v31  ;;  %13053 = vmatprep.subr.bf16.mxu0 %v14534_v32  ;;  %v14585_v31 = vld [vmem:[%s19149_s1 + $0x6a8] sm:$0xff]   ;;  %v14586_v32 = vld [vmem:[%s19149_s1 + $0x670] sm:$0xff]  }
  0xb2   : > { %13075 = vmatprep.subr.bf16.mxu1 %v14535_v33  ;;  %9309 = vmatprep.mubr.bf16.mxu0 %v561_v62  ;;  %v14587_v33 = vld [vmem:[%s19149_s1 + $0x6f0] sm:$0xff]   ;;  %v14601_v62 = vld [vmem:[%s19149_s1 + $0x788] sm:$0xff]  }
  0xb3   : > { %9350 = vmatprep.mubr.bf16.mxu1 %v563_v2 }
  0xb4   : > { %13054 = vmatpush3.bf16.msra.mxu0 %v14536_v34  ;;  %v14588_v34 = vld [vmem:[%s19149_s1 + $0x630] sm:$0xff]  }
  0xb5   : > { %13076 = vmatpush3.bf16.msra.mxu1 %v14537_v35  ;;  %13055 = vmatprep.subr.bf16.mxu0 %v14538_v36  ;;  %v14589_v35 = vld [vmem:[%s19149_s1 + $0x6b0] sm:$0xff]   ;;  %v14590_v36 = vld [vmem:[%s19149_s1 + $0x678] sm:$0xff]  }
  0xb6   : > { %13077 = vmatprep.subr.bf16.mxu1 %v14539_v37  ;;  %v14591_v37 = vld [vmem:[%s19149_s1 + $0x6f8] sm:$0xff]  }
  0xb8   : > { %13056 = vmatpush3.bf16.msra.mxu0 %v14540_v38  ;;  %v14592_v38 = vld [vmem:[%s19149_s1 + $0x638] sm:$0xff]  }
  0xb9   : > { %13078 = vmatpush3.bf16.msra.mxu1 %v14541_v39  ;;  %13057 = vmatprep.subr.bf16.mxu0 %v14542_v40  ;;  %v14593_v39 = vld [vmem:[%s19149_s1 + $0x6b8] sm:$0xff]   ;;  %v309_v40 = vld [vmem:[%s15647_s23 + $0xc8] sm:$0xff] }
  0xba   : > { %13079 = vmatprep.subr.bf16.mxu1 %v14543_v41  ;;  %v437_v41 = vld [vmem:[%s15647_s23 + $0x4c8] sm:$0xff] }
  0xbc   : > { %13058 = vmatpush3.bf16.msra.mxu0 %v14544_v42  ;;  %v311_v42 = vld [vmem:[%s15647_s23 + $0xd8] sm:$0xff] }
  0xbd   : > { %13080 = vmatpush3.bf16.msra.mxu1 %v14545_v43  ;;  %13059 = vmatprep.subr.bf16.mxu0 %v14546_v44  ;;  %v565_v43 = vpack.c.bf16 %v437_v41, %v309_v40  ;;  %v439_v44 = vld [vmem:[%s15647_s23 + $0x4d8] sm:$0xff] }
  0xbe   : > { %13081 = vmatprep.subr.bf16.mxu1 %v14547_v45  ;;  %v308_v45 = vld [vmem:[%s15647_s23 + $0xc0] sm:$0xff]  ;;  %v443_v41 = vld [vmem:[%s15647_s23 + $0x4f8] sm:$0xff] }
  0xc0   : > { %13060 = vmatpush3.bf16.msra.mxu0 %v14548_v46  ;;  %v436_v46 = vld [vmem:[%s15647_s23 + $0x4c0] sm:$0xff] }
  0xc1   : > { %13082 = vmatpush3.bf16.msra.mxu1 %v14549_v47  ;;  %13061 = vmatprep.subr.bf16.mxu0 %v14550_v48  ;;  %v567_v47 = vpack.c.bf16 %v439_v44, %v311_v42  ;;  %v564_v48 = vpack.c.bf16 %v436_v46, %v308_v45  ;;  %v312_v42 = vld [vmem:[%s15647_s23 + $0xe0] sm:$0xff]  ;;  %v314_v46 = vld [vmem:[%s15647_s23 + $0xf0] sm:$0xff] }
  0xc2   : > { %13083 = vmatprep.subr.bf16.mxu1 %v14551_v49  ;;  %v310_v49 = vld [vmem:[%s15647_s23 + $0xd0] sm:$0xff] }
  0xc4   : > { %13062 = vmatpush3.bf16.msra.mxu0 %v14552_v50  ;;  %v438_v50 = vld [vmem:[%s15647_s23 + $0x4d0] sm:$0xff] }
  0xc5   : > { %13084 = vmatpush3.bf16.msra.mxu1 %v14553_v51  ;;  %13063 = vmatprep.subr.bf16.mxu0 %v14554_v52  ;;  %v566_v51 = vpack.c.bf16 %v438_v50, %v310_v49  ;;  %v14594_v52 = vld [vmem:[%s19149_s1 + $0x740] sm:$0xff]  }
  0xc6   : > { %13085 = vmatprep.subr.bf16.mxu1 %v14555_v53  ;;  %v14595_v53 = vld [vmem:[%s19149_s1 + $0x7c0] sm:$0xff]  }
  0xc7   : > { %v14626_v49 = vld [vmem:[%s19149_s1 + $0x840] sm:$0xff]  }
  0xc8   : > { %13064 = vmatpush3.bf16.msra.mxu0 %v14556_v54  ;;  %v14596_v54 = vld [vmem:[%s19149_s1 + $0x700] sm:$0xff]  }
  0xc9   : > { %13086 = vmatpush3.bf16.msra.mxu1 %v14557_v55  ;;  %13065 = vmatprep.subr.bf16.mxu0 %v14558_v56  ;;  %v14597_v55 = vld [vmem:[%s19149_s1 + $0x780] sm:$0xff]   ;;  %v14598_v56 = vld [vmem:[%s19149_s1 + $0x748] sm:$0xff]  }
  0xca   : > { %13087 = vmatprep.subr.bf16.mxu1 %v14559_v57  ;;  %v14627_v50 = vld [vmem:[%s19149_s1 + $0x8c0] sm:$0xff]  }
  0xcc   : > { %13066 = vmatpush3.bf16.msra.mxu0 %v14560_v58  ;;  %v14599_v58 = vld [vmem:[%s19149_s1 + $0x7c8] sm:$0xff]  }
  0xcd   : > { %13088 = vmatpush3.bf16.msra.mxu1 %v14561_v59  ;;  %13095 = vmatprep.subr.bf16.mxu0 %v14562_v8  ;;  %v14605_v8 = vld [vmem:[%s19149_s1 + $0x790] sm:$0xff]  }
  0xce   : > { %13117 = vmatprep.subr.bf16.mxu1 %v14563_v9 }
  0xcf   : > { %9310 = vmatmul.mubr.bf16.vlgmr.msra.gmra.mrb[20].mxu0 %v560_v6  ;;  %v14604_v6 = vld [vmem:[%s19149_s1 + $0x710] sm:$0xff]  }
  0xd0   : > { %9351 = vmatmul.mubr.bf16.vlgmr.msra.gmra.mrb[20].mxu1 %v562_v7  ;;  %13096 = vmatpush3.bf16.msra.mxu0 %v14564_v10 }
  0xd1   : > { %13118 = vmatpush3.bf16.msra.mxu1 %v14565_v11  ;;  %13097 = vmatprep.subr.bf16.mxu0 %v14566_v12  ;;  %v14606_v11 = vld [vmem:[%s19149_s1 + $0x758] sm:$0xff]  }
  0xd2   : > { %13119 = vmatprep.subr.bf16.mxu1 %v14567_v13  ;;  %9391 = vmatprep.mubr.bf16.mxu0 %v565_v43  ;;  %v14607_v13 = vld [vmem:[%s19149_s1 + $0x7d8] sm:$0xff]   ;;  %v440_v43 = vld [vmem:[%s15647_s23 + $0x4e0] sm:$0xff] }
  0xd3   : > { %9432 = vmatprep.mubr.bf16.mxu1 %v567_v47  ;;  %v568_v45 = vpack.c.bf16 %v440_v43, %v312_v42  ;;  %v442_v47 = vld [vmem:[%s15647_s23 + $0x4f0] sm:$0xff] }
  0xd4   : > { %13098 = vmatpush3.bf16.msra.mxu0 %v14568_v14  ;;  %v14608_v14 = vld [vmem:[%s19149_s1 + $0x718] sm:$0xff]   ;;  %v446_v43 = vld [vmem:[%s15647_s23 + $0x510] sm:$0xff] }
  0xd5   : > { %13120 = vmatpush3.bf16.msra.mxu1 %v14569_v15  ;;  %13099 = vmatprep.subr.bf16.mxu0 %v14570_v16  ;;  %v14609_v15 = vld [vmem:[%s19149_s1 + $0x798] sm:$0xff]   ;;  %v14610_v16 = vld [vmem:[%s19149_s1 + $0x760] sm:$0xff]  }
  0xd6   : > { %13121 = vmatprep.subr.bf16.mxu1 %v14571_v17  ;;  %v14611_v17 = vld [vmem:[%s19149_s1 + $0x7e0] sm:$0xff]  }
  0xd8   : > { %13100 = vmatpush3.bf16.msra.mxu0 %v14572_v18  ;;  %v14612_v18 = vld [vmem:[%s19149_s1 + $0x720] sm:$0xff]  }
  0xd9   : > { %13122 = vmatpush3.bf16.msra.mxu1 %v14573_v19  ;;  %13101 = vmatprep.subr.bf16.mxu0 %v14574_v20  ;;  %v14613_v19 = vld [vmem:[%s19149_s1 + $0x7a0] sm:$0xff]  }
  0xda   : > { %13123 = vmatprep.subr.bf16.mxu1 %v14575_v21  ;;  %v11784_v20 = vld [vmem:[%s19150_s2] ss:$0 sm:$0xff] }
  0xdc   : > { %13102 = vmatpush3.bf16.msra.mxu0 %v14576_v22  ;;  %v14614_v22 = vld [vmem:[%s19149_s1 + $0x768] sm:$0xff]  }
  0xdd   : > { %13124 = vmatpush3.bf16.msra.mxu1 %v14577_v23  ;;  %13103 = vmatprep.subr.bf16.mxu0 %v14578_v24  ;;  %v14615_v24 = vld [vmem:[%s19149_s1 + $0x7e8] sm:$0xff]  }
  0xde   : > { %13125 = vmatprep.subr.bf16.mxu1 %v14579_v25 }
  0xe0   : > { %13104 = vmatpush3.bf16.msra.mxu0 %v14580_v26  ;;  %v14616_v26 = vld [vmem:[%s19149_s1 + $0x728] sm:$0xff]  }
  0xe1   : > { %13126 = vmatpush3.bf16.msra.mxu1 %v14581_v27  ;;  %13105 = vmatprep.subr.bf16.mxu0 %v14582_v28  ;;  %v14617_v28 = vld [vmem:[%s19149_s1 + $0x7a8] sm:$0xff]  }
  0xe2   : > { %13127 = vmatprep.subr.bf16.mxu1 %v14583_v29  ;;  %v14618_v29 = vld [vmem:[%s19149_s1 + $0x770] sm:$0xff]  }
  0xe4   : > { %13106 = vmatpush3.bf16.msra.mxu0 %v14584_v30  ;;  %v14619_v30 = vld [vmem:[%s19149_s1 + $0x7f0] sm:$0xff]  }
  0xe5   : > { %13128 = vmatpush3.bf16.msra.mxu1 %v14585_v31  ;;  %13107 = vmatprep.subr.bf16.mxu0 %v14586_v32  ;;  %v14620_v31 = vld [vmem:[%s19149_s1 + $0x730] sm:$0xff]  }
  0xe6   : > { %13129 = vmatprep.subr.bf16.mxu1 %v14587_v33  ;;  %v14621_v32 = vld [vmem:[%s19149_s1 + $0x7b0] sm:$0xff]   ;;  %v14622_v33 = vld [vmem:[%s19149_s1 + $0x778] sm:$0xff]  }
  0xe8   : > { %13108 = vmatpush3.bf16.msra.mxu0 %v14588_v34  ;;  %v14623_v34 = vld [vmem:[%s19149_s1 + $0x7f8] sm:$0xff]  }
  0xe9   : > { %13130 = vmatpush3.bf16.msra.mxu1 %v14589_v35  ;;  %13109 = vmatprep.subr.bf16.mxu0 %v14590_v36  ;;  %v14624_v35 = vld [vmem:[%s19149_s1 + $0x738] sm:$0xff]  }
  0xea   : > { %13131 = vmatprep.subr.bf16.mxu1 %v14591_v37  ;;  %v14625_v36 = vld [vmem:[%s19149_s1 + $0x7b8] sm:$0xff]   ;;  %v313_v37 = vld [vmem:[%s15647_s23 + $0xe8] sm:$0xff] }
  0xec   : > { %13110 = vmatpush3.bf16.msra.mxu0 %v14592_v38  ;;  %v441_v38 = vld [vmem:[%s15647_s23 + $0x4e8] sm:$0xff] }
  0xed   : > { %13132 = vmatpush3.bf16.msra.mxu1 %v14593_v39  ;;  %13139 = vmatprep.subr.bf16.mxu0 %v14594_v52  ;;  %v315_v39 = vld [vmem:[%s15647_s23 + $0xf8] sm:$0xff]  ;;  %v569_v40 = vpack.c.bf16 %v441_v38, %v313_v37  ;;  %v14629_v52 = vld [vmem:[%s19149_s1 + $0x880] sm:$0xff]  }
  0xee   : > { %13161 = vmatprep.subr.bf16.mxu1 %v14595_v53  ;;  %v571_v44 = vpack.c.bf16 %v443_v41, %v315_v39  ;;  %v14630_v53 = vld [vmem:[%s19149_s1 + $0x848] sm:$0xff]   ;;  %v316_v39 = vld [vmem:[%s15647_s23 + $0x100] sm:$0xff]  ;;  %v318_v41 = vld [vmem:[%s15647_s23 + $0x110] sm:$0xff] }
  0xef   : > { %9392 = vmatmul.mubr.bf16.vlgmr.msra.gmra.mrb[24].mxu0 %v564_v48  ;;  %v570_v48 = vpack.c.bf16 %v442_v47, %v314_v46  ;;  %v14659_v46 = vld [vmem:[%s19149_s1 + $0x9c0] sm:$0xff]  }
  0xf0   : > { %9433 = vmatmul.mubr.bf16.vlgmr.msra.gmra.mrb[24].mxu1 %v566_v51  ;;  %13140 = vmatpush3.bf16.msra.mxu0 %v14596_v54  ;;  %v14628_v51 = vld [vmem:[%s19149_s1 + $0x800] sm:$0xff]  }
  0xf1   : > { %13162 = vmatpush3.bf16.msra.mxu1 %v14597_v55  ;;  %13141 = vmatprep.subr.bf16.mxu0 %v14598_v56  ;;  %v14631_v55 = vld [vmem:[%s19149_s1 + $0x8c8] sm:$0xff]   ;;  %v14660_v47 = vld [vmem:[%s19149_s1 + $0x900] sm:$0xff]  }
  0xf2   : > { %13163 = vmatprep.subr.bf16.mxu1 %v14599_v58  ;;  %9473 = vmatprep.mubr.bf16.mxu0 %v569_v40  ;;  %v444_v40 = vld [vmem:[%s15647_s23 + $0x500] sm:$0xff] }
  0xf3   : > { %9514 = vmatprep.mubr.bf16.mxu1 %v571_v44  ;;  %v572_v42 = vpack.c.bf16 %v444_v40, %v316_v39  ;;  %v574_v44 = vpack.c.bf16 %v446_v43, %v318_v41  ;;  %v14690_v41 = vld [vmem:[%s19149_s1 + $0xa40] sm:$0xff]  }
  0xf4   : > { %13142 = vmatpush3.bf16.msra.mxu0 %v14600_v60  ;;  %v14692_v43 = vld [vmem:[%s19149_s1 + $0xa00] sm:$0xff]  }
  0xf5   : > { %13164 = vmatpush3.bf16.msra.mxu1 %v14601_v62  ;;  %13143 = vmatprep.subr.bf16.mxu0 %v14602_v1  ;;  %v14634_v62 = vld [vmem:[%s19149_s1 + $0x850] sm:$0xff]  }
  0xf6   : > { %13165 = vmatprep.subr.bf16.mxu1 %v14603_v4  ;;  %v14635_v1 = vld [vmem:[%s19149_s1 + $0x8d0] sm:$0xff]  }
  0xf7   : > { %v14636_v4 = vld [vmem:[%s19149_s1 + $0x810] sm:$0xff]  }
  0xf8   : > { %13144 = vmatpush3.bf16.msra.mxu0 %v14604_v6  ;;  %v14637_v6 = vld [vmem:[%s19149_s1 + $0x890] sm:$0xff]  }
  0xf9   : > { %13166 = vmatpush3.bf16.msra.mxu1 %v14605_v8  ;;  %13145 = vmatprep.subr.bf16.mxu0 %v14606_v11 }
  0xfa   : > { %13167 = vmatprep.subr.bf16.mxu1 %v14607_v13 }
  0xfc   : > { %13146 = vmatpush3.bf16.msra.mxu0 %v14608_v14  ;;  %v14640_v14 = vld [vmem:[%s19149_s1 + $0x818] sm:$0xff]  }
  0xfd   : > { %13168 = vmatpush3.bf16.msra.mxu1 %v14609_v15  ;;  %13147 = vmatprep.subr.bf16.mxu0 %v14610_v16  ;;  %v14641_v15 = vld [vmem:[%s19149_s1 + $0x898] sm:$0xff]  }
  0xfe   : > { %13169 = vmatprep.subr.bf16.mxu1 %v14611_v17  ;;  %v14642_v17 = vld [vmem:[%s19149_s1 + $0x860] sm:$0xff]  }
 0x100   : > { %13148 = vmatpush3.bf16.msra.mxu0 %v14612_v18  ;;  %v14643_v18 = vld [vmem:[%s19149_s1 + $0x8e0] sm:$0xff]  }
 0x101   : > { %13170 = vmatpush3.bf16.msra.mxu1 %v14613_v19  ;;  %13149 = vmatprep.subr.bf16.mxu0 %v14614_v22  ;;  %v14644_v19 = vld [vmem:[%s19149_s1 + $0x820] sm:$0xff]   ;;  %v14647_v22 = vld [vmem:[%s19149_s1 + $0x8e8] sm:$0xff]  }
 0x102   : > { %v12847_v57 = vpop.f32.mrb[0].mxu0  ;;  %13171 = vmatprep.subr.bf16.mxu1 %v14615_v24  ;;  %v14649_v24 = vld [vmem:[%s19149_s1 + $0x8a8] sm:$0xff]  }
 0x103   : > { %v12869_v59 = vpop.f32.mrb[0].mxu1  ;;  %v12848_v61 = vpop.f32.mrb[1].mxu0 }
 0x104   : > { %v12849_v63 = vadd.f32 %v12848_v61, %v12847_v57  ;;  %v12870_v0 = vpop.f32.mrb[1].mxu1  ;;  %v12850_v3 = vpop.f32.mrb[2].mxu0  ;;  %13150 = vmatpush3.bf16.msra.mxu0 %v14616_v26  ;;  %v14632_v57 = vld [vmem:[%s19149_s1 + $0x808] sm:$0xff]   ;;  %v14651_v26 = vld [vmem:[%s19149_s1 + $0x8f0] sm:$0xff]  }
 0x105   : > { %v12871_v2 = vadd.f32 %v12870_v0, %v12869_v59  ;;  %v12872_v5 = vpop.f32.mrb[2].mxu1  ;;  %v12851_v7 = vpop.f32.mrb[3].mxu0  ;;  %13172 = vmatpush3.bf16.msra.mxu1 %v14617_v28  ;;  %13151 = vmatprep.subr.bf16.mxu0 %v14618_v29  ;;  %v14633_v59 = vld [vmem:[%s19149_s1 + $0x888] sm:$0xff]   ;;  %v14653_v28 = vld [vmem:[%s19149_s1 + $0x8b0] sm:$0xff]   ;;  %v14654_v29 = vld [vmem:[%s19149_s1 + $0x878] sm:$0xff]  }
 0x106   : > { %v12852_v9 = vadd.f32 %v12851_v7, %v12850_v3  ;;  %v12873_v10 = vpop.f32.mrb[3].mxu1  ;;  %v8902_v21 = vadd.f32 %v12849_v63, %v11784_v20  ;;  %13173 = vmatprep.subr.bf16.mxu1 %v14619_v30  ;;  %v14655_v30 = vld [vmem:[%s19149_s1 + $0x8f8] sm:$0xff]  }
 0x107   : > { %v12874_v12 = vadd.f32 %v12873_v10, %v12872_v5  ;;  %v14638_v10 = vld [vmem:[%s19149_s1 + $0x858] sm:$0xff]  }
 0x108   : > { %v8905_v23 = vadd.f32 %v12852_v9, %v11784_v20  ;;  %v16356_v25 = vadd.f32 %v12871_v2, %v8902_v21  ;;  %13152 = vmatpush3.bf16.msra.mxu0 %v14620_v31  ;;  %v14645_v20 = vld [vmem:[%s19149_s1 + $0x8a0] sm:$0xff]   ;;  %v14646_v21 = vld [vmem:[%s19149_s1 + $0x868] sm:$0xff]   ;;  %v14656_v31 = vld [vmem:[%s19149_s1 + $0x838] sm:$0xff]  }
 0x109   : > { %13174 = vmatpush3.bf16.msra.mxu1 %v14621_v32  ;;  %13153 = vmatprep.subr.bf16.mxu0 %v14622_v33  ;;  %v14657_v32 = vld [vmem:[%s19149_s1 + $0x8b8] sm:$0xff]   ;;  %v317_v33 = vld [vmem:[%s15647_s23 + $0x108] sm:$0xff] }
 0x10a   : > { %v16361_v27 = vadd.f32 %v12874_v12, %v8905_v23  ;;  %13175 = vmatprep.subr.bf16.mxu1 %v14623_v34  ;;  %v14639_v12 = vld [vmem:[%s19149_s1 + $0x8d8] sm:$0xff]   ;;  %v14648_v23 = vld [vmem:[%s19149_s1 + $0x828] sm:$0xff]  }
 0x10b   : > { %v445_v34 = vld [vmem:[%s15647_s23 + $0x508] sm:$0xff] }
 0x10c   : > { %13154 = vmatpush3.bf16.msra.mxu0 %v14624_v35  ;;  %v319_v35 = vld [vmem:[%s15647_s23 + $0x118] sm:$0xff]  ;;  %v573_v37 = vpack.c.bf16 %v445_v34, %v317_v33  ;;  %v320_v34 = vld [vmem:[%s15647_s23 + $0x120] sm:$0xff] }
 0x10d   : > { %13176 = vmatpush3.bf16.msra.mxu1 %v14625_v36  ;;  %13183 = vmatprep.subr.bf16.mxu0 %v14626_v49  ;;  %v447_v36 = vld [vmem:[%s15647_s23 + $0x518] sm:$0xff]  ;;  %v14662_v49 = vld [vmem:[%s19149_s1 + $0x948] sm:$0xff]  }
 0x10e   : > { %13205 = vmatprep.subr.bf16.mxu1 %v14627_v50  ;;  %v575_v38 = vpack.c.bf16 %v447_v36, %v319_v35  ;;  %v451_v33 = vld [vmem:[%s15647_s23 + $0x538] sm:$0xff]  ;;  %v448_v36 = vld [vmem:[%s15647_s23 + $0x520] sm:$0xff] }
 0x10f   : > { %9474 = vmatmul.mubr.bf16.vlgmr.msra.gmra.mrb[28].mxu0 %v568_v45  ;;  %v14658_v45 = vld [vmem:[%s19149_s1 + $0x940] sm:$0xff]   ;;  %v576_v39 = vpack.c.bf16 %v448_v36, %v320_v34  ;;  %v326_v34 = vld [vmem:[%s15647_s23 + $0x150] sm:$0xff] }
 0x110   : > { %9515 = vmatmul.mubr.bf16.vlgmr.msra.gmra.mrb[28].mxu1 %v570_v48  ;;  %13184 = vmatpush3.bf16.msra.mxu0 %v14628_v51  ;;  %v14661_v48 = vld [vmem:[%s19149_s1 + $0x980] sm:$0xff]   ;;  %v14663_v51 = vld [vmem:[%s19149_s1 + $0x9c8] sm:$0xff]  }
 0x111   : > { %13206 = vmatpush3.bf16.msra.mxu1 %v14629_v52  ;;  %13185 = vmatprep.subr.bf16.mxu0 %v14630_v53  ;;  %v14664_v53 = vld [vmem:[%s19149_s1 + $0x908] sm:$0xff]  }
 0x112   : > { %13207 = vmatprep.subr.bf16.mxu1 %v14631_v55  ;;  %9555 = vmatprep.mubr.bf16.mxu0 %v573_v37  ;;  %v14665_v55 = vld [vmem:[%s19149_s1 + $0x988] sm:$0xff]   ;;  %v322_v37 = vld [vmem:[%s15647_s23 + $0x130] sm:$0xff] }
 0x113   : > { %9596 = vmatprep.mubr.bf16.mxu1 %v575_v38  ;;  %v450_v38 = vld [vmem:[%s15647_s23 + $0x530] sm:$0xff] }
 0x114   : > { %13186 = vmatpush3.bf16.msra.mxu0 %v14632_v57  ;;  %v578_v40 = vpack.c.bf16 %v450_v38, %v322_v37  ;;  %v14722_v37 = vld [vmem:[%s19149_s1 + $0xb40] sm:$0xff]  }
 0x115   : > { %13208 = vmatpush3.bf16.msra.mxu1 %v14633_v59  ;;  %13187 = vmatprep.subr.bf16.mxu0 %v14634_v62  ;;  %v14723_v38 = vld [vmem:[%s19149_s1 + $0xbc0] sm:$0xff]  }
 0x116   : > { %13209 = vmatprep.subr.bf16.mxu1 %v14635_v1 }
 0x118   : > { %13188 = vmatpush3.bf16.msra.mxu0 %v14636_v4 }
 0x119   : > { %13210 = vmatpush3.bf16.msra.mxu1 %v14637_v6  ;;  %13189 = vmatprep.subr.bf16.mxu0 %v14638_v10  ;;  %v14670_v6 = vld [vmem:[%s19149_s1 + $0x958] sm:$0xff]  }
 0x11a   : > { %13211 = vmatprep.subr.bf16.mxu1 %v14639_v12  ;;  %v14672_v10 = vld [vmem:[%s19149_s1 + $0x918] sm:$0xff]  }
 0x11c   : > { %13190 = vmatpush3.bf16.msra.mxu0 %v14640_v14  ;;  %v14675_v14 = vld [vmem:[%s19149_s1 + $0x9e0] sm:$0xff]  }
 0x11d   : > { %13212 = vmatpush3.bf16.msra.mxu1 %v14641_v15  ;;  %13191 = vmatprep.subr.bf16.mxu0 %v14642_v17  ;;  %v14676_v15 = vld [vmem:[%s19149_s1 + $0x920] sm:$0xff]   ;;  %v14678_v17 = vld [vmem:[%s19149_s1 + $0x968] sm:$0xff]  }
 0x11e   : > { %13213 = vmatprep.subr.bf16.mxu1 %v14643_v18  ;;  %v14679_v18 = vld [vmem:[%s19149_s1 + $0x9e8] sm:$0xff]  }
 0x120   : > { %13192 = vmatpush3.bf16.msra.mxu0 %v14644_v19  ;;  %v14680_v19 = vld [vmem:[%s19149_s1 + $0x928] sm:$0xff]  }
 0x121   : > { %13214 = vmatpush3.bf16.msra.mxu1 %v14645_v20  ;;  %13193 = vmatprep.subr.bf16.mxu0 %v14646_v21  ;;  %v14681_v20 = vld [vmem:[%s19149_s1 + $0x9a8] sm:$0xff]   ;;  %v14682_v21 = vld [vmem:[%s19149_s1 + $0x970] sm:$0xff]  }
 0x122   : > { %v12891_v54 = vpop.f32.mrb[4].mxu0  ;;  %13215 = vmatprep.subr.bf16.mxu1 %v14647_v22  ;;  %v14683_v22 = vld [vmem:[%s19149_s1 + $0x9f0] sm:$0xff]  }
 0x123   : > { %v12913_v56 = vpop.f32.mrb[4].mxu1  ;;  %v12892_v58 = vpop.f32.mrb[5].mxu0 }
 0x124   : > { %v12893_v60 = vadd.f32 %v12892_v58, %v12891_v54  ;;  %v12914_v61 = vpop.f32.mrb[5].mxu1  ;;  %v12894_v0 = vpop.f32.mrb[6].mxu0  ;;  %13194 = vmatpush3.bf16.msra.mxu0 %v14648_v23  ;;  %v14666_v58 = vld [vmem:[%s19149_s1 + $0x950] sm:$0xff]  }
 0x125   : > { %v12915_v63 = vadd.f32 %v12914_v61, %v12913_v56  ;;  %v12916_v3 = vpop.f32.mrb[6].mxu1  ;;  %v12895_v5 = vpop.f32.mrb[7].mxu0  ;;  %13216 = vmatpush3.bf16.msra.mxu1 %v14649_v24  ;;  %v14667_v61 = vld [vmem:[%s19149_s1 + $0x9d0] sm:$0xff]  }
 0x126   : > { %v8984_v2 = vadd.f32 %v12893_v60, %v16356_v25  ;;  %v12896_v8 = vadd.f32 %v12895_v5, %v12894_v0  ;;  %v12917_v9 = vpop.f32.mrb[7].mxu1  ;;  %v14650_v25 = vld [vmem:[%s19149_s1 + $0x870] sm:$0xff]   ;;  %13217 = vmatprep.subr.bf16.mxu1 %v14651_v26  ;;  %v14687_v26 = vld [vmem:[%s19149_s1 + $0x9f8] sm:$0xff]  }
 0x127   : > { %v12918_v11 = vadd.f32 %v12917_v9, %v12916_v3  ;;  %13195 = vmatprep.subr.bf16.mxu0 %v14650_v25  ;;  %v14668_v0 = vld [vmem:[%s19149_s1 + $0x910] sm:$0xff]   ;;  %v14686_v25 = vld [vmem:[%s19149_s1 + $0x978] sm:$0xff]  }
 0x128   : > { %v16435_v7 = vadd.f32 %v12915_v63, %v8984_v2  ;;  %v8987_v13 = vadd.f32 %v12896_v8, %v16361_v27  ;;  %v14652_v27 = vld [vmem:[%s19149_s1 + $0x830] sm:$0xff]   ;;  %v14671_v8 = vld [vmem:[%s19149_s1 + $0x9d8] sm:$0xff]  }
 0x129   : > { %13196 = vmatpush3.bf16.msra.mxu0 %v14652_v27  ;;  %13218 = vmatpush3.bf16.msra.mxu1 %v14653_v28  ;;  %v14669_v2 = vld [vmem:[%s19149_s1 + $0x990] sm:$0xff]   ;;  %v14688_v27 = vld [vmem:[%s19149_s1 + $0x938] sm:$0xff]  }
 0x12a   : > { %v16450_v16 = vadd.f32 %v12918_v11, %v8987_v13  ;;  %13197 = vmatprep.subr.bf16.mxu0 %v14654_v29  ;;  %13219 = vmatprep.subr.bf16.mxu1 %v14655_v30  ;;  %v14673_v11 = vld [vmem:[%s19149_s1 + $0x998] sm:$0xff]   ;;  %v14674_v13 = vld [vmem:[%s19149_s1 + $0x960] sm:$0xff]   ;;  %v14684_v23 = vld [vmem:[%s19149_s1 + $0x930] sm:$0xff]  }
 0x12b   : > { %v14685_v24 = vld [vmem:[%s19149_s1 + $0x9b0] sm:$0xff]   ;;  %v14689_v28 = vld [vmem:[%s19149_s1 + $0x9b8] sm:$0xff]   ;;  %v321_v29 = vld [vmem:[%s15647_s23 + $0x128] sm:$0xff] }
 0x12c   : > { %v449_v30 = vld [vmem:[%s15647_s23 + $0x528] sm:$0xff] }
 0x12d   : > { %13198 = vmatpush3.bf16.msra.mxu0 %v14656_v31  ;;  %13220 = vmatpush3.bf16.msra.mxu1 %v14657_v32  ;;  %v577_v31 = vpack.c.bf16 %v449_v30, %v321_v29  ;;  %v323_v32 = vld [vmem:[%s15647_s23 + $0x138] sm:$0xff]  ;;  %v324_v30 = vld [vmem:[%s15647_s23 + $0x140] sm:$0xff] }
 0x12e   : > { %13227 = vmatprep.subr.bf16.mxu0 %v14658_v45  ;;  %13249 = vmatprep.subr.bf16.mxu1 %v14659_v46  ;;  %v579_v35 = vpack.c.bf16 %v451_v33, %v323_v32  ;;  %v14694_v45 = vld [vmem:[%s19149_s1 + $0xa48] sm:$0xff]   ;;  %v455_v29 = vld [vmem:[%s15647_s23 + $0x558] sm:$0xff] }
 0x130   : > { %9556 = vmatmul.mubr.bf16.vlgmr.msra.gmra.mrb[32].mxu0 %v572_v42  ;;  %9597 = vmatmul.mubr.bf16.vlgmr.msra.gmra.mrb[32].mxu1 %v574_v44  ;;  %v14691_v42 = vld [vmem:[%s19149_s1 + $0xac0] sm:$0xff]  }
 0x131   : > { %13228 = vmatpush3.bf16.msra.mxu0 %v14660_v47  ;;  %13250 = vmatpush3.bf16.msra.mxu1 %v14661_v48  ;;  %v14693_v44 = vld [vmem:[%s19149_s1 + $0xa80] sm:$0xff]   ;;  %v14695_v47 = vld [vmem:[%s19149_s1 + $0xac8] sm:$0xff]  }
 0x132   : > { %13229 = vmatprep.subr.bf16.mxu0 %v14662_v49  ;;  %13251 = vmatprep.subr.bf16.mxu1 %v14663_v51  ;;  %v14696_v49 = vld [vmem:[%s19149_s1 + $0xa08] sm:$0xff]  }
 0x133   : > { %9637 = vmatprep.mubr.bf16.mxu0 %v577_v31  ;;  %9678 = vmatprep.mubr.bf16.mxu1 %v579_v35  ;;  %v14697_v51 = vld [vmem:[%s19149_s1 + $0xa88] sm:$0xff]   ;;  %v452_v31 = vld [vmem:[%s15647_s23 + $0x540] sm:$0xff]  ;;  %v454_v35 = vld [vmem:[%s15647_s23 + $0x550] sm:$0xff] }
 0x134   : > { %v580_v33 = vpack.c.bf16 %v452_v31, %v324_v30  ;;  %v582_v36 = vpack.c.bf16 %v454_v35, %v326_v34  ;;  %v458_v31 = vld [vmem:[%s15647_s23 + $0x570] sm:$0xff]  ;;  %v14755_v34 = vld [vmem:[%s19149_s1 + $0xcc0] sm:$0xff]  }
 0x135   : > { %13230 = vmatpush3.bf16.msra.mxu0 %v14664_v53  ;;  %13252 = vmatpush3.bf16.msra.mxu1 %v14665_v55  ;;  %v14756_v35 = vld [vmem:[%s19149_s1 + $0xc00] sm:$0xff]  }
 0x136   : > { %13231 = vmatprep.subr.bf16.mxu0 %v14666_v58  ;;  %13253 = vmatprep.subr.bf16.mxu1 %v14667_v61 }
 0x139   : > { %13232 = vmatpush3.bf16.msra.mxu0 %v14668_v0  ;;  %13254 = vmatpush3.bf16.msra.mxu1 %v14669_v2  ;;  %v14702_v2 = vld [vmem:[%s19149_s1 + $0xa58] sm:$0xff]  }
 0x13a   : > { %13233 = vmatprep.subr.bf16.mxu0 %v14670_v6  ;;  %13255 = vmatprep.subr.bf16.mxu1 %v14671_v8  ;;  %v14704_v6 = vld [vmem:[%s19149_s1 + $0xa18] sm:$0xff]  }
 0x13d   : > { %13234 = vmatpush3.bf16.msra.mxu0 %v14672_v10  ;;  %13256 = vmatpush3.bf16.msra.mxu1 %v14673_v11  ;;  %v14707_v10 = vld [vmem:[%s19149_s1 + $0xae0] sm:$0xff]  }
 0x13e   : > { %13235 = vmatprep.subr.bf16.mxu0 %v14674_v13  ;;  %13257 = vmatprep.subr.bf16.mxu1 %v14675_v14  ;;  %v14708_v11 = vld [vmem:[%s19149_s1 + $0xa20] sm:$0xff]   ;;  %v14710_v13 = vld [vmem:[%s19149_s1 + $0xa68] sm:$0xff]  }
 0x13f   : > { %v14711_v14 = vld [vmem:[%s19149_s1 + $0xae8] sm:$0xff]  }
 0x141   : > { %13236 = vmatpush3.bf16.msra.mxu0 %v14676_v15  ;;  %v14712_v15 = vld [vmem:[%s19149_s1 + $0xa28] sm:$0xff]  }
 0x142   : > { %v12935_v50 = vpop.f32.mrb[8].mxu0  ;;  %13237 = vmatprep.subr.bf16.mxu0 %v14678_v17  ;;  %v14714_v17 = vld [vmem:[%s19149_s1 + $0xa70] sm:$0xff]  }
 0x143   : > { %v12957_v52 = vpop.f32.mrb[8].mxu1  ;;  %v12936_v54 = vpop.f32.mrb[9].mxu0 }
 0x144   : > { %v12937_v56 = vadd.f32 %v12936_v54, %v12935_v50  ;;  %v12958_v57 = vpop.f32.mrb[9].mxu1  ;;  %v12938_v60 = vpop.f32.mrb[10].mxu0  ;;  %v14698_v54 = vld [vmem:[%s19149_s1 + $0xa50] sm:$0xff]  }
 0x145   : > { %v12959_v59 = vadd.f32 %v12958_v57, %v12957_v52  ;;  %v12960_v63 = vpop.f32.mrb[10].mxu1  ;;  %v12939_v1 = vpop.f32.mrb[11].mxu0  ;;  %13238 = vmatpush3.bf16.msra.mxu0 %v14680_v19  ;;  %v14699_v57 = vld [vmem:[%s19149_s1 + $0xad0] sm:$0xff]  }
 0x146   : > { %v9066_v62 = vadd.f32 %v12937_v56, %v16435_v7  ;;  %v12940_v4 = vadd.f32 %v12939_v1, %v12938_v60  ;;  %v12961_v5 = vpop.f32.mrb[11].mxu1  ;;  %13239 = vmatprep.subr.bf16.mxu0 %v14682_v21  ;;  %v14700_v60 = vld [vmem:[%s19149_s1 + $0xa10] sm:$0xff]   ;;  %v14718_v21 = vld [vmem:[%s19149_s1 + $0xa78] sm:$0xff]  }
 0x147   : > { %v12962_v7 = vadd.f32 %v12961_v5, %v12960_v63  ;;  %v14716_v19 = vld [vmem:[%s19149_s1 + $0xa30] sm:$0xff]  }
 0x148   : > { %v16545_v3 = vadd.f32 %v12959_v59, %v9066_v62  ;;  %v9069_v9 = vadd.f32 %v12940_v4, %v16450_v16  ;;  %v14677_v16 = vld [vmem:[%s19149_s1 + $0x9a0] sm:$0xff]   ;;  %v14701_v62 = vld [vmem:[%s19149_s1 + $0xa90] sm:$0xff]   ;;  %v14703_v4 = vld [vmem:[%s19149_s1 + $0xad8] sm:$0xff]  }
 0x149   : > { %13258 = vmatpush3.bf16.msra.mxu1 %v14677_v16  ;;  %13240 = vmatpush3.bf16.msra.mxu0 %v14684_v23  ;;  %v14713_v16 = vld [vmem:[%s19149_s1 + $0xaa8] sm:$0xff]   ;;  %v14720_v23 = vld [vmem:[%s19149_s1 + $0xa38] sm:$0xff]  }
 0x14a   : > { %v16560_v12 = vadd.f32 %v12962_v7, %v9069_v9  ;;  %13259 = vmatprep.subr.bf16.mxu1 %v14679_v18  ;;  %13241 = vmatprep.subr.bf16.mxu0 %v14686_v25  ;;  %v14705_v7 = vld [vmem:[%s19149_s1 + $0xa98] sm:$0xff]   ;;  %v14706_v9 = vld [vmem:[%s19149_s1 + $0xa60] sm:$0xff]   ;;  %v14715_v18 = vld [vmem:[%s19149_s1 + $0xaf0] sm:$0xff]  }
 0x14b   : > { %v325_v25 = vld [vmem:[%s15647_s23 + $0x148] sm:$0xff] }
 0x14d   : > { %13260 = vmatpush3.bf16.msra.mxu1 %v14681_v20  ;;  %13242 = vmatpush3.bf16.msra.mxu0 %v14688_v27  ;;  %v14717_v20 = vld [vmem:[%s19149_s1 + $0xab0] sm:$0xff]   ;;  %v327_v27 = vld [vmem:[%s15647_s23 + $0x158] sm:$0xff] }
 0x14e   : > { %13261 = vmatprep.subr.bf16.mxu1 %v14683_v22  ;;  %13271 = vmatprep.subr.bf16.mxu0 %v14690_v41  ;;  %v14719_v22 = vld [vmem:[%s19149_s1 + $0xaf8] sm:$0xff]   ;;  %v583_v32 = vpack.c.bf16 %v455_v29, %v327_v27  ;;  %v14726_v41 = vld [vmem:[%s19149_s1 + $0xb48] sm:$0xff]   ;;  %v328_v27 = vld [vmem:[%s15647_s23 + $0x160] sm:$0xff] }
 0x14f   : > { %v330_v29 = vld [vmem:[%s15647_s23 + $0x170] sm:$0xff] }
 0x150   : > { %9638 = vmatmul.mubr.bf16.vlgmr.msra.gmra.mrb[36].mxu0 %v576_v39  ;;  %v14724_v39 = vld [vmem:[%s19149_s1 + $0xb00] sm:$0xff]  }
 0x151   : > { %13262 = vmatpush3.bf16.msra.mxu1 %v14685_v24  ;;  %13272 = vmatpush3.bf16.msra.mxu0 %v14692_v43  ;;  %v14721_v24 = vld [vmem:[%s19149_s1 + $0xab8] sm:$0xff]   ;;  %v14727_v43 = vld [vmem:[%s19149_s1 + $0xbc8] sm:$0xff]  }
 0x152   : > { %13263 = vmatprep.subr.bf16.mxu1 %v14687_v26  ;;  %13273 = vmatprep.subr.bf16.mxu0 %v14694_v45  ;;  %v453_v26 = vld [vmem:[%s15647_s23 + $0x548] sm:$0xff] }
 0x153   : > { %v14728_v45 = vld [vmem:[%s19149_s1 + $0xb08] sm:$0xff]  }
 0x155   : > { %13264 = vmatpush3.bf16.msra.mxu1 %v14689_v28  ;;  %13274 = vmatpush3.bf16.msra.mxu0 %v14696_v49  ;;  %v581_v28 = vpack.c.bf16 %v453_v26, %v325_v25 }
 0x156   : > { %13293 = vmatprep.subr.bf16.mxu1 %v14691_v42  ;;  %13275 = vmatprep.subr.bf16.mxu0 %v14698_v54 }
 0x157   : > { %9719 = vmatprep.mubr.bf16.mxu0 %v581_v28  ;;  %v456_v28 = vld [vmem:[%s15647_s23 + $0x560] sm:$0xff] }
 0x158   : > { %9679 = vmatmul.mubr.bf16.vlgmr.msra.gmra.mrb[36].mxu1 %v578_v40  ;;  %v14725_v40 = vld [vmem:[%s19149_s1 + $0xb80] sm:$0xff]   ;;  %v584_v30 = vpack.c.bf16 %v456_v28, %v328_v27 }
 0x159   : > { %13294 = vmatpush3.bf16.msra.mxu1 %v14693_v44  ;;  %13276 = vmatpush3.bf16.msra.mxu0 %v14700_v60 }
 0x15a   : > { %13295 = vmatprep.subr.bf16.mxu1 %v14695_v47  ;;  %13277 = vmatprep.subr.bf16.mxu0 %v14702_v2  ;;  %v14729_v47 = vld [vmem:[%s19149_s1 + $0xb88] sm:$0xff]   ;;  %v14736_v2 = vld [vmem:[%s19149_s1 + $0xb18] sm:$0xff]  }
 0x15b   : > { %9760 = vmatprep.mubr.bf16.mxu1 %v583_v32  ;;  %v586_v32 = vpack.c.bf16 %v458_v31, %v330_v29  ;;  %v14786_v29 = vld [vmem:[%s19149_s1 + $0xd40] sm:$0xff]  }
 0x15c   : > { %v14788_v31 = vld [vmem:[%s19149_s1 + $0xd00] sm:$0xff]  }
 0x15d   : > { %13296 = vmatpush3.bf16.msra.mxu1 %v14697_v51  ;;  %13278 = vmatpush3.bf16.msra.mxu0 %v14704_v6  ;;  %v14739_v6 = vld [vmem:[%s19149_s1 + $0xbe0] sm:$0xff]  }
 0x15e   : > { %13297 = vmatprep.subr.bf16.mxu1 %v14699_v57  ;;  %13279 = vmatprep.subr.bf16.mxu0 %v14706_v9  ;;  %v14742_v9 = vld [vmem:[%s19149_s1 + $0xb68] sm:$0xff]  }
 0x161   : > { %13298 = vmatpush3.bf16.msra.mxu1 %v14701_v62  ;;  %13280 = vmatpush3.bf16.msra.mxu0 %v14708_v11  ;;  %v14734_v62 = vld [vmem:[%s19149_s1 + $0xb58] sm:$0xff]   ;;  %v14744_v11 = vld [vmem:[%s19149_s1 + $0xb28] sm:$0xff]  }
 0x162   : > { %v12979_v46 = vpop.f32.mrb[12].mxu0  ;;  %13299 = vmatprep.subr.bf16.mxu1 %v14703_v4  ;;  %13281 = vmatprep.subr.bf16.mxu0 %v14710_v13  ;;  %v14746_v13 = vld [vmem:[%s19149_s1 + $0xb70] sm:$0xff]  }
 0x163   : > { %v13001_v48 = vpop.f32.mrb[12].mxu1  ;;  %v12980_v50 = vpop.f32.mrb[13].mxu0 }
 0x164   : > { %v12981_v52 = vadd.f32 %v12980_v50, %v12979_v46  ;;  %v13002_v53 = vpop.f32.mrb[13].mxu1  ;;  %v12982_v56 = vpop.f32.mrb[14].mxu0  ;;  %v14730_v50 = vld [vmem:[%s19149_s1 + $0xb50] sm:$0xff]  }
 0x165   : > { %v13003_v55 = vadd.f32 %v13002_v53, %v13001_v48  ;;  %v13004_v59 = vpop.f32.mrb[14].mxu1  ;;  %v12983_v61 = vpop.f32.mrb[15].mxu0  ;;  %13300 = vmatpush3.bf16.msra.mxu1 %v14705_v7  ;;  %13282 = vmatpush3.bf16.msra.mxu0 %v14712_v15  ;;  %v14731_v53 = vld [vmem:[%s19149_s1 + $0xbd0] sm:$0xff]   ;;  %v14740_v7 = vld [vmem:[%s19149_s1 + $0xb20] sm:$0xff]  }
 0x166   : > { %v9148_v58 = vadd.f32 %v12981_v52, %v16545_v3  ;;  %v12984_v0 = vadd.f32 %v12983_v61, %v12982_v56  ;;  %v13005_v1 = vpop.f32.mrb[15].mxu1  ;;  %13301 = vmatprep.subr.bf16.mxu1 %v14707_v10  ;;  %13283 = vmatprep.subr.bf16.mxu0 %v14714_v17  ;;  %v14732_v56 = vld [vmem:[%s19149_s1 + $0xb10] sm:$0xff]   ;;  %v14743_v10 = vld [vmem:[%s19149_s1 + $0xbe8] sm:$0xff]   ;;  %v14750_v17 = vld [vmem:[%s19149_s1 + $0xb78] sm:$0xff]  }
 0x167   : > { %v13006_v3 = vadd.f32 %v13005_v1, %v13004_v59  ;;  %v14748_v15 = vld [vmem:[%s19149_s1 + $0xb30] sm:$0xff]  }
 0x168   : > { %v16655_v63 = vadd.f32 %v13003_v55, %v9148_v58  ;;  %v9151_v5 = vadd.f32 %v12984_v0, %v16560_v12  ;;  %v14709_v12 = vld [vmem:[%s19149_s1 + $0xaa0] sm:$0xff]   ;;  %v14733_v58 = vld [vmem:[%s19149_s1 + $0xb90] sm:$0xff]   ;;  %v14735_v0 = vld [vmem:[%s19149_s1 + $0xbd8] sm:$0xff]  }
 0x169   : > { %13302 = vmatpush3.bf16.msra.mxu1 %v14709_v12  ;;  %13284 = vmatpush3.bf16.msra.mxu0 %v14716_v19  ;;  %v14745_v12 = vld [vmem:[%s19149_s1 + $0xba8] sm:$0xff]   ;;  %v14752_v19 = vld [vmem:[%s19149_s1 + $0xb38] sm:$0xff]  }
 0x16a   : > { %v16670_v8 = vadd.f32 %v13006_v3, %v9151_v5  ;;  %13303 = vmatprep.subr.bf16.mxu1 %v14711_v14  ;;  %13285 = vmatprep.subr.bf16.mxu0 %v14718_v21  ;;  %v14737_v3 = vld [vmem:[%s19149_s1 + $0xb98] sm:$0xff]   ;;  %v14738_v5 = vld [vmem:[%s19149_s1 + $0xb60] sm:$0xff]   ;;  %v14747_v14 = vld [vmem:[%s19149_s1 + $0xbf0] sm:$0xff]  }
 0x16b   : > { %v329_v21 = vld [vmem:[%s15647_s23 + $0x168] sm:$0xff] }
 0x16d   : > { %13304 = vmatpush3.bf16.msra.mxu1 %v14713_v16  ;;  %13286 = vmatpush3.bf16.msra.mxu0 %v14720_v23  ;;  %v14749_v16 = vld [vmem:[%s19149_s1 + $0xbb0] sm:$0xff]   ;;  %v331_v23 = vld [vmem:[%s15647_s23 + $0x178] sm:$0xff] }
 0x16e   : > { %13305 = vmatprep.subr.bf16.mxu1 %v14715_v18  ;;  %13315 = vmatprep.subr.bf16.mxu0 %v14722_v37  ;;  %v14751_v18 = vld [vmem:[%s19149_s1 + $0xbf8] sm:$0xff]   ;;  %v14758_v37 = vld [vmem:[%s19149_s1 + $0xc48] sm:$0xff]  }
 0x170   : > { %9720 = vmatmul.mubr.bf16.vlgmr.msra.gmra.mrb[40].mxu0 %v580_v33  ;;  %v14754_v33 = vld [vmem:[%s19149_s1 + $0xc40] sm:$0xff]  }
 0x171   : > { %13306 = vmatpush3.bf16.msra.mxu1 %v14717_v20  ;;  %13316 = vmatpush3.bf16.msra.mxu0 %v14724_v39  ;;  %v14753_v20 = vld [vmem:[%s19149_s1 + $0xbb8] sm:$0xff]   ;;  %v14759_v39 = vld [vmem:[%s19149_s1 + $0xcc8] sm:$0xff]  }
 0x172   : > { %13307 = vmatprep.subr.bf16.mxu1 %v14719_v22  ;;  %13317 = vmatprep.subr.bf16.mxu0 %v14726_v41  ;;  %v457_v22 = vld [vmem:[%s15647_s23 + $0x568] sm:$0xff] }
 0x173   : > { %v585_v25 = vpack.c.bf16 %v457_v22, %v329_v21  ;;  %v14760_v41 = vld [vmem:[%s19149_s1 + $0xc08] sm:$0xff]   ;;  %v463_v21 = vld [vmem:[%s15647_s23 + $0x598] sm:$0xff]  ;;  %v332_v22 = vld [vmem:[%s15647_s23 + $0x180] sm:$0xff] }
 0x175   : > { %13308 = vmatpush3.bf16.msra.mxu1 %v14721_v24  ;;  %13318 = vmatpush3.bf16.msra.mxu0 %v14728_v45  ;;  %v459_v24 = vld [vmem:[%s15647_s23 + $0x578] sm:$0xff] }
 0x176   : > { %13337 = vmatprep.subr.bf16.mxu1 %v14723_v38  ;;  %13319 = vmatprep.subr.bf16.mxu0 %v14730_v50  ;;  %v587_v26 = vpack.c.bf16 %v459_v24, %v331_v23  ;;  %v460_v24 = vld [vmem:[%s15647_s23 + $0x580] sm:$0xff] }
 0x177   : > { %9801 = vmatprep.mubr.bf16.mxu0 %v585_v25  ;;  %v334_v25 = vld [vmem:[%s15647_s23 + $0x190] sm:$0xff]  ;;  %v588_v27 = vpack.c.bf16 %v460_v24, %v332_v22 }
 0x178   : > { %9761 = vmatmul.mubr.bf16.vlgmr.msra.gmra.mrb[40].mxu1 %v582_v36  ;;  %v14757_v36 = vld [vmem:[%s19149_s1 + $0xc80] sm:$0xff]   ;;  %v338_v22 = vld [vmem:[%s15647_s23 + $0x1b0] sm:$0xff] }
 0x179   : > { %13338 = vmatpush3.bf16.msra.mxu1 %v14725_v40  ;;  %13320 = vmatpush3.bf16.msra.mxu0 %v14732_v56 }
 0x17a   : > { %13339 = vmatprep.subr.bf16.mxu1 %v14727_v43  ;;  %13321 = vmatprep.subr.bf16.mxu0 %v14734_v62  ;;  %v14761_v43 = vld [vmem:[%s19149_s1 + $0xc88] sm:$0xff]   ;;  %v14768_v62 = vld [vmem:[%s19149_s1 + $0xc18] sm:$0xff]  }
 0x17b   : > { %9842 = vmatprep.mubr.bf16.mxu1 %v587_v26  ;;  %v462_v26 = vld [vmem:[%s15647_s23 + $0x590] sm:$0xff] }
 0x17c   : > { %v590_v28 = vpack.c.bf16 %v462_v26, %v334_v25  ;;  %v14818_v25 = vld [vmem:[%s19149_s1 + $0xe40] sm:$0xff]  }
 0x17d   : > { %13340 = vmatpush3.bf16.msra.mxu1 %v14729_v47  ;;  %13322 = vmatpush3.bf16.msra.mxu0 %v14736_v2  ;;  %v14771_v2 = vld [vmem:[%s19149_s1 + $0xce0] sm:$0xff]  }
 0x17e   : > { %13341 = vmatprep.subr.bf16.mxu1 %v14731_v53  ;;  %13323 = vmatprep.subr.bf16.mxu0 %v14738_v5  ;;  %v14774_v5 = vld [vmem:[%s19149_s1 + $0xc68] sm:$0xff]   ;;  %v14819_v26 = vld [vmem:[%s19149_s1 + $0xec0] sm:$0xff]  }
 0x181   : > { %13342 = vmatpush3.bf16.msra.mxu1 %v14733_v58  ;;  %13324 = vmatpush3.bf16.msra.mxu0 %v14740_v7  ;;  %v14766_v58 = vld [vmem:[%s19149_s1 + $0xc58] sm:$0xff]   ;;  %v14776_v7 = vld [vmem:[%s19149_s1 + $0xc28] sm:$0xff]  }
 0x182   : > { %v13023_v42 = vpop.f32.mrb[16].mxu0  ;;  %13343 = vmatprep.subr.bf16.mxu1 %v14735_v0  ;;  %13325 = vmatprep.subr.bf16.mxu0 %v14742_v9  ;;  %v14778_v9 = vld [vmem:[%s19149_s1 + $0xc70] sm:$0xff]  }
 0x183   : > { %v13045_v44 = vpop.f32.mrb[16].mxu1  ;;  %v13024_v46 = vpop.f32.mrb[17].mxu0 }
 0x184   : > { %v13025_v48 = vadd.f32 %v13024_v46, %v13023_v42  ;;  %v13046_v49 = vpop.f32.mrb[17].mxu1  ;;  %v13026_v52 = vpop.f32.mrb[18].mxu0  ;;  %v14762_v46 = vld [vmem:[%s19149_s1 + $0xc50] sm:$0xff]  }
 0x185   : > { %v13047_v51 = vadd.f32 %v13046_v49, %v13045_v44  ;;  %v13048_v55 = vpop.f32.mrb[18].mxu1  ;;  %v13027_v57 = vpop.f32.mrb[19].mxu0  ;;  %13344 = vmatpush3.bf16.msra.mxu1 %v14737_v3  ;;  %13326 = vmatpush3.bf16.msra.mxu0 %v14744_v11  ;;  %v14763_v49 = vld [vmem:[%s19149_s1 + $0xcd0] sm:$0xff]   ;;  %v14772_v3 = vld [vmem:[%s19149_s1 + $0xc20] sm:$0xff]  }
 0x186   : > { %v9230_v54 = vadd.f32 %v13025_v48, %v16655_v63  ;;  %v13028_v60 = vadd.f32 %v13027_v57, %v13026_v52  ;;  %v13049_v61 = vpop.f32.mrb[19].mxu1  ;;  %13345 = vmatprep.subr.bf16.mxu1 %v14739_v6  ;;  %13327 = vmatprep.subr.bf16.mxu0 %v14746_v13  ;;  %v14764_v52 = vld [vmem:[%s19149_s1 + $0xc10] sm:$0xff]   ;;  %v14775_v6 = vld [vmem:[%s19149_s1 + $0xce8] sm:$0xff]   ;;  %v14782_v13 = vld [vmem:[%s19149_s1 + $0xc78] sm:$0xff]  }
 0x187   : > { %v13050_v63 = vadd.f32 %v13049_v61, %v13048_v55  ;;  %v14780_v11 = vld [vmem:[%s19149_s1 + $0xc30] sm:$0xff]  }
 0x188   : > { %v16765_v59 = vadd.f32 %v13047_v51, %v9230_v54  ;;  %v9233_v1 = vadd.f32 %v13028_v60, %v16670_v8  ;;  %v14741_v8 = vld [vmem:[%s19149_s1 + $0xba0] sm:$0xff]   ;;  %v14765_v54 = vld [vmem:[%s19149_s1 + $0xc90] sm:$0xff]   ;;  %v14767_v60 = vld [vmem:[%s19149_s1 + $0xcd8] sm:$0xff]  }
 0x189   : > { %13346 = vmatpush3.bf16.msra.mxu1 %v14741_v8  ;;  %13328 = vmatpush3.bf16.msra.mxu0 %v14748_v15  ;;  %v14777_v8 = vld [vmem:[%s19149_s1 + $0xca8] sm:$0xff]   ;;  %v14784_v15 = vld [vmem:[%s19149_s1 + $0xc38] sm:$0xff]  }
 0x18a   : > { %v16780_v4 = vadd.f32 %v13050_v63, %v9233_v1  ;;  %13347 = vmatprep.subr.bf16.mxu1 %v14743_v10  ;;  %13329 = vmatprep.subr.bf16.mxu0 %v14750_v17  ;;  %v14769_v63 = vld [vmem:[%s19149_s1 + $0xc98] sm:$0xff]   ;;  %v14770_v1 = vld [vmem:[%s19149_s1 + $0xc60] sm:$0xff]   ;;  %v14779_v10 = vld [vmem:[%s19149_s1 + $0xcf0] sm:$0xff]  }
 0x18b   : > { %v333_v17 = vld [vmem:[%s15647_s23 + $0x188] sm:$0xff] }
 0x18d   : > { %13348 = vmatpush3.bf16.msra.mxu1 %v14745_v12  ;;  %13330 = vmatpush3.bf16.msra.mxu0 %v14752_v19  ;;  %v14781_v12 = vld [vmem:[%s19149_s1 + $0xcb0] sm:$0xff]  }
 0x18e   : > { %13349 = vmatprep.subr.bf16.mxu1 %v14747_v14  ;;  %13359 = vmatprep.subr.bf16.mxu0 %v14754_v33  ;;  %v14783_v14 = vld [vmem:[%s19149_s1 + $0xcf8] sm:$0xff]   ;;  %v14790_v33 = vld [vmem:[%s19149_s1 + $0xd48] sm:$0xff]  }
 0x190   : > { %9802 = vmatmul.mubr.bf16.vlgmr.msra.gmra.mrb[44].mxu0 %v584_v30  ;;  %v14787_v30 = vld [vmem:[%s19149_s1 + $0xdc0] sm:$0xff]  }
 0x191   : > { %13350 = vmatpush3.bf16.msra.mxu1 %v14749_v16  ;;  %13360 = vmatpush3.bf16.msra.mxu0 %v14756_v35  ;;  %v14785_v16 = vld [vmem:[%s19149_s1 + $0xcb8] sm:$0xff]   ;;  %v14791_v35 = vld [vmem:[%s19149_s1 + $0xdc8] sm:$0xff]  }
 0x192   : > { %13351 = vmatprep.subr.bf16.mxu1 %v14751_v18  ;;  %13361 = vmatprep.subr.bf16.mxu0 %v14758_v37  ;;  %v461_v18 = vld [vmem:[%s15647_s23 + $0x588] sm:$0xff] }
 0x193   : > { %v589_v19 = vpack.c.bf16 %v461_v18, %v333_v17  ;;  %v14792_v37 = vld [vmem:[%s19149_s1 + $0xd08] sm:$0xff]   ;;  %v467_v17 = vld [vmem:[%s15647_s23 + $0x5b8] sm:$0xff]  ;;  %v336_v18 = vld [vmem:[%s15647_s23 + $0x1a0] sm:$0xff] }
 0x195   : > { %13352 = vmatpush3.bf16.msra.mxu1 %v14753_v20  ;;  %13362 = vmatpush3.bf16.msra.mxu0 %v14760_v41  ;;  %v335_v20 = vld [vmem:[%s15647_s23 + $0x198] sm:$0xff] }
 0x196   : > { %13381 = vmatprep.subr.bf16.mxu1 %v14755_v34  ;;  %13363 = vmatprep.subr.bf16.mxu0 %v14762_v46  ;;  %v591_v23 = vpack.c.bf16 %v463_v21, %v335_v20 }
 0x197   : > { %9883 = vmatprep.mubr.bf16.mxu0 %v589_v19  ;;  %v464_v19 = vld [vmem:[%s15647_s23 + $0x5a0] sm:$0xff] }
 0x198   : > { %9843 = vmatmul.mubr.bf16.vlgmr.msra.gmra.mrb[44].mxu1 %v586_v32  ;;  %v14789_v32 = vld [vmem:[%s19149_s1 + $0xd80] sm:$0xff]   ;;  %v592_v21 = vpack.c.bf16 %v464_v19, %v336_v18  ;;  %v470_v19 = vld [vmem:[%s15647_s23 + $0x5d0] sm:$0xff] }
 0x199   : > { %13382 = vmatpush3.bf16.msra.mxu1 %v14757_v36  ;;  %13364 = vmatpush3.bf16.msra.mxu0 %v14764_v52 }
 0x19a   : > { %13383 = vmatprep.subr.bf16.mxu1 %v14759_v39  ;;  %13365 = vmatprep.subr.bf16.mxu0 %v14766_v58  ;;  %v14793_v39 = vld [vmem:[%s19149_s1 + $0xd88] sm:$0xff]   ;;  %v14800_v58 = vld [vmem:[%s19149_s1 + $0xd18] sm:$0xff]  }
 0x19b   : > { %9924 = vmatprep.mubr.bf16.mxu1 %v591_v23  ;;  %v466_v23 = vld [vmem:[%s15647_s23 + $0x5b0] sm:$0xff] }
 0x19c   : > { %v594_v24 = vpack.c.bf16 %v466_v23, %v338_v22  ;;  %v14851_v22 = vld [vmem:[%s19149_s1 + $0xfc0] sm:$0xff]  }
 0x19d   : > { %13384 = vmatpush3.bf16.msra.mxu1 %v14761_v43  ;;  %13366 = vmatpush3.bf16.msra.mxu0 %v14768_v62  ;;  %v14803_v62 = vld [vmem:[%s19149_s1 + $0xde0] sm:$0xff]  }
 0x19e   : > { %13385 = vmatprep.subr.bf16.mxu1 %v14763_v49  ;;  %13367 = vmatprep.subr.bf16.mxu0 %v14770_v1  ;;  %v14806_v1 = vld [vmem:[%s19149_s1 + $0xd68] sm:$0xff]   ;;  %v14852_v23 = vld [vmem:[%s19149_s1 + $0xf00] sm:$0xff]  }
 0x1a1   : > { %13386 = vmatpush3.bf16.msra.mxu1 %v14765_v54  ;;  %13368 = vmatpush3.bf16.msra.mxu0 %v14772_v3  ;;  %v14798_v54 = vld [vmem:[%s19149_s1 + $0xd58] sm:$0xff]   ;;  %v14808_v3 = vld [vmem:[%s19149_s1 + $0xd28] sm:$0xff]  }
 0x1a2   : > { %v13067_v38 = vpop.f32.mrb[20].mxu0  ;;  %13387 = vmatprep.subr.bf16.mxu1 %v14767_v60  ;;  %13369 = vmatprep.subr.bf16.mxu0 %v14774_v5  ;;  %v14810_v5 = vld [vmem:[%s19149_s1 + $0xd70] sm:$0xff]  }
 0x1a3   : > { %v13089_v40 = vpop.f32.mrb[20].mxu1  ;;  %v13068_v42 = vpop.f32.mrb[21].mxu0 }
 0x1a4   : > { %v13069_v44 = vadd.f32 %v13068_v42, %v13067_v38  ;;  %v13090_v45 = vpop.f32.mrb[21].mxu1  ;;  %v13070_v48 = vpop.f32.mrb[22].mxu0  ;;  %v14794_v42 = vld [vmem:[%s19149_s1 + $0xd50] sm:$0xff]  }
 0x1a5   : > { %v13091_v47 = vadd.f32 %v13090_v45, %v13089_v40  ;;  %v13092_v51 = vpop.f32.mrb[22].mxu1  ;;  %v13071_v53 = vpop.f32.mrb[23].mxu0  ;;  %13388 = vmatpush3.bf16.msra.mxu1 %v14769_v63  ;;  %13370 = vmatpush3.bf16.msra.mxu0 %v14776_v7  ;;  %v14795_v45 = vld [vmem:[%s19149_s1 + $0xdd0] sm:$0xff]   ;;  %v14804_v63 = vld [vmem:[%s19149_s1 + $0xd20] sm:$0xff]  }
 0x1a6   : > { %v9312_v50 = vadd.f32 %v13069_v44, %v16765_v59  ;;  %v13072_v56 = vadd.f32 %v13071_v53, %v13070_v48  ;;  %v13093_v57 = vpop.f32.mrb[23].mxu1  ;;  %13389 = vmatprep.subr.bf16.mxu1 %v14771_v2  ;;  %13371 = vmatprep.subr.bf16.mxu0 %v14778_v9  ;;  %v14796_v48 = vld [vmem:[%s19149_s1 + $0xd10] sm:$0xff]   ;;  %v14807_v2 = vld [vmem:[%s19149_s1 + $0xde8] sm:$0xff]   ;;  %v14814_v9 = vld [vmem:[%s19149_s1 + $0xd78] sm:$0xff]  }
 0x1a7   : > { %v13094_v59 = vadd.f32 %v13093_v57, %v13092_v51  ;;  %v14812_v7 = vld [vmem:[%s19149_s1 + $0xd30] sm:$0xff]  }
 0x1a8   : > { %v16875_v55 = vadd.f32 %v13091_v47, %v9312_v50  ;;  %v9315_v61 = vadd.f32 %v13072_v56, %v16780_v4  ;;  %v14773_v4 = vld [vmem:[%s19149_s1 + $0xca0] sm:$0xff]   ;;  %v14797_v50 = vld [vmem:[%s19149_s1 + $0xd90] sm:$0xff]   ;;  %v14799_v56 = vld [vmem:[%s19149_s1 + $0xdd8] sm:$0xff]  }
 0x1a9   : > { %13390 = vmatpush3.bf16.msra.mxu1 %v14773_v4  ;;  %13372 = vmatpush3.bf16.msra.mxu0 %v14780_v11  ;;  %v14809_v4 = vld [vmem:[%s19149_s1 + $0xda8] sm:$0xff]   ;;  %v14816_v11 = vld [vmem:[%s19149_s1 + $0xd38] sm:$0xff]  }
 0x1aa   : > { %v16890_v0 = vadd.f32 %v13094_v59, %v9315_v61  ;;  %13391 = vmatprep.subr.bf16.mxu1 %v14775_v6  ;;  %13373 = vmatprep.subr.bf16.mxu0 %v14782_v13  ;;  %v14801_v59 = vld [vmem:[%s19149_s1 + $0xd98] sm:$0xff]   ;;  %v14802_v61 = vld [vmem:[%s19149_s1 + $0xd60] sm:$0xff]   ;;  %v14811_v6 = vld [vmem:[%s19149_s1 + $0xdf0] sm:$0xff]  }
 0x1ab   : > { %v337_v13 = vld [vmem:[%s15647_s23 + $0x1a8] sm:$0xff] }
 0x1ad   : > { %13392 = vmatpush3.bf16.msra.mxu1 %v14777_v8  ;;  %13374 = vmatpush3.bf16.msra.mxu0 %v14784_v15  ;;  %v14813_v8 = vld [vmem:[%s19149_s1 + $0xdb0] sm:$0xff]   ;;  %v339_v15 = vld [vmem:[%s15647_s23 + $0x1b8] sm:$0xff] }
 0x1ae   : > { %13393 = vmatprep.subr.bf16.mxu1 %v14779_v10  ;;  %13403 = vmatprep.subr.bf16.mxu0 %v14786_v29  ;;  %v14815_v10 = vld [vmem:[%s19149_s1 + $0xdf8] sm:$0xff]   ;;  %v595_v20 = vpack.c.bf16 %v467_v17, %v339_v15  ;;  %v14822_v29 = vld [vmem:[%s19149_s1 + $0xe48] sm:$0xff]   ;;  %v340_v15 = vld [vmem:[%s15647_s23 + $0x1c0] sm:$0xff] }
 0x1af   : > { %v342_v17 = vld [vmem:[%s15647_s23 + $0x1d0] sm:$0xff] }
 0x1b0   : > { %9884 = vmatmul.mubr.bf16.vlgmr.msra.gmra.mrb[48].mxu0 %v588_v27  ;;  %v14820_v27 = vld [vmem:[%s19149_s1 + $0xe00] sm:$0xff]  }
 0x1b1   : > { %13394 = vmatpush3.bf16.msra.mxu1 %v14781_v12  ;;  %13404 = vmatpush3.bf16.msra.mxu0 %v14788_v31  ;;  %v14817_v12 = vld [vmem:[%s19149_s1 + $0xdb8] sm:$0xff]   ;;  %v14823_v31 = vld [vmem:[%s19149_s1 + $0xec8] sm:$0xff]  }
 0x1b2   : > { %13395 = vmatprep.subr.bf16.mxu1 %v14783_v14  ;;  %13405 = vmatprep.subr.bf16.mxu0 %v14790_v33  ;;  %v465_v14 = vld [vmem:[%s15647_s23 + $0x5a8] sm:$0xff] }
 0x1b3   : > { %v14824_v33 = vld [vmem:[%s19149_s1 + $0xe08] sm:$0xff]  }
 0x1b5   : > { %13396 = vmatpush3.bf16.msra.mxu1 %v14785_v16  ;;  %13406 = vmatpush3.bf16.msra.mxu0 %v14792_v37  ;;  %v593_v16 = vpack.c.bf16 %v465_v14, %v337_v13 }
 0x1b6   : > { %13425 = vmatprep.subr.bf16.mxu1 %v14787_v30  ;;  %13407 = vmatprep.subr.bf16.mxu0 %v14794_v42 }
 0x1b7   : > { %9965 = vmatprep.mubr.bf16.mxu0 %v593_v16  ;;  %v468_v16 = vld [vmem:[%s15647_s23 + $0x5c0] sm:$0xff] }
 0x1b8   : > { %9925 = vmatmul.mubr.bf16.vlgmr.msra.gmra.mrb[48].mxu1 %v590_v28  ;;  %v14821_v28 = vld [vmem:[%s19149_s1 + $0xe80] sm:$0xff]   ;;  %v596_v18 = vpack.c.bf16 %v468_v16, %v340_v15 }
 0x1b9   : > { %13426 = vmatpush3.bf16.msra.mxu1 %v14789_v32  ;;  %13408 = vmatpush3.bf16.msra.mxu0 %v14796_v48 }
 0x1ba   : > { %13427 = vmatprep.subr.bf16.mxu1 %v14791_v35  ;;  %13409 = vmatprep.subr.bf16.mxu0 %v14798_v54  ;;  %v14825_v35 = vld [vmem:[%s19149_s1 + $0xe88] sm:$0xff]   ;;  %v14832_v54 = vld [vmem:[%s19149_s1 + $0xe18] sm:$0xff]  }
 0x1bb   : > { %10006 = vmatprep.mubr.bf16.mxu1 %v595_v20  ;;  %v598_v20 = vpack.c.bf16 %v470_v19, %v342_v17  ;;  %v14882_v17 = vld [vmem:[%s19149_s1 + $0x1040] sm:$0xff]  }
 0x1bc   : > { %v14884_v19 = vld [vmem:[%s19149_s1 + $0x1000] sm:$0xff]  }
 0x1bd   : > { %13428 = vmatpush3.bf16.msra.mxu1 %v14793_v39  ;;  %13410 = vmatpush3.bf16.msra.mxu0 %v14800_v58  ;;  %v14835_v58 = vld [vmem:[%s19149_s1 + $0xee0] sm:$0xff]  }
 0x1be   : > { %13429 = vmatprep.subr.bf16.mxu1 %v14795_v45  ;;  %13411 = vmatprep.subr.bf16.mxu0 %v14802_v61  ;;  %v14838_v61 = vld [vmem:[%s19149_s1 + $0xe68] sm:$0xff]  }
 0x1c1   : > { %13430 = vmatpush3.bf16.msra.mxu1 %v14797_v50  ;;  %13412 = vmatpush3.bf16.msra.mxu0 %v14804_v63  ;;  %v14830_v50 = vld [vmem:[%s19149_s1 + $0xe58] sm:$0xff]   ;;  %v14840_v63 = vld [vmem:[%s19149_s1 + $0xe28] sm:$0xff]  }
 0x1c2   : > { %v13111_v34 = vpop.f32.mrb[24].mxu0  ;;  %13431 = vmatprep.subr.bf16.mxu1 %v14799_v56  ;;  %13413 = vmatprep.subr.bf16.mxu0 %v14806_v1  ;;  %v14842_v1 = vld [vmem:[%s19149_s1 + $0xe70] sm:$0xff]  }
 0x1c3   : > { %v13133_v36 = vpop.f32.mrb[24].mxu1  ;;  %v13112_v38 = vpop.f32.mrb[25].mxu0 }
 0x1c4   : > { %v13113_v40 = vadd.f32 %v13112_v38, %v13111_v34  ;;  %v13134_v41 = vpop.f32.mrb[25].mxu1  ;;  %v13114_v44 = vpop.f32.mrb[26].mxu0  ;;  %v14826_v38 = vld [vmem:[%s19149_s1 + $0xe50] sm:$0xff]  }
 0x1c5   : > { %v13135_v43 = vadd.f32 %v13134_v41, %v13133_v36  ;;  %v13136_v47 = vpop.f32.mrb[26].mxu1  ;;  %v13115_v49 = vpop.f32.mrb[27].mxu0  ;;  %13432 = vmatpush3.bf16.msra.mxu1 %v14801_v59  ;;  %13414 = vmatpush3.bf16.msra.mxu0 %v14808_v3  ;;  %v14827_v41 = vld [vmem:[%s19149_s1 + $0xed0] sm:$0xff]   ;;  %v14836_v59 = vld [vmem:[%s19149_s1 + $0xe20] sm:$0xff]  }
 0x1c6   : > { %v9394_v46 = vadd.f32 %v13113_v40, %v16875_v55  ;;  %v13116_v52 = vadd.f32 %v13115_v49, %v13114_v44  ;;  %v13137_v53 = vpop.f32.mrb[27].mxu1  ;;  %13433 = vmatprep.subr.bf16.mxu1 %v14803_v62  ;;  %13415 = vmatprep.subr.bf16.mxu0 %v14810_v5  ;;  %v14828_v44 = vld [vmem:[%s19149_s1 + $0xe10] sm:$0xff]   ;;  %v14839_v62 = vld [vmem:[%s19149_s1 + $0xee8] sm:$0xff]   ;;  %v14846_v5 = vld [vmem:[%s19149_s1 + $0xe78] sm:$0xff]  }
 0x1c7   : > { %v13138_v55 = vadd.f32 %v13137_v53, %v13136_v47  ;;  %v14844_v3 = vld [vmem:[%s19149_s1 + $0xe30] sm:$0xff]  }
 0x1c8   : > { %v16985_v51 = vadd.f32 %v13135_v43, %v9394_v46  ;;  %v9397_v57 = vadd.f32 %v13116_v52, %v16890_v0  ;;  %v14805_v0 = vld [vmem:[%s19149_s1 + $0xda0] sm:$0xff]   ;;  %v14829_v46 = vld [vmem:[%s19149_s1 + $0xe90] sm:$0xff]   ;;  %v14831_v52 = vld [vmem:[%s19149_s1 + $0xed8] sm:$0xff]  }
 0x1c9   : > { %13434 = vmatpush3.bf16.msra.mxu1 %v14805_v0  ;;  %13416 = vmatpush3.bf16.msra.mxu0 %v14812_v7  ;;  %v14841_v0 = vld [vmem:[%s19149_s1 + $0xea8] sm:$0xff]   ;;  %v14848_v7 = vld [vmem:[%s19149_s1 + $0xe38] sm:$0xff]  }
 0x1ca   : > { %v17000_v60 = vadd.f32 %v13138_v55, %v9397_v57  ;;  %13435 = vmatprep.subr.bf16.mxu1 %v14807_v2  ;;  %13417 = vmatprep.subr.bf16.mxu0 %v14814_v9  ;;  %v14833_v55 = vld [vmem:[%s19149_s1 + $0xe98] sm:$0xff]   ;;  %v14834_v57 = vld [vmem:[%s19149_s1 + $0xe60] sm:$0xff]   ;;  %v14843_v2 = vld [vmem:[%s19149_s1 + $0xef0] sm:$0xff]  }
 0x1cb   : > { %v341_v9 = vld [vmem:[%s15647_s23 + $0x1c8] sm:$0xff] }
 0x1cd   : > { %13436 = vmatpush3.bf16.msra.mxu1 %v14809_v4  ;;  %13418 = vmatpush3.bf16.msra.mxu0 %v14816_v11  ;;  %v14845_v4 = vld [vmem:[%s19149_s1 + $0xeb0] sm:$0xff]   ;;  %v343_v11 = vld [vmem:[%s15647_s23 + $0x1d8] sm:$0xff] }
 0x1ce   : > { %13437 = vmatprep.subr.bf16.mxu1 %v14811_v6  ;;  %13447 = vmatprep.subr.bf16.mxu0 %v14818_v25  ;;  %v14847_v6 = vld [vmem:[%s19149_s1 + $0xef8] sm:$0xff]   ;;  %v14854_v25 = vld [vmem:[%s19149_s1 + $0xf48] sm:$0xff]  }
 0x1d0   : > { %9966 = vmatmul.mubr.bf16.vlgmr.msra.gmra.mrb[52].mxu0 %v592_v21  ;;  %v14850_v21 = vld [vmem:[%s19149_s1 + $0xf40] sm:$0xff]  }
 0x1d1   : > { %13438 = vmatpush3.bf16.msra.mxu1 %v14813_v8  ;;  %13448 = vmatpush3.bf16.msra.mxu0 %v14820_v27  ;;  %v14849_v8 = vld [vmem:[%s19149_s1 + $0xeb8] sm:$0xff]   ;;  %v14855_v27 = vld [vmem:[%s19149_s1 + $0xfc8] sm:$0xff]  }
 0x1d2   : > { %13439 = vmatprep.subr.bf16.mxu1 %v14815_v10  ;;  %13449 = vmatprep.subr.bf16.mxu0 %v14822_v29  ;;  %v469_v10 = vld [vmem:[%s15647_s23 + $0x5c8] sm:$0xff] }
 0x1d3   : > { %v597_v13 = vpack.c.bf16 %v469_v10, %v341_v9  ;;  %v14856_v29 = vld [vmem:[%s19149_s1 + $0xf08] sm:$0xff]   ;;  %v475_v9 = vld [vmem:[%s15647_s23 + $0x5f8] sm:$0xff]  ;;  %v344_v10 = vld [vmem:[%s15647_s23 + $0x1e0] sm:$0xff] }
 0x1d5   : > { %13440 = vmatpush3.bf16.msra.mxu1 %v14817_v12  ;;  %13450 = vmatpush3.bf16.msra.mxu0 %v14824_v33  ;;  %v471_v12 = vld [vmem:[%s15647_s23 + $0x5d8] sm:$0xff] }
 0x1d6   : > { %13469 = vmatprep.subr.bf16.mxu1 %v14819_v26  ;;  %13451 = vmatprep.subr.bf16.mxu0 %v14826_v38  ;;  %v599_v14 = vpack.c.bf16 %v471_v12, %v343_v11  ;;  %v472_v12 = vld [vmem:[%s15647_s23 + $0x5e0] sm:$0xff] }
 0x1d7   : > { %10047 = vmatprep.mubr.bf16.mxu0 %v597_v13  ;;  %v346_v13 = vld [vmem:[%s15647_s23 + $0x1f0] sm:$0xff]  ;;  %v600_v15 = vpack.c.bf16 %v472_v12, %v344_v10 }
 0x1d8   : > { %10007 = vmatmul.mubr.bf16.vlgmr.msra.gmra.mrb[52].mxu1 %v594_v24  ;;  %v14853_v24 = vld [vmem:[%s19149_s1 + $0xf80] sm:$0xff]   ;;  %v350_v10 = vld [vmem:[%s15647_s23 + $0x210] sm:$0xff] }
 0x1d9   : > { %13470 = vmatpush3.bf16.msra.mxu1 %v14821_v28  ;;  %13452 = vmatpush3.bf16.msra.mxu0 %v14828_v44 }
 0x1da   : > { %13471 = vmatprep.subr.bf16.mxu1 %v14823_v31  ;;  %13453 = vmatprep.subr.bf16.mxu0 %v14830_v50  ;;  %v14857_v31 = vld [vmem:[%s19149_s1 + $0xf88] sm:$0xff]   ;;  %v14864_v50 = vld [vmem:[%s19149_s1 + $0xf18] sm:$0xff]  }
 0x1db   : > { %10088 = vmatprep.mubr.bf16.mxu1 %v599_v14  ;;  %v474_v14 = vld [vmem:[%s15647_s23 + $0x5f0] sm:$0xff] }
 0x1dc   : > { %v602_v16 = vpack.c.bf16 %v474_v14, %v346_v13  ;;  %v14914_v13 = vld [vmem:[%s19149_s1 + $0x1140] sm:$0xff]  }
 0x1dd   : > { %13472 = vmatpush3.bf16.msra.mxu1 %v14825_v35  ;;  %13454 = vmatpush3.bf16.msra.mxu0 %v14832_v54  ;;  %v14867_v54 = vld [vmem:[%s19149_s1 + $0xfe0] sm:$0xff]  }
 0x1de   : > { %13473 = vmatprep.subr.bf16.mxu1 %v14827_v41  ;;  %13455 = vmatprep.subr.bf16.mxu0 %v14834_v57  ;;  %v14870_v57 = vld [vmem:[%s19149_s1 + $0xf68] sm:$0xff]   ;;  %v14915_v14 = vld [vmem:[%s19149_s1 + $0x11c0] sm:$0xff]  }
 0x1e1   : > { %13474 = vmatpush3.bf16.msra.mxu1 %v14829_v46  ;;  %13456 = vmatpush3.bf16.msra.mxu0 %v14836_v59  ;;  %v14862_v46 = vld [vmem:[%s19149_s1 + $0xf58] sm:$0xff]   ;;  %v14872_v59 = vld [vmem:[%s19149_s1 + $0xf28] sm:$0xff]  }
 0x1e2   : > { %v13155_v30 = vpop.f32.mrb[28].mxu0  ;;  %13475 = vmatprep.subr.bf16.mxu1 %v14831_v52  ;;  %13457 = vmatprep.subr.bf16.mxu0 %v14838_v61  ;;  %v14874_v61 = vld [vmem:[%s19149_s1 + $0xf70] sm:$0xff]  }
 0x1e3   : > { %v13177_v32 = vpop.f32.mrb[28].mxu1  ;;  %v13156_v34 = vpop.f32.mrb[29].mxu0 }
 0x1e4   : > { %v13157_v36 = vadd.f32 %v13156_v34, %v13155_v30  ;;  %v13178_v37 = vpop.f32.mrb[29].mxu1  ;;  %v13158_v40 = vpop.f32.mrb[30].mxu0  ;;  %v14858_v34 = vld [vmem:[%s19149_s1 + $0xf50] sm:$0xff]  }
 0x1e5   : > { %v13179_v39 = vadd.f32 %v13178_v37, %v13177_v32  ;;  %v13180_v43 = vpop.f32.mrb[30].mxu1  ;;  %v13159_v45 = vpop.f32.mrb[31].mxu0  ;;  %13476 = vmatpush3.bf16.msra.mxu1 %v14833_v55  ;;  %13458 = vmatpush3.bf16.msra.mxu0 %v14840_v63  ;;  %v14859_v37 = vld [vmem:[%s19149_s1 + $0xfd0] sm:$0xff]   ;;  %v14868_v55 = vld [vmem:[%s19149_s1 + $0xf20] sm:$0xff]  }
 0x1e6   : > { %v9476_v42 = vadd.f32 %v13157_v36, %v16985_v51  ;;  %v13160_v48 = vadd.f32 %v13159_v45, %v13158_v40  ;;  %v13181_v49 = vpop.f32.mrb[31].mxu1  ;;  %13477 = vmatprep.subr.bf16.mxu1 %v14835_v58  ;;  %13459 = vmatprep.subr.bf16.mxu0 %v14842_v1  ;;  %v14860_v40 = vld [vmem:[%s19149_s1 + $0xf10] sm:$0xff]   ;;  %v14871_v58 = vld [vmem:[%s19149_s1 + $0xfe8] sm:$0xff]   ;;  %v14878_v1 = vld [vmem:[%s19149_s1 + $0xf78] sm:$0xff]  }
 0x1e7   : > { %v13182_v51 = vadd.f32 %v13181_v49, %v13180_v43  ;;  %v14876_v63 = vld [vmem:[%s19149_s1 + $0xf30] sm:$0xff]  }
 0x1e8   : > { %v17095_v47 = vadd.f32 %v13179_v39, %v9476_v42  ;;  %v9479_v53 = vadd.f32 %v13160_v48, %v17000_v60  ;;  %v14837_v60 = vld [vmem:[%s19149_s1 + $0xea0] sm:$0xff]   ;;  %v14861_v42 = vld [vmem:[%s19149_s1 + $0xf90] sm:$0xff]   ;;  %v14863_v48 = vld [vmem:[%s19149_s1 + $0xfd8] sm:$0xff]  }
 0x1e9   : > { %13478 = vmatpush3.bf16.msra.mxu1 %v14837_v60  ;;  %13460 = vmatpush3.bf16.msra.mxu0 %v14844_v3  ;;  %v14873_v60 = vld [vmem:[%s19149_s1 + $0xfa8] sm:$0xff]   ;;  %v14880_v3 = vld [vmem:[%s19149_s1 + $0xf38] sm:$0xff]  }
 0x1ea   : > { %v17110_v56 = vadd.f32 %v13182_v51, %v9479_v53  ;;  %13479 = vmatprep.subr.bf16.mxu1 %v14839_v62  ;;  %13461 = vmatprep.subr.bf16.mxu0 %v14846_v5  ;;  %v14865_v51 = vld [vmem:[%s19149_s1 + $0xf98] sm:$0xff]   ;;  %v14866_v53 = vld [vmem:[%s19149_s1 + $0xf60] sm:$0xff]   ;;  %v14875_v62 = vld [vmem:[%s19149_s1 + $0xff0] sm:$0xff]  }
 0x1eb   : > { %v345_v5 = vld [vmem:[%s15647_s23 + $0x1e8] sm:$0xff] }
 0x1ed   : > { %13480 = vmatpush3.bf16.msra.mxu1 %v14841_v0  ;;  %13462 = vmatpush3.bf16.msra.mxu0 %v14848_v7  ;;  %v14877_v0 = vld [vmem:[%s19149_s1 + $0xfb0] sm:$0xff]  }
 0x1ee   : > { %13481 = vmatprep.subr.bf16.mxu1 %v14843_v2  ;;  %13491 = vmatprep.subr.bf16.mxu0 %v14850_v21  ;;  %v14879_v2 = vld [vmem:[%s19149_s1 + $0xff8] sm:$0xff]   ;;  %v14886_v21 = vld [vmem:[%s19149_s1 + $0x1048] sm:$0xff]  }
 0x1f0   : > { %10048 = vmatmul.mubr.bf16.vlgmr.msra.gmra.mrb[56].mxu0 %v596_v18  ;;  %v14883_v18 = vld [vmem:[%s19149_s1 + $0x10c0] sm:$0xff]  }
 0x1f1   : > { %13482 = vmatpush3.bf16.msra.mxu1 %v14845_v4  ;;  %13492 = vmatpush3.bf16.msra.mxu0 %v14852_v23  ;;  %v14881_v4 = vld [vmem:[%s19149_s1 + $0xfb8] sm:$0xff]  }
 0x1f2   : > { %13483 = vmatprep.subr.bf16.mxu1 %v14847_v6  ;;  %13493 = vmatprep.subr.bf16.mxu0 %v14854_v25  ;;  %v473_v6 = vld [vmem:[%s15647_s23 + $0x5e8] sm:$0xff] }
 0x1f3   : > { %v601_v7 = vpack.c.bf16 %v473_v6, %v345_v5  ;;  %v479_v5 = vld [vmem:[%s15647_s23 + $0x618] sm:$0xff]  ;;  %v348_v6 = vld [vmem:[%s15647_s23 + $0x200] sm:$0xff] }
 0x1f5   : > { %13484 = vmatpush3.bf16.msra.mxu1 %v14849_v8  ;;  %13494 = vmatpush3.bf16.msra.mxu0 %v14856_v29  ;;  %v347_v8 = vld [vmem:[%s15647_s23 + $0x1f8] sm:$0xff] }
 0x1f6   : > { %13513 = vmatprep.subr.bf16.mxu1 %v14851_v22  ;;  %13495 = vmatprep.subr.bf16.mxu0 %v14858_v34  ;;  %v603_v11 = vpack.c.bf16 %v475_v9, %v347_v8  ;;  %v14887_v22 = vld [vmem:[%s19149_s1 + $0x10c8] sm:$0xff]   ;;  %v14892_v34 = vld [vmem:[%s19149_s1 + $0x1010] sm:$0xff]  }
 0x1f7   : > { %10129 = vmatprep.mubr.bf16.mxu0 %v601_v7  ;;  %v476_v7 = vld [vmem:[%s15647_s23 + $0x600] sm:$0xff] }
 0x1f8   : > { %10089 = vmatmul.mubr.bf16.vlgmr.msra.gmra.mrb[56].mxu1 %v598_v20  ;;  %v14885_v20 = vld [vmem:[%s19149_s1 + $0x1080] sm:$0xff]   ;;  %v604_v9 = vpack.c.bf16 %v476_v7, %v348_v6  ;;  %v482_v7 = vld [vmem:[%s15647_s23 + $0x630] sm:$0xff] }
 0x1f9   : > { %13514 = vmatpush3.bf16.msra.mxu1 %v14853_v24  ;;  %13496 = vmatpush3.bf16.msra.mxu0 %v14860_v40  ;;  %v14888_v24 = vld [vmem:[%s19149_s1 + $0x1008] sm:$0xff]  }
 0x1fa   : > { %13515 = vmatprep.subr.bf16.mxu1 %v14855_v27  ;;  %13497 = vmatprep.subr.bf16.mxu0 %v14862_v46 }
 0x1fb   : > { %10170 = vmatprep.mubr.bf16.mxu1 %v603_v11  ;;  %v478_v11 = vld [vmem:[%s15647_s23 + $0x610] sm:$0xff] }
 0x1fc   : > { %v606_v12 = vpack.c.bf16 %v478_v11, %v350_v10  ;;  %v14947_v10 = vld [vmem:[%s19149_s1 + $0x12c0] sm:$0xff]  }
 0x1fd   : > { %13516 = vmatpush3.bf16.msra.mxu1 %v14857_v31  ;;  %13498 = vmatpush3.bf16.msra.mxu0 %v14864_v50  ;;  %v14891_v31 = vld [vmem:[%s19149_s1 + $0x10d0] sm:$0xff]   ;;  %v14899_v50 = vld [vmem:[%s19149_s1 + $0x10e0] sm:$0xff]  }
 0x1fe   : > { %13517 = vmatprep.subr.bf16.mxu1 %v14859_v37  ;;  %13499 = vmatprep.subr.bf16.mxu0 %v14866_v53  ;;  %v14893_v37 = vld [vmem:[%s19149_s1 + $0x1090] sm:$0xff]   ;;  %v14902_v53 = vld [vmem:[%s19149_s1 + $0x1068] sm:$0xff]   ;;  %v14948_v11 = vld [vmem:[%s19149_s1 + $0x1200] sm:$0xff]  }
 0x201   : > { %13518 = vmatpush3.bf16.msra.mxu1 %v14861_v42  ;;  %13500 = vmatpush3.bf16.msra.mxu0 %v14868_v55  ;;  %v14904_v55 = vld [vmem:[%s19149_s1 + $0x1028] sm:$0xff]  }
 0x202   : > { %13519 = vmatprep.subr.bf16.mxu1 %v14863_v48  ;;  %13501 = vmatprep.subr.bf16.mxu0 %v14870_v57  ;;  %v14898_v48 = vld [vmem:[%s19149_s1 + $0x1060] sm:$0xff]   ;;  %v14906_v57 = vld [vmem:[%s19149_s1 + $0x1070] sm:$0xff]  }
 0x203   : > { %v13199_v26 = vpop.f32.mrb[32].mxu0  ;;  %v13221_v28 = vpop.f32.mrb[32].mxu1 }
 0x204   : > { %v13200_v30 = vpop.f32.mrb[33].mxu0  ;;  %v13222_v33 = vpop.f32.mrb[33].mxu1 }
 0x205   : > { %v13201_v32 = vadd.f32 %v13200_v30, %v13199_v26  ;;  %v13223_v35 = vadd.f32 %v13222_v33, %v13221_v28  ;;  %v13202_v36 = vpop.f32.mrb[34].mxu0  ;;  %v13224_v39 = vpop.f32.mrb[34].mxu1  ;;  %13520 = vmatpush3.bf16.msra.mxu1 %v14865_v51  ;;  %13502 = vmatpush3.bf16.msra.mxu0 %v14872_v59  ;;  %v14889_v26 = vld [vmem:[%s19149_s1 + $0x1088] sm:$0xff]   ;;  %v14890_v28 = vld [vmem:[%s19149_s1 + $0x1050] sm:$0xff]   ;;  %v14900_v51 = vld [vmem:[%s19149_s1 + $0x1020] sm:$0xff]  }
 0x206   : > { %v13203_v41 = vpop.f32.mrb[35].mxu0  ;;  %v13225_v45 = vpop.f32.mrb[35].mxu1  ;;  %13521 = vmatprep.subr.bf16.mxu1 %v14867_v54  ;;  %13503 = vmatprep.subr.bf16.mxu0 %v14874_v61  ;;  %v14903_v54 = vld [vmem:[%s19149_s1 + $0x10e8] sm:$0xff]   ;;  %v14908_v59 = vld [vmem:[%s19149_s1 + $0x1030] sm:$0xff]   ;;  %v14910_v61 = vld [vmem:[%s19149_s1 + $0x1078] sm:$0xff]  }
 0x207   : > { %v9558_v38 = vadd.f32 %v13201_v32, %v17095_v47  ;;  %v13204_v44 = vadd.f32 %v13203_v41, %v13202_v36  ;;  %v13226_v47 = vadd.f32 %v13225_v45, %v13224_v39  ;;  %v14894_v39 = vld [vmem:[%s19149_s1 + $0x1058] sm:$0xff]  }
 0x208   : > { %v14896_v45 = vld [vmem:[%s19149_s1 + $0x1018] sm:$0xff]  }
 0x209   : > { %v17205_v43 = vadd.f32 %v13223_v35, %v9558_v38  ;;  %v9561_v49 = vadd.f32 %v13204_v44, %v17110_v56  ;;  %v14869_v56 = vld [vmem:[%s19149_s1 + $0xfa0] sm:$0xff]   ;;  %13504 = vmatpush3.bf16.msra.mxu0 %v14876_v63  ;;  %v14912_v63 = vld [vmem:[%s19149_s1 + $0x1038] sm:$0xff]  }
 0x20a   : > { %13522 = vmatpush3.bf16.msra.mxu1 %v14869_v56  ;;  %13505 = vmatprep.subr.bf16.mxu0 %v14878_v1  ;;  %v14905_v56 = vld [vmem:[%s19149_s1 + $0x10a8] sm:$0xff]  }
 0x20b   : > { %v17220_v52 = vadd.f32 %v13226_v47, %v9561_v49  ;;  %13523 = vmatprep.subr.bf16.mxu1 %v14871_v58  ;;  %v14897_v47 = vld [vmem:[%s19149_s1 + $0x1098] sm:$0xff]   ;;  %v14907_v58 = vld [vmem:[%s19149_s1 + $0x10f0] sm:$0xff]   ;;  %v349_v1 = vld [vmem:[%s15647_s23 + $0x208] sm:$0xff] }
 0x20d   : > { %13506 = vmatpush3.bf16.msra.mxu0 %v14880_v3  ;;  %v351_v3 = vld [vmem:[%s15647_s23 + $0x218] sm:$0xff] }
 0x20e   : > { %13524 = vmatpush3.bf16.msra.mxu1 %v14873_v60  ;;  %13535 = vmatprep.subr.bf16.mxu0 %v14882_v17  ;;  %v14909_v60 = vld [vmem:[%s19149_s1 + $0x10b0] sm:$0xff]   ;;  %v607_v8 = vpack.c.bf16 %v479_v5, %v351_v3  ;;  %v14918_v17 = vld [vmem:[%s19149_s1 + $0x1148] sm:$0xff]   ;;  %v352_v3 = vld [vmem:[%s15647_s23 + $0x220] sm:$0xff] }
 0x20f   : > { %13525 = vmatprep.subr.bf16.mxu1 %v14875_v62  ;;  %v14911_v62 = vld [vmem:[%s19149_s1 + $0x10f8] sm:$0xff]   ;;  %v354_v5 = vld [vmem:[%s15647_s23 + $0x230] sm:$0xff] }
 0x210   : > { %10130 = vmatmul.mubr.bf16.vlgmr.msra.gmra.mrb[60].mxu0 %v600_v15  ;;  %v14916_v15 = vld [vmem:[%s19149_s1 + $0x1100] sm:$0xff]  }
 0x211   : > { %13536 = vmatpush3.bf16.msra.mxu0 %v14884_v19  ;;  %v14919_v19 = vld [vmem:[%s19149_s1 + $0x11c8] sm:$0xff]  }
 0x212   : > { %13526 = vmatpush3.bf16.msra.mxu1 %v14877_v0  ;;  %13537 = vmatprep.subr.bf16.mxu0 %v14886_v21  ;;  %v14913_v0 = vld [vmem:[%s19149_s1 + $0x10b8] sm:$0xff]   ;;  %v14920_v21 = vld [vmem:[%s19149_s1 + $0x1108] sm:$0xff]  }
 0x213   : > { %13527 = vmatprep.subr.bf16.mxu1 %v14879_v2  ;;  %v477_v2 = vld [vmem:[%s15647_s23 + $0x608] sm:$0xff] }
 0x215   : > { %13538 = vmatpush3.bf16.msra.mxu0 %v14888_v24 }
 0x216   : > { %13528 = vmatpush3.bf16.msra.mxu1 %v14881_v4  ;;  %13539 = vmatprep.subr.bf16.mxu0 %v14890_v28  ;;  %v605_v4 = vpack.c.bf16 %v477_v2, %v349_v1 }
 0x217   : > { %13557 = vmatprep.subr.bf16.mxu1 %v14883_v18 }
 0x218   : > { %10211 = vmatprep.mubr.bf16.mxu0 %v605_v4  ;;  %v480_v4 = vld [vmem:[%s15647_s23 + $0x620] sm:$0xff] }
 0x219   : > { %10171 = vmatmul.mubr.bf16.vlgmr.msra.gmra.mrb[60].mxu1 %v602_v16  ;;  %13540 = vmatpush3.bf16.msra.mxu0 %v14892_v34  ;;  %v14917_v16 = vld [vmem:[%s19149_s1 + $0x1180] sm:$0xff]   ;;  %v14925_v34 = vld [vmem:[%s19149_s1 + $0x1190] sm:$0xff]   ;;  %v608_v6 = vpack.c.bf16 %v480_v4, %v352_v3 }
 0x21a   : > { %13558 = vmatpush3.bf16.msra.mxu1 %v14885_v20  ;;  %13541 = vmatprep.subr.bf16.mxu0 %v14894_v39 }
 0x21b   : > { %13559 = vmatprep.subr.bf16.mxu1 %v14887_v22  ;;  %10252 = vmatprep.mubr.bf16.mxu1 %v607_v8  ;;  %v610_v8 = vpack.c.bf16 %v482_v7, %v354_v5  ;;  %v14978_v5 = vld [vmem:[%s19149_s1 + $0x1340] sm:$0xff]  }
 0x21c   : > { %v14980_v7 = vld [vmem:[%s19149_s1 + $0x1300] sm:$0xff]  }
 0x21d   : > { %13542 = vmatpush3.bf16.msra.mxu0 %v14896_v45  ;;  %v14930_v45 = vld [vmem:[%s19149_s1 + $0x1160] sm:$0xff]  }
 0x21e   : > { %13560 = vmatpush3.bf16.msra.mxu1 %v14889_v26  ;;  %13543 = vmatprep.subr.bf16.mxu0 %v14898_v48  ;;  %v14922_v26 = vld [vmem:[%s19149_s1 + $0x1150] sm:$0xff]   ;;  %v14933_v48 = vld [vmem:[%s19149_s1 + $0x11a0] sm:$0xff]  }
 0x21f   : > { %13561 = vmatprep.subr.bf16.mxu1 %v14891_v31 }
 0x221   : > { %13544 = vmatpush3.bf16.msra.mxu0 %v14900_v51  ;;  %v14936_v51 = vld [vmem:[%s19149_s1 + $0x1128] sm:$0xff]  }
 0x222   : > { %13562 = vmatpush3.bf16.msra.mxu1 %v14893_v37  ;;  %13545 = vmatprep.subr.bf16.mxu0 %v14902_v53  ;;  %v14938_v53 = vld [vmem:[%s19149_s1 + $0x1170] sm:$0xff]  }
 0x223   : > { %v13243_v23 = vpop.f32.mrb[36].mxu0 }
 0x224   : > { %v13244_v27 = vpop.f32.mrb[37].mxu0 }
 0x225   : > { %v13245_v29 = vadd.f32 %v13244_v27, %v13243_v23  ;;  %v13246_v33 = vpop.f32.mrb[38].mxu0  ;;  %13546 = vmatpush3.bf16.msra.mxu0 %v14904_v55  ;;  %v14921_v23 = vld [vmem:[%s19149_s1 + $0x1188] sm:$0xff]   ;;  %v14940_v55 = vld [vmem:[%s19149_s1 + $0x1130] sm:$0xff]  }
 0x226   : > { %v13247_v38 = vpop.f32.mrb[39].mxu0  ;;  %13547 = vmatprep.subr.bf16.mxu0 %v14906_v57  ;;  %v14942_v57 = vld [vmem:[%s19149_s1 + $0x1178] sm:$0xff]  }
 0x227   : > { %v9640_v35 = vadd.f32 %v13245_v29, %v17205_v43  ;;  %v13248_v41 = vadd.f32 %v13247_v38, %v13246_v33  ;;  %v14895_v43 = vld [vmem:[%s19149_s1 + $0x10d8] sm:$0xff]   ;;  %v14923_v29 = vld [vmem:[%s19149_s1 + $0x11d0] sm:$0xff]  }
 0x228   : > { %13563 = vmatprep.subr.bf16.mxu1 %v14895_v43  ;;  %v14926_v38 = vld [vmem:[%s19149_s1 + $0x1158] sm:$0xff]  }
 0x229   : > { %v9643_v46 = vadd.f32 %v13248_v41, %v17220_v52  ;;  %13564 = vmatpush3.bf16.msra.mxu1 %v14897_v47  ;;  %v14901_v52 = vld [vmem:[%s19149_s1 + $0x10a0] sm:$0xff]   ;;  %13548 = vmatpush3.bf16.msra.mxu0 %v14908_v59  ;;  %v14929_v43 = vld [vmem:[%s19149_s1 + $0x1198] sm:$0xff]  }
 0x22a   : > { %13565 = vmatprep.subr.bf16.mxu1 %v14899_v50  ;;  %13549 = vmatprep.subr.bf16.mxu0 %v14910_v61  ;;  %v14932_v47 = vld [vmem:[%s19149_s1 + $0x1120] sm:$0xff]   ;;  %v14935_v50 = vld [vmem:[%s19149_s1 + $0x11e8] sm:$0xff]   ;;  %v14944_v59 = vld [vmem:[%s19149_s1 + $0x1138] sm:$0xff]  }
 0x22b   : > { %v13265_v25 = vpop.f32.mrb[36].mxu1  ;;  %v353_v61 = vld [vmem:[%s15647_s23 + $0x228] sm:$0xff] }
 0x22c   : > { %v13266_v30 = vpop.f32.mrb[37].mxu1 }
 0x22d   : > { %v13267_v32 = vadd.f32 %v13266_v30, %v13265_v25  ;;  %v13268_v36 = vpop.f32.mrb[38].mxu1  ;;  %13566 = vmatpush3.bf16.msra.mxu1 %v14901_v52  ;;  %13550 = vmatpush3.bf16.msra.mxu0 %v14912_v63  ;;  %v14937_v52 = vld [vmem:[%s19149_s1 + $0x11a8] sm:$0xff]   ;;  %v355_v63 = vld [vmem:[%s15647_s23 + $0x238] sm:$0xff] }
 0x22e   : > { %v13269_v42 = vpop.f32.mrb[39].mxu1  ;;  %13567 = vmatprep.subr.bf16.mxu1 %v14903_v54  ;;  %13579 = vmatprep.subr.bf16.mxu0 %v14914_v13  ;;  %v14939_v54 = vld [vmem:[%s19149_s1 + $0x11f0] sm:$0xff]   ;;  %v14950_v13 = vld [vmem:[%s19149_s1 + $0x1248] sm:$0xff]  }
 0x22f   : > { %v17318_v40 = vadd.f32 %v13267_v32, %v9640_v35  ;;  %v13270_v44 = vadd.f32 %v13269_v42, %v13268_v36  ;;  %v14924_v32 = vld [vmem:[%s19149_s1 + $0x1110] sm:$0xff]   ;;  %v14928_v42 = vld [vmem:[%s19149_s1 + $0x1118] sm:$0xff]  }
 0x230   : > { %10212 = vmatmul.mubr.bf16.vlgmr.msra.gmra.mrb[64].mxu0 %v604_v9  ;;  %v14946_v9 = vld [vmem:[%s19149_s1 + $0x1240] sm:$0xff]  }
 0x231   : > { %v17333_v49 = vadd.f32 %v13270_v44, %v9643_v46  ;;  %13568 = vmatpush3.bf16.msra.mxu1 %v14905_v56  ;;  %13580 = vmatpush3.bf16.msra.mxu0 %v14916_v15  ;;  %v14931_v46 = vld [vmem:[%s19149_s1 + $0x11e0] sm:$0xff]   ;;  %v14941_v56 = vld [vmem:[%s19149_s1 + $0x11b0] sm:$0xff]   ;;  %v14951_v15 = vld [vmem:[%s19149_s1 + $0x12c8] sm:$0xff]  }
 0x232   : > { %13569 = vmatprep.subr.bf16.mxu1 %v14907_v58  ;;  %13581 = vmatprep.subr.bf16.mxu0 %v14918_v17  ;;  %v14943_v58 = vld [vmem:[%s19149_s1 + $0x11f8] sm:$0xff]   ;;  %v14952_v17 = vld [vmem:[%s19149_s1 + $0x1208] sm:$0xff]  }
 0x235   : > { %13570 = vmatpush3.bf16.msra.mxu1 %v14909_v60  ;;  %13582 = vmatpush3.bf16.msra.mxu0 %v14920_v21  ;;  %v14945_v60 = vld [vmem:[%s19149_s1 + $0x11b8] sm:$0xff]  }
 0x236   : > { %13571 = vmatprep.subr.bf16.mxu1 %v14911_v62  ;;  %13583 = vmatprep.subr.bf16.mxu0 %v14922_v26  ;;  %v481_v62 = vld [vmem:[%s15647_s23 + $0x628] sm:$0xff] }
 0x237   : > { %v609_v1 = vpack.c.bf16 %v481_v62, %v353_v61  ;;  %v487_v61 = vld [vmem:[%s15647_s23 + $0x658] sm:$0xff]  ;;  %v356_v62 = vld [vmem:[%s15647_s23 + $0x240] sm:$0xff] }
 0x239   : > { %13572 = vmatpush3.bf16.msra.mxu1 %v14913_v0  ;;  %13584 = vmatpush3.bf16.msra.mxu0 %v14924_v32  ;;  %v483_v0 = vld [vmem:[%s15647_s23 + $0x638] sm:$0xff] }
 0x23a   : > { %13601 = vmatprep.subr.bf16.mxu1 %v14915_v14  ;;  %13585 = vmatprep.subr.bf16.mxu0 %v14926_v38  ;;  %v611_v2 = vpack.c.bf16 %v483_v0, %v355_v63  ;;  %v14960_v38 = vld [vmem:[%s19149_s1 + $0x1218] sm:$0xff]   ;;  %v484_v0 = vld [vmem:[%s15647_s23 + $0x640] sm:$0xff] }
 0x23b   : > { %10293 = vmatprep.mubr.bf16.mxu0 %v609_v1  ;;  %v358_v1 = vld [vmem:[%s15647_s23 + $0x250] sm:$0xff]  ;;  %v612_v3 = vpack.c.bf16 %v484_v0, %v356_v62 }
 0x23c   : > { %10253 = vmatmul.mubr.bf16.vlgmr.msra.gmra.mrb[64].mxu1 %v606_v12  ;;  %v14949_v12 = vld [vmem:[%s19149_s1 + $0x1280] sm:$0xff]   ;;  %v362_v62 = vld [vmem:[%s15647_s23 + $0x270] sm:$0xff] }
 0x23d   : > { %13602 = vmatpush3.bf16.msra.mxu1 %v14917_v16  ;;  %13586 = vmatpush3.bf16.msra.mxu0 %v14928_v42  ;;  %v14963_v42 = vld [vmem:[%s19149_s1 + $0x12e0] sm:$0xff]  }
 0x23e   : > { %13603 = vmatprep.subr.bf16.mxu1 %v14919_v19  ;;  %13587 = vmatprep.subr.bf16.mxu0 %v14930_v45  ;;  %v14953_v19 = vld [vmem:[%s19149_s1 + $0x1288] sm:$0xff]  }
 0x23f   : > { %10334 = vmatprep.mubr.bf16.mxu1 %v611_v2  ;;  %v14966_v45 = vld [vmem:[%s19149_s1 + $0x1268] sm:$0xff]   ;;  %v486_v2 = vld [vmem:[%s15647_s23 + $0x650] sm:$0xff] }
 0x240   : > { %v614_v4 = vpack.c.bf16 %v486_v2, %v358_v1  ;;  %v15010_v1 = vld [vmem:[%s19149_s1 + $0x1440] sm:$0xff]  }
 0x241   : > { %13604 = vmatpush3.bf16.msra.mxu1 %v14921_v23  ;;  %13588 = vmatpush3.bf16.msra.mxu0 %v14932_v47  ;;  %v14968_v47 = vld [vmem:[%s19149_s1 + $0x1228] sm:$0xff]   ;;  %v15011_v2 = vld [vmem:[%s19149_s1 + $0x14c0] sm:$0xff]  }
 0x242   : > { %13605 = vmatprep.subr.bf16.mxu1 %v14923_v29 }
 0x243   : > { %v13287_v18 = vpop.f32.mrb[40].mxu0 }
 0x244   : > { %v13288_v22 = vpop.f32.mrb[41].mxu0 }
 0x245   : > { %v13289_v24 = vadd.f32 %v13288_v22, %v13287_v18  ;;  %v13290_v28 = vpop.f32.mrb[42].mxu0  ;;  %13606 = vmatpush3.bf16.msra.mxu1 %v14925_v34  ;;  %v14954_v22 = vld [vmem:[%s19149_s1 + $0x1250] sm:$0xff]   ;;  %v14958_v34 = vld [vmem:[%s19149_s1 + $0x1258] sm:$0xff]  }
 0x246   : > { %v13291_v33 = vpop.f32.mrb[43].mxu0 }
 0x247   : > { %v9722_v30 = vadd.f32 %v13289_v24, %v17318_v40  ;;  %v13292_v36 = vadd.f32 %v13291_v33, %v13290_v28  ;;  %v14927_v40 = vld [vmem:[%s19149_s1 + $0x11d8] sm:$0xff]   ;;  %v14956_v28 = vld [vmem:[%s19149_s1 + $0x1210] sm:$0xff]  }
 0x248   : > { %13607 = vmatprep.subr.bf16.mxu1 %v14927_v40 }
 0x249   : > { %v9725_v41 = vadd.f32 %v13292_v36, %v17333_v49  ;;  %13608 = vmatpush3.bf16.msra.mxu1 %v14929_v43  ;;  %v14934_v49 = vld [vmem:[%s19149_s1 + $0x1168] sm:$0xff]   ;;  %v14959_v36 = vld [vmem:[%s19149_s1 + $0x12d8] sm:$0xff]   ;;  %v14964_v43 = vld [vmem:[%s19149_s1 + $0x1220] sm:$0xff]  }
 0x24a   : > { %13609 = vmatprep.subr.bf16.mxu1 %v14931_v46  ;;  %13589 = vmatprep.subr.bf16.mxu0 %v14934_v49  ;;  %v14967_v46 = vld [vmem:[%s19149_s1 + $0x12e8] sm:$0xff]   ;;  %v14970_v49 = vld [vmem:[%s19149_s1 + $0x1270] sm:$0xff]  }
 0x24b   : > { %v13309_v20 = vpop.f32.mrb[40].mxu1  ;;  %13590 = vmatpush3.bf16.msra.mxu0 %v14936_v51  ;;  %v14972_v51 = vld [vmem:[%s19149_s1 + $0x1230] sm:$0xff]  }
 0x24c   : > { %v13310_v25 = vpop.f32.mrb[41].mxu1  ;;  %13591 = vmatprep.subr.bf16.mxu0 %v14938_v53  ;;  %v14974_v53 = vld [vmem:[%s19149_s1 + $0x1278] sm:$0xff]  }
 0x24d   : > { %v13311_v27 = vadd.f32 %v13310_v25, %v13309_v20  ;;  %v13312_v31 = vpop.f32.mrb[42].mxu1  ;;  %13610 = vmatpush3.bf16.msra.mxu1 %v14933_v48  ;;  %v14955_v25 = vld [vmem:[%s19149_s1 + $0x12d0] sm:$0xff]   ;;  %v14969_v48 = vld [vmem:[%s19149_s1 + $0x12a8] sm:$0xff]  }
 0x24e   : > { %v13313_v37 = vpop.f32.mrb[43].mxu1  ;;  %13611 = vmatprep.subr.bf16.mxu1 %v14935_v50  ;;  %v14971_v50 = vld [vmem:[%s19149_s1 + $0x12f0] sm:$0xff]  }
 0x24f   : > { %v17425_v35 = vadd.f32 %v13311_v27, %v9722_v30  ;;  %v13314_v39 = vadd.f32 %v13313_v37, %v13312_v31  ;;  %13592 = vmatpush3.bf16.msra.mxu0 %v14940_v55  ;;  %v14957_v30 = vld [vmem:[%s19149_s1 + $0x1290] sm:$0xff]   ;;  %v14976_v55 = vld [vmem:[%s19149_s1 + $0x1238] sm:$0xff]  }
 0x250   : > { %13593 = vmatprep.subr.bf16.mxu0 %v14942_v57  ;;  %v357_v57 = vld [vmem:[%s15647_s23 + $0x248] sm:$0xff] }
 0x251   : > { %v17440_v44 = vadd.f32 %v13314_v39, %v9725_v41  ;;  %13612 = vmatpush3.bf16.msra.mxu1 %v14937_v52  ;;  %v14961_v39 = vld [vmem:[%s19149_s1 + $0x1298] sm:$0xff]   ;;  %v14962_v41 = vld [vmem:[%s19149_s1 + $0x1260] sm:$0xff]   ;;  %v14973_v52 = vld [vmem:[%s19149_s1 + $0x12b0] sm:$0xff]  }
 0x252   : > { %13613 = vmatprep.subr.bf16.mxu1 %v14939_v54  ;;  %v14975_v54 = vld [vmem:[%s19149_s1 + $0x12f8] sm:$0xff]  }
 0x253   : > { %13594 = vmatpush3.bf16.msra.mxu0 %v14944_v59 }
 0x254   : > { %13623 = vmatprep.subr.bf16.mxu0 %v14946_v9  ;;  %v14982_v9 = vld [vmem:[%s19149_s1 + $0x1348] sm:$0xff]  }
 0x255   : > { %13614 = vmatpush3.bf16.msra.mxu1 %v14941_v56  ;;  %v14977_v56 = vld [vmem:[%s19149_s1 + $0x12b8] sm:$0xff]  }
 0x256   : > { %13615 = vmatprep.subr.bf16.mxu1 %v14943_v58  ;;  %10294 = vmatmul.mubr.bf16.vlgmr.msra.gmra.mrb[68].mxu0 %v608_v6  ;;  %v485_v58 = vld [vmem:[%s15647_s23 + $0x648] sm:$0xff]  ;;  %v14979_v6 = vld [vmem:[%s19149_s1 + $0x13c0] sm:$0xff]  }
 0x257   : > { %13624 = vmatpush3.bf16.msra.mxu0 %v14948_v11  ;;  %v613_v59 = vpack.c.bf16 %v485_v58, %v357_v57  ;;  %v491_v57 = vld [vmem:[%s15647_s23 + $0x678] sm:$0xff]  ;;  %v360_v58 = vld [vmem:[%s15647_s23 + $0x260] sm:$0xff] }
 0x258   : > { %13625 = vmatprep.subr.bf16.mxu0 %v14950_v13 }
 0x259   : > { %13616 = vmatpush3.bf16.msra.mxu1 %v14945_v60  ;;  %v359_v60 = vld [vmem:[%s15647_s23 + $0x258] sm:$0xff]  ;;  %10375 = vmatprep.mubr.bf16.mxu0 %v613_v59  ;;  %v488_v59 = vld [vmem:[%s15647_s23 + $0x660] sm:$0xff] }
 0x25a   : > { %13645 = vmatprep.subr.bf16.mxu1 %v14947_v10  ;;  %v615_v63 = vpack.c.bf16 %v487_v61, %v359_v60  ;;  %v14983_v10 = vld [vmem:[%s19149_s1 + $0x13c8] sm:$0xff]   ;;  %v616_v61 = vpack.c.bf16 %v488_v59, %v360_v58  ;;  %v494_v59 = vld [vmem:[%s15647_s23 + $0x690] sm:$0xff] }
 0x25b   : > { %13626 = vmatpush3.bf16.msra.mxu0 %v14952_v17 }
 0x25c   : > { %10335 = vmatmul.mubr.bf16.vlgmr.msra.gmra.mrb[68].mxu1 %v610_v8  ;;  %13627 = vmatprep.subr.bf16.mxu0 %v14954_v22  ;;  %v14981_v8 = vld [vmem:[%s19149_s1 + $0x1380] sm:$0xff]   ;;  %v14988_v22 = vld [vmem:[%s19149_s1 + $0x1310] sm:$0xff]  }
 0x25d   : > { %13646 = vmatpush3.bf16.msra.mxu1 %v14949_v12  ;;  %10416 = vmatprep.mubr.bf16.mxu1 %v615_v63  ;;  %v14984_v12 = vld [vmem:[%s19149_s1 + $0x1308] sm:$0xff]   ;;  %v490_v63 = vld [vmem:[%s15647_s23 + $0x670] sm:$0xff] }
 0x25e   : > { %13647 = vmatprep.subr.bf16.mxu1 %v14951_v15  ;;  %v618_v0 = vpack.c.bf16 %v490_v63, %v362_v62  ;;  %v15043_v62 = vld [vmem:[%s19149_s1 + $0x15c0] sm:$0xff]  }
 0x25f   : > { %13628 = vmatpush3.bf16.msra.mxu0 %v14956_v28  ;;  %v15044_v63 = vld [vmem:[%s19149_s1 + $0x1500] sm:$0xff]  }
 0x260   : > { %13629 = vmatprep.subr.bf16.mxu0 %v14958_v34 }
 0x261   : > { %13648 = vmatpush3.bf16.msra.mxu1 %v14953_v19  ;;  %v14987_v19 = vld [vmem:[%s19149_s1 + $0x13d0] sm:$0xff]  }
 0x262   : > { %13649 = vmatprep.subr.bf16.mxu1 %v14955_v25  ;;  %v14989_v25 = vld [vmem:[%s19149_s1 + $0x1390] sm:$0xff]  }
 0x263   : > { %v13331_v14 = vpop.f32.mrb[44].mxu0  ;;  %13630 = vmatpush3.bf16.msra.mxu0 %v14960_v38  ;;  %v14995_v38 = vld [vmem:[%s19149_s1 + $0x13e0] sm:$0xff]  }
 0x264   : > { %v13332_v18 = vpop.f32.mrb[45].mxu0  ;;  %13631 = vmatprep.subr.bf16.mxu0 %v14962_v41  ;;  %v14998_v41 = vld [vmem:[%s19149_s1 + $0x1368] sm:$0xff]  }
 0x265   : > { %v13333_v20 = vadd.f32 %v13332_v18, %v13331_v14  ;;  %v13334_v24 = vpop.f32.mrb[46].mxu0  ;;  %13650 = vmatpush3.bf16.msra.mxu1 %v14957_v30  ;;  %v14985_v14 = vld [vmem:[%s19149_s1 + $0x1388] sm:$0xff]  }
 0x266   : > { %v13335_v29 = vpop.f32.mrb[47].mxu0  ;;  %13651 = vmatprep.subr.bf16.mxu1 %v14959_v36  ;;  %v14994_v36 = vld [vmem:[%s19149_s1 + $0x1360] sm:$0xff]  }
 0x267   : > { %v9804_v26 = vadd.f32 %v13333_v20, %v17425_v35  ;;  %v13336_v32 = vadd.f32 %v13335_v29, %v13334_v24  ;;  %13632 = vmatpush3.bf16.msra.mxu0 %v14964_v43  ;;  %v15000_v43 = vld [vmem:[%s19149_s1 + $0x1328] sm:$0xff]  }
 0x268   : > { %13633 = vmatprep.subr.bf16.mxu0 %v14966_v45  ;;  %v15002_v45 = vld [vmem:[%s19149_s1 + $0x1370] sm:$0xff]  }
 0x269   : > { %v9807_v37 = vadd.f32 %v13336_v32, %v17440_v44  ;;  %13652 = vmatpush3.bf16.msra.mxu1 %v14961_v39  ;;  %v14965_v44 = vld [vmem:[%s19149_s1 + $0x12a0] sm:$0xff]  }
 0x26a   : > { %13653 = vmatprep.subr.bf16.mxu1 %v14963_v42  ;;  %v14996_v39 = vld [vmem:[%s19149_s1 + $0x1320] sm:$0xff]   ;;  %v14999_v42 = vld [vmem:[%s19149_s1 + $0x13e8] sm:$0xff]  }
 0x26b   : > { %v13353_v16 = vpop.f32.mrb[44].mxu1  ;;  %13634 = vmatpush3.bf16.msra.mxu0 %v14968_v47  ;;  %v15004_v47 = vld [vmem:[%s19149_s1 + $0x1330] sm:$0xff]  }
 0x26c   : > { %v13354_v21 = vpop.f32.mrb[45].mxu1  ;;  %13635 = vmatprep.subr.bf16.mxu0 %v14970_v49  ;;  %v15006_v49 = vld [vmem:[%s19149_s1 + $0x1378] sm:$0xff]  }
 0x26d   : > { %v13355_v23 = vadd.f32 %v13354_v21, %v13353_v16  ;;  %v13356_v27 = vpop.f32.mrb[46].mxu1  ;;  %13654 = vmatpush3.bf16.msra.mxu1 %v14965_v44  ;;  %v14986_v16 = vld [vmem:[%s19149_s1 + $0x1350] sm:$0xff]   ;;  %v15001_v44 = vld [vmem:[%s19149_s1 + $0x13a8] sm:$0xff]  }
 0x26e   : > { %v13357_v33 = vpop.f32.mrb[47].mxu1  ;;  %13655 = vmatprep.subr.bf16.mxu1 %v14967_v46  ;;  %v15003_v46 = vld [vmem:[%s19149_s1 + $0x13f0] sm:$0xff]  }
 0x26f   : > { %v17535_v31 = vadd.f32 %v13355_v23, %v9804_v26  ;;  %v13358_v35 = vadd.f32 %v13357_v33, %v13356_v27  ;;  %13636 = vmatpush3.bf16.msra.mxu0 %v14972_v51  ;;  %v14990_v27 = vld [vmem:[%s19149_s1 + $0x1358] sm:$0xff]  }
 0x270   : > { %13637 = vmatprep.subr.bf16.mxu0 %v14974_v53  ;;  %v14992_v33 = vld [vmem:[%s19149_s1 + $0x1318] sm:$0xff]   ;;  %v361_v53 = vld [vmem:[%s15647_s23 + $0x268] sm:$0xff] }
 0x271   : > { %v17550_v40 = vadd.f32 %v13358_v35, %v9807_v37  ;;  %13656 = vmatpush3.bf16.msra.mxu1 %v14969_v48  ;;  %v14993_v35 = vld [vmem:[%s19149_s1 + $0x1398] sm:$0xff]   ;;  %v15005_v48 = vld [vmem:[%s19149_s1 + $0x13b0] sm:$0xff]  }
 0x272   : > { %13657 = vmatprep.subr.bf16.mxu1 %v14971_v50  ;;  %v15007_v50 = vld [vmem:[%s19149_s1 + $0x13f8] sm:$0xff]  }
 0x273   : > { %13638 = vmatpush3.bf16.msra.mxu0 %v14976_v55  ;;  %v15008_v51 = vld [vmem:[%s19149_s1 + $0x1338] sm:$0xff]  }
 0x274   : > { %13667 = vmatprep.subr.bf16.mxu0 %v14978_v5  ;;  %v363_v55 = vld [vmem:[%s15647_s23 + $0x278] sm:$0xff]  ;;  %v15014_v5 = vld [vmem:[%s19149_s1 + $0x1448] sm:$0xff]  }
 0x275   : > { %13658 = vmatpush3.bf16.msra.mxu1 %v14973_v52  ;;  %v15009_v52 = vld [vmem:[%s19149_s1 + $0x13b8] sm:$0xff]   ;;  %v619_v60 = vpack.c.bf16 %v491_v57, %v363_v55  ;;  %v364_v55 = vld [vmem:[%s15647_s23 + $0x280] sm:$0xff]  ;;  %v366_v57 = vld [vmem:[%s15647_s23 + $0x290] sm:$0xff] }
 0x276   : > { %13659 = vmatprep.subr.bf16.mxu1 %v14975_v54  ;;  %10376 = vmatmul.mubr.bf16.vlgmr.msra.gmra.mrb[72].mxu0 %v612_v3  ;;  %v489_v54 = vld [vmem:[%s15647_s23 + $0x668] sm:$0xff]  ;;  %v15012_v3 = vld [vmem:[%s19149_s1 + $0x1400] sm:$0xff]  }
 0x277   : > { %13668 = vmatpush3.bf16.msra.mxu0 %v14980_v7  ;;  %v15015_v7 = vld [vmem:[%s19149_s1 + $0x14c8] sm:$0xff]  }
 0x278   : > { %13669 = vmatprep.subr.bf16.mxu0 %v14982_v9  ;;  %v15016_v9 = vld [vmem:[%s19149_s1 + $0x1408] sm:$0xff]  }
 0x279   : > { %13660 = vmatpush3.bf16.msra.mxu1 %v14977_v56  ;;  %v617_v56 = vpack.c.bf16 %v489_v54, %v361_v53 }
 0x27a   : > { %13689 = vmatprep.subr.bf16.mxu1 %v14979_v6 }
 0x27b   : > { %13670 = vmatpush3.bf16.msra.mxu0 %v14984_v12  ;;  %10457 = vmatprep.mubr.bf16.mxu0 %v617_v56  ;;  %v492_v56 = vld [vmem:[%s15647_s23 + $0x680] sm:$0xff] }
 0x27c   : > { %10417 = vmatmul.mubr.bf16.vlgmr.msra.gmra.mrb[72].mxu1 %v614_v4  ;;  %13671 = vmatprep.subr.bf16.mxu0 %v14986_v16  ;;  %v15013_v4 = vld [vmem:[%s19149_s1 + $0x1480] sm:$0xff]   ;;  %v620_v58 = vpack.c.bf16 %v492_v56, %v364_v55 }
 0x27d   : > { %13690 = vmatpush3.bf16.msra.mxu1 %v14981_v8  ;;  %10498 = vmatprep.mubr.bf16.mxu1 %v619_v60  ;;  %v622_v60 = vpack.c.bf16 %v494_v59, %v366_v57  ;;  %v15074_v57 = vld [vmem:[%s19149_s1 + $0x1640] sm:$0xff]  }
 0x27e   : > { %13691 = vmatprep.subr.bf16.mxu1 %v14983_v10  ;;  %v15076_v59 = vld [vmem:[%s19149_s1 + $0x1600] sm:$0xff]  }
 0x27f   : > { %13672 = vmatpush3.bf16.msra.mxu0 %v14988_v22  ;;  %v15021_v22 = vld [vmem:[%s19149_s1 + $0x1490] sm:$0xff]  }
 0x280   : > { %13673 = vmatprep.subr.bf16.mxu0 %v14990_v27 }
 0x281   : > { %13692 = vmatpush3.bf16.msra.mxu1 %v14985_v14  ;;  %v15018_v14 = vld [vmem:[%s19149_s1 + $0x1450] sm:$0xff]  }
 0x282   : > { %13693 = vmatprep.subr.bf16.mxu1 %v14987_v19 }
 0x283   : > { %v13375_v11 = vpop.f32.mrb[48].mxu0  ;;  %13674 = vmatpush3.bf16.msra.mxu0 %v14992_v33  ;;  %v15026_v33 = vld [vmem:[%s19149_s1 + $0x1460] sm:$0xff]  }
 0x284   : > { %v13376_v15 = vpop.f32.mrb[49].mxu0  ;;  %13675 = vmatprep.subr.bf16.mxu0 %v14994_v36  ;;  %v15029_v36 = vld [vmem:[%s19149_s1 + $0x14a0] sm:$0xff]  }
 0x285   : > { %v13377_v17 = vadd.f32 %v13376_v15, %v13375_v11  ;;  %v13378_v21 = vpop.f32.mrb[50].mxu0  ;;  %13694 = vmatpush3.bf16.msra.mxu1 %v14989_v25  ;;  %v15017_v11 = vld [vmem:[%s19149_s1 + $0x1488] sm:$0xff]  }
 0x286   : > { %v13379_v26 = vpop.f32.mrb[51].mxu0 }
 0x287   : > { %v9886_v23 = vadd.f32 %v13377_v17, %v17535_v31  ;;  %v13380_v29 = vadd.f32 %v13379_v26, %v13378_v21  ;;  %v14991_v31 = vld [vmem:[%s19149_s1 + $0x13d8] sm:$0xff]   ;;  %13676 = vmatpush3.bf16.msra.mxu0 %v14996_v39  ;;  %v15019_v17 = vld [vmem:[%s19149_s1 + $0x14d0] sm:$0xff]   ;;  %v15032_v39 = vld [vmem:[%s19149_s1 + $0x1428] sm:$0xff]  }
 0x288   : > { %13695 = vmatprep.subr.bf16.mxu1 %v14991_v31  ;;  %13677 = vmatprep.subr.bf16.mxu0 %v14998_v41  ;;  %v15022_v26 = vld [vmem:[%s19149_s1 + $0x1458] sm:$0xff]   ;;  %v15034_v41 = vld [vmem:[%s19149_s1 + $0x1470] sm:$0xff]  }
 0x289   : > { %v9889_v34 = vadd.f32 %v13380_v29, %v17550_v40  ;;  %13696 = vmatpush3.bf16.msra.mxu1 %v14993_v35  ;;  %v14997_v40 = vld [vmem:[%s19149_s1 + $0x13a0] sm:$0xff]   ;;  %v15025_v31 = vld [vmem:[%s19149_s1 + $0x1498] sm:$0xff]  }
 0x28a   : > { %13697 = vmatprep.subr.bf16.mxu1 %v14995_v38  ;;  %v15028_v35 = vld [vmem:[%s19149_s1 + $0x1420] sm:$0xff]   ;;  %v15031_v38 = vld [vmem:[%s19149_s1 + $0x14e8] sm:$0xff]  }
 0x28b   : > { %v13397_v13 = vpop.f32.mrb[48].mxu1  ;;  %13678 = vmatpush3.bf16.msra.mxu0 %v15000_v43  ;;  %v15036_v43 = vld [vmem:[%s19149_s1 + $0x1430] sm:$0xff]  }
 0x28c   : > { %v13398_v18 = vpop.f32.mrb[49].mxu1  ;;  %13679 = vmatprep.subr.bf16.mxu0 %v15002_v45  ;;  %v15038_v45 = vld [vmem:[%s19149_s1 + $0x1478] sm:$0xff]  }
 0x28d   : > { %v13399_v20 = vadd.f32 %v13398_v18, %v13397_v13  ;;  %v13400_v24 = vpop.f32.mrb[50].mxu1  ;;  %13698 = vmatpush3.bf16.msra.mxu1 %v14997_v40  ;;  %v15033_v40 = vld [vmem:[%s19149_s1 + $0x14a8] sm:$0xff]  }
 0x28e   : > { %v13401_v30 = vpop.f32.mrb[51].mxu1  ;;  %13699 = vmatprep.subr.bf16.mxu1 %v14999_v42  ;;  %v15035_v42 = vld [vmem:[%s19149_s1 + $0x14f0] sm:$0xff]  }
 0x28f   : > { %v17648_v28 = vadd.f32 %v13399_v20, %v9886_v23  ;;  %v13402_v32 = vadd.f32 %v13401_v30, %v13400_v24  ;;  %13680 = vmatpush3.bf16.msra.mxu0 %v15004_v47  ;;  %v15020_v20 = vld [vmem:[%s19149_s1 + $0x1410] sm:$0xff]   ;;  %v15024_v30 = vld [vmem:[%s19149_s1 + $0x1418] sm:$0xff]  }
 0x290   : > { %13681 = vmatprep.subr.bf16.mxu0 %v15006_v49  ;;  %v15040_v47 = vld [vmem:[%s19149_s1 + $0x1438] sm:$0xff]   ;;  %v365_v49 = vld [vmem:[%s15647_s23 + $0x288] sm:$0xff] }
 0x291   : > { %v17663_v37 = vadd.f32 %v13402_v32, %v9889_v34  ;;  %13700 = vmatpush3.bf16.msra.mxu1 %v15001_v44  ;;  %v15027_v34 = vld [vmem:[%s19149_s1 + $0x14e0] sm:$0xff]   ;;  %v15037_v44 = vld [vmem:[%s19149_s1 + $0x14b0] sm:$0xff]  }
 0x292   : > { %13701 = vmatprep.subr.bf16.mxu1 %v15003_v46  ;;  %v15039_v46 = vld [vmem:[%s19149_s1 + $0x14f8] sm:$0xff]  }
 0x293   : > { %13682 = vmatpush3.bf16.msra.mxu0 %v15008_v51  ;;  %v367_v51 = vld [vmem:[%s15647_s23 + $0x298] sm:$0xff] }
 0x294   : > { %13711 = vmatprep.subr.bf16.mxu0 %v15010_v1  ;;  %v15046_v1 = vld [vmem:[%s19149_s1 + $0x1548] sm:$0xff]  }
 0x295   : > { %13702 = vmatpush3.bf16.msra.mxu1 %v15005_v48  ;;  %v15041_v48 = vld [vmem:[%s19149_s1 + $0x14b8] sm:$0xff]  }
 0x296   : > { %13703 = vmatprep.subr.bf16.mxu1 %v15007_v50  ;;  %10458 = vmatmul.mubr.bf16.vlgmr.msra.gmra.mrb[76].mxu0 %v616_v61  ;;  %v493_v50 = vld [vmem:[%s15647_s23 + $0x688] sm:$0xff]  ;;  %v15042_v61 = vld [vmem:[%s19149_s1 + $0x1540] sm:$0xff]  }
 0x297   : > { %13712 = vmatpush3.bf16.msra.mxu0 %v15012_v3  ;;  %v621_v53 = vpack.c.bf16 %v493_v50, %v365_v49  ;;  %v15047_v3 = vld [vmem:[%s19149_s1 + $0x15c8] sm:$0xff]   ;;  %v499_v49 = vld [vmem:[%s15647_s23 + $0x6b8] sm:$0xff]  ;;  %v368_v50 = vld [vmem:[%s15647_s23 + $0x2a0] sm:$0xff] }
 0x298   : > { %13713 = vmatprep.subr.bf16.mxu0 %v15014_v5  ;;  %v15048_v5 = vld [vmem:[%s19149_s1 + $0x1508] sm:$0xff]  }
 0x299   : > { %13704 = vmatpush3.bf16.msra.mxu1 %v15009_v52  ;;  %v495_v52 = vld [vmem:[%s15647_s23 + $0x698] sm:$0xff]  ;;  %10539 = vmatprep.mubr.bf16.mxu0 %v621_v53  ;;  %v370_v53 = vld [vmem:[%s15647_s23 + $0x2b0] sm:$0xff] }
 0x29a   : > { %13733 = vmatprep.subr.bf16.mxu1 %v15011_v2  ;;  %v623_v54 = vpack.c.bf16 %v495_v52, %v367_v51  ;;  %v496_v52 = vld [vmem:[%s15647_s23 + $0x6a0] sm:$0xff] }
 0x29b   : > { %13714 = vmatpush3.bf16.msra.mxu0 %v15016_v9  ;;  %v624_v55 = vpack.c.bf16 %v496_v52, %v368_v50  ;;  %v374_v50 = vld [vmem:[%s15647_s23 + $0x2d0] sm:$0xff] }
 0x29c   : > { %10499 = vmatmul.mubr.bf16.vlgmr.msra.gmra.mrb[76].mxu1 %v618_v0  ;;  %13715 = vmatprep.subr.bf16.mxu0 %v15018_v14  ;;  %v15045_v0 = vld [vmem:[%s19149_s1 + $0x1580] sm:$0xff]  }
 0x29d   : > { %13734 = vmatpush3.bf16.msra.mxu1 %v15013_v4  ;;  %10580 = vmatprep.mubr.bf16.mxu1 %v623_v54  ;;  %v498_v54 = vld [vmem:[%s15647_s23 + $0x6b0] sm:$0xff] }
 0x29e   : > { %13735 = vmatprep.subr.bf16.mxu1 %v15015_v7  ;;  %v15049_v7 = vld [vmem:[%s19149_s1 + $0x1588] sm:$0xff]   ;;  %v626_v56 = vpack.c.bf16 %v498_v54, %v370_v53  ;;  %v15106_v53 = vld [vmem:[%s19149_s1 + $0x1740] sm:$0xff]  }
 0x29f   : > { %13716 = vmatpush3.bf16.msra.mxu0 %v15020_v20  ;;  %v15107_v54 = vld [vmem:[%s19149_s1 + $0x17c0] sm:$0xff]  }
 0x2a0   : > { %13717 = vmatprep.subr.bf16.mxu0 %v15022_v26  ;;  %v15056_v26 = vld [vmem:[%s19149_s1 + $0x1518] sm:$0xff]  }
 0x2a1   : > { %13736 = vmatpush3.bf16.msra.mxu1 %v15017_v11 }
 0x2a2   : > { %13737 = vmatprep.subr.bf16.mxu1 %v15019_v17 }
 0x2a3   : > { %v13419_v6 = vpop.f32.mrb[52].mxu0  ;;  %13718 = vmatpush3.bf16.msra.mxu0 %v15024_v30  ;;  %v15059_v30 = vld [vmem:[%s19149_s1 + $0x15e0] sm:$0xff]  }
 0x2a4   : > { %v13420_v10 = vpop.f32.mrb[53].mxu0  ;;  %13719 = vmatprep.subr.bf16.mxu0 %v15026_v33  ;;  %v15062_v33 = vld [vmem:[%s19149_s1 + $0x1568] sm:$0xff]  }
 0x2a5   : > { %v13421_v12 = vadd.f32 %v13420_v10, %v13419_v6  ;;  %v13422_v16 = vpop.f32.mrb[54].mxu0  ;;  %13738 = vmatpush3.bf16.msra.mxu1 %v15021_v22  ;;  %v15050_v10 = vld [vmem:[%s19149_s1 + $0x1550] sm:$0xff]   ;;  %v15054_v22 = vld [vmem:[%s19149_s1 + $0x1558] sm:$0xff]  }
 0x2a6   : > { %v13423_v21 = vpop.f32.mrb[55].mxu0 }
 0x2a7   : > { %v9968_v18 = vadd.f32 %v13421_v12, %v17648_v28  ;;  %v13424_v24 = vadd.f32 %v13423_v21, %v13422_v16  ;;  %v15023_v28 = vld [vmem:[%s19149_s1 + $0x14d8] sm:$0xff]   ;;  %13720 = vmatpush3.bf16.msra.mxu0 %v15028_v35  ;;  %v15052_v16 = vld [vmem:[%s19149_s1 + $0x1510] sm:$0xff]   ;;  %v15064_v35 = vld [vmem:[%s19149_s1 + $0x1528] sm:$0xff]  }
 0x2a8   : > { %13739 = vmatprep.subr.bf16.mxu1 %v15023_v28 }
 0x2a9   : > { %v9971_v29 = vadd.f32 %v13424_v24, %v17663_v37  ;;  %13740 = vmatpush3.bf16.msra.mxu1 %v15025_v31  ;;  %v15030_v37 = vld [vmem:[%s19149_s1 + $0x1468] sm:$0xff]   ;;  %v15055_v24 = vld [vmem:[%s19149_s1 + $0x15d8] sm:$0xff]   ;;  %v15060_v31 = vld [vmem:[%s19149_s1 + $0x1520] sm:$0xff]  }
 0x2aa   : > { %13741 = vmatprep.subr.bf16.mxu1 %v15027_v34  ;;  %13721 = vmatprep.subr.bf16.mxu0 %v15030_v37  ;;  %v15063_v34 = vld [vmem:[%s19149_s1 + $0x15e8] sm:$0xff]   ;;  %v15066_v37 = vld [vmem:[%s19149_s1 + $0x1570] sm:$0xff]  }
 0x2ab   : > { %v13441_v8 = vpop.f32.mrb[52].mxu1  ;;  %13722 = vmatpush3.bf16.msra.mxu0 %v15032_v39  ;;  %v15068_v39 = vld [vmem:[%s19149_s1 + $0x1530] sm:$0xff]  }
 0x2ac   : > { %v13442_v13 = vpop.f32.mrb[53].mxu1  ;;  %13723 = vmatprep.subr.bf16.mxu0 %v15034_v41  ;;  %v15070_v41 = vld [vmem:[%s19149_s1 + $0x1578] sm:$0xff]  }
 0x2ad   : > { %v13443_v15 = vadd.f32 %v13442_v13, %v13441_v8  ;;  %v13444_v19 = vpop.f32.mrb[54].mxu1  ;;  %13742 = vmatpush3.bf16.msra.mxu1 %v15029_v36  ;;  %v15051_v13 = vld [vmem:[%s19149_s1 + $0x15d0] sm:$0xff]   ;;  %v15065_v36 = vld [vmem:[%s19149_s1 + $0x15a8] sm:$0xff]  }
 0x2ae   : > { %v13445_v25 = vpop.f32.mrb[55].mxu1  ;;  %13743 = vmatprep.subr.bf16.mxu1 %v15031_v38  ;;  %v15067_v38 = vld [vmem:[%s19149_s1 + $0x15f0] sm:$0xff]  }
 0x2af   : > { %v17755_v23 = vadd.f32 %v13443_v15, %v9968_v18  ;;  %v13446_v27 = vadd.f32 %v13445_v25, %v13444_v19  ;;  %13724 = vmatpush3.bf16.msra.mxu0 %v15036_v43  ;;  %v15053_v18 = vld [vmem:[%s19149_s1 + $0x1590] sm:$0xff]   ;;  %v15072_v43 = vld [vmem:[%s19149_s1 + $0x1538] sm:$0xff]  }
 0x2b0   : > { %13725 = vmatprep.subr.bf16.mxu0 %v15038_v45  ;;  %v369_v45 = vld [vmem:[%s15647_s23 + $0x2a8] sm:$0xff] }
 0x2b1   : > { %v17770_v32 = vadd.f32 %v13446_v27, %v9971_v29  ;;  %13744 = vmatpush3.bf16.msra.mxu1 %v15033_v40  ;;  %v15057_v27 = vld [vmem:[%s19149_s1 + $0x1598] sm:$0xff]   ;;  %v15058_v29 = vld [vmem:[%s19149_s1 + $0x1560] sm:$0xff]   ;;  %v15069_v40 = vld [vmem:[%s19149_s1 + $0x15b0] sm:$0xff]  }
 0x2b2   : > { %13745 = vmatprep.subr.bf16.mxu1 %v15035_v42  ;;  %v15071_v42 = vld [vmem:[%s19149_s1 + $0x15f8] sm:$0xff]  }
 0x2b3   : > { %13726 = vmatpush3.bf16.msra.mxu0 %v15040_v47 }
 0x2b4   : > { %13755 = vmatprep.subr.bf16.mxu0 %v15042_v61  ;;  %v15078_v61 = vld [vmem:[%s19149_s1 + $0x1648] sm:$0xff]  }
 0x2b5   : > { %13746 = vmatpush3.bf16.msra.mxu1 %v15037_v44  ;;  %v15073_v44 = vld [vmem:[%s19149_s1 + $0x15b8] sm:$0xff]  }
 0x2b6   : > { %13747 = vmatprep.subr.bf16.mxu1 %v15039_v46  ;;  %10540 = vmatmul.mubr.bf16.vlgmr.msra.gmra.mrb[80].mxu0 %v620_v58  ;;  %v497_v46 = vld [vmem:[%s15647_s23 + $0x6a8] sm:$0xff]  ;;  %v15075_v58 = vld [vmem:[%s19149_s1 + $0x16c0] sm:$0xff]  }
 0x2b7   : > { %13756 = vmatpush3.bf16.msra.mxu0 %v15044_v63  ;;  %v625_v47 = vpack.c.bf16 %v497_v46, %v369_v45  ;;  %v503_v45 = vld [vmem:[%s15647_s23 + $0x6d8] sm:$0xff]  ;;  %v372_v46 = vld [vmem:[%s15647_s23 + $0x2c0] sm:$0xff] }
 0x2b8   : > { %13757 = vmatprep.subr.bf16.mxu0 %v15046_v1 }
 0x2b9   : > { %13748 = vmatpush3.bf16.msra.mxu1 %v15041_v48  ;;  %v371_v48 = vld [vmem:[%s15647_s23 + $0x2b8] sm:$0xff]  ;;  %10621 = vmatprep.mubr.bf16.mxu0 %v625_v47  ;;  %v500_v47 = vld [vmem:[%s15647_s23 + $0x6c0] sm:$0xff] }
 0x2ba   : > { %13777 = vmatprep.subr.bf16.mxu1 %v15043_v62  ;;  %v627_v51 = vpack.c.bf16 %v499_v49, %v371_v48  ;;  %v15079_v62 = vld [vmem:[%s19149_s1 + $0x16c8] sm:$0xff]   ;;  %v628_v49 = vpack.c.bf16 %v500_v47, %v372_v46  ;;  %v506_v47 = vld [vmem:[%s15647_s23 + $0x6f0] sm:$0xff] }
 0x2bb   : > { %13758 = vmatpush3.bf16.msra.mxu0 %v15048_v5 }
 0x2bc   : > { %10581 = vmatmul.mubr.bf16.vlgmr.msra.gmra.mrb[80].mxu1 %v622_v60  ;;  %13759 = vmatprep.subr.bf16.mxu0 %v15050_v10  ;;  %v15077_v60 = vld [vmem:[%s19149_s1 + $0x1680] sm:$0xff]   ;;  %v15084_v10 = vld [vmem:[%s19149_s1 + $0x1610] sm:$0xff]  }
 0x2bd   : > { %13778 = vmatpush3.bf16.msra.mxu1 %v15045_v0  ;;  %10662 = vmatprep.mubr.bf16.mxu1 %v627_v51  ;;  %v15080_v0 = vld [vmem:[%s19149_s1 + $0x1608] sm:$0xff]   ;;  %v502_v51 = vld [vmem:[%s15647_s23 + $0x6d0] sm:$0xff] }
 0x2be   : > { %13779 = vmatprep.subr.bf16.mxu1 %v15047_v3  ;;  %v630_v52 = vpack.c.bf16 %v502_v51, %v374_v50  ;;  %v15139_v50 = vld [vmem:[%s19149_s1 + $0x18c0] sm:$0xff]  }
 0x2bf   : > { %13760 = vmatpush3.bf16.msra.mxu0 %v15052_v16  ;;  %v15140_v51 = vld [vmem:[%s19149_s1 + $0x1800] sm:$0xff]  }
 0x2c0   : > { %13761 = vmatprep.subr.bf16.mxu0 %v15054_v22 }
 0x2c1   : > { %13780 = vmatpush3.bf16.msra.mxu1 %v15049_v7  ;;  %v15083_v7 = vld [vmem:[%s19149_s1 + $0x16d0] sm:$0xff]  }
 0x2c2   : > { %13781 = vmatprep.subr.bf16.mxu1 %v15051_v13  ;;  %v15085_v13 = vld [vmem:[%s19149_s1 + $0x1690] sm:$0xff]  }
 0x2c3   : > { %v13463_v2 = vpop.f32.mrb[56].mxu0  ;;  %13762 = vmatpush3.bf16.msra.mxu0 %v15056_v26  ;;  %v15091_v26 = vld [vmem:[%s19149_s1 + $0x16e0] sm:$0xff]  }
 0x2c4   : > { %v13464_v6 = vpop.f32.mrb[57].mxu0  ;;  %13763 = vmatprep.subr.bf16.mxu0 %v15058_v29  ;;  %v15094_v29 = vld [vmem:[%s19149_s1 + $0x1668] sm:$0xff]  }
 0x2c5   : > { %v13465_v8 = vadd.f32 %v13464_v6, %v13463_v2  ;;  %v13466_v12 = vpop.f32.mrb[58].mxu0  ;;  %13782 = vmatpush3.bf16.msra.mxu1 %v15053_v18  ;;  %v15081_v2 = vld [vmem:[%s19149_s1 + $0x1688] sm:$0xff]  }
 0x2c6   : > { %v13467_v17 = vpop.f32.mrb[59].mxu0  ;;  %13783 = vmatprep.subr.bf16.mxu1 %v15055_v24  ;;  %v15090_v24 = vld [vmem:[%s19149_s1 + $0x1660] sm:$0xff]  }
 0x2c7   : > { %v10050_v14 = vadd.f32 %v13465_v8, %v17755_v23  ;;  %v13468_v20 = vadd.f32 %v13467_v17, %v13466_v12  ;;  %13764 = vmatpush3.bf16.msra.mxu0 %v15060_v31  ;;  %v15096_v31 = vld [vmem:[%s19149_s1 + $0x1628] sm:$0xff]  }
 0x2c8   : > { %13765 = vmatprep.subr.bf16.mxu0 %v15062_v33  ;;  %v15098_v33 = vld [vmem:[%s19149_s1 + $0x1670] sm:$0xff]  }
 0x2c9   : > { %v10053_v25 = vadd.f32 %v13468_v20, %v17770_v32  ;;  %13784 = vmatpush3.bf16.msra.mxu1 %v15057_v27  ;;  %v15061_v32 = vld [vmem:[%s19149_s1 + $0x15a0] sm:$0xff]  }
 0x2ca   : > { %13785 = vmatprep.subr.bf16.mxu1 %v15059_v30  ;;  %v15092_v27 = vld [vmem:[%s19149_s1 + $0x1620] sm:$0xff]   ;;  %v15095_v30 = vld [vmem:[%s19149_s1 + $0x16e8] sm:$0xff]  }
 0x2cb   : > { %v13485_v4 = vpop.f32.mrb[56].mxu1  ;;  %13766 = vmatpush3.bf16.msra.mxu0 %v15064_v35  ;;  %v15100_v35 = vld [vmem:[%s19149_s1 + $0x1630] sm:$0xff]  }
 0x2cc   : > { %v13486_v9 = vpop.f32.mrb[57].mxu1  ;;  %13767 = vmatprep.subr.bf16.mxu0 %v15066_v37  ;;  %v15102_v37 = vld [vmem:[%s19149_s1 + $0x1678] sm:$0xff]  }
 0x2cd   : > { %v13487_v11 = vadd.f32 %v13486_v9, %v13485_v4  ;;  %v13488_v15 = vpop.f32.mrb[58].mxu1  ;;  %13786 = vmatpush3.bf16.msra.mxu1 %v15061_v32  ;;  %v15082_v4 = vld [vmem:[%s19149_s1 + $0x1650] sm:$0xff]   ;;  %v15097_v32 = vld [vmem:[%s19149_s1 + $0x16a8] sm:$0xff]  }
 0x2ce   : > { %v13489_v21 = vpop.f32.mrb[59].mxu1  ;;  %13787 = vmatprep.subr.bf16.mxu1 %v15063_v34  ;;  %v15099_v34 = vld [vmem:[%s19149_s1 + $0x16f0] sm:$0xff]  }
 0x2cf   : > { %v17865_v19 = vadd.f32 %v13487_v11, %v10050_v14  ;;  %v13490_v23 = vadd.f32 %v13489_v21, %v13488_v15  ;;  %13768 = vmatpush3.bf16.msra.mxu0 %v15068_v39  ;;  %v15086_v15 = vld [vmem:[%s19149_s1 + $0x1658] sm:$0xff]  }
 0x2d0   : > { %13769 = vmatprep.subr.bf16.mxu0 %v15070_v41  ;;  %v15088_v21 = vld [vmem:[%s19149_s1 + $0x1618] sm:$0xff]   ;;  %v373_v41 = vld [vmem:[%s15647_s23 + $0x2c8] sm:$0xff] }
 0x2d1   : > { %v17880_v28 = vadd.f32 %v13490_v23, %v10053_v25  ;;  %13788 = vmatpush3.bf16.msra.mxu1 %v15065_v36  ;;  %v15089_v23 = vld [vmem:[%s19149_s1 + $0x1698] sm:$0xff]   ;;  %v15101_v36 = vld [vmem:[%s19149_s1 + $0x16b0] sm:$0xff]  }
 0x2d2   : > { %13789 = vmatprep.subr.bf16.mxu1 %v15067_v38  ;;  %v15103_v38 = vld [vmem:[%s19149_s1 + $0x16f8] sm:$0xff]  }
 0x2d3   : > { %13770 = vmatpush3.bf16.msra.mxu0 %v15072_v43  ;;  %v15104_v39 = vld [vmem:[%s19149_s1 + $0x1638] sm:$0xff]  }
 0x2d4   : > { %13799 = vmatprep.subr.bf16.mxu0 %v15074_v57  ;;  %v375_v43 = vld [vmem:[%s15647_s23 + $0x2d8] sm:$0xff]  ;;  %v15110_v57 = vld [vmem:[%s19149_s1 + $0x1748] sm:$0xff]  }
 0x2d5   : > { %13790 = vmatpush3.bf16.msra.mxu1 %v15069_v40  ;;  %v15105_v40 = vld [vmem:[%s19149_s1 + $0x16b8] sm:$0xff]   ;;  %v631_v48 = vpack.c.bf16 %v503_v45, %v375_v43  ;;  %v376_v43 = vld [vmem:[%s15647_s23 + $0x2e0] sm:$0xff]  ;;  %v378_v45 = vld [vmem:[%s15647_s23 + $0x2f0] sm:$0xff] }
 0x2d6   : > { %13791 = vmatprep.subr.bf16.mxu1 %v15071_v42  ;;  %10622 = vmatmul.mubr.bf16.vlgmr.msra.gmra.mrb[84].mxu0 %v624_v55  ;;  %v501_v42 = vld [vmem:[%s15647_s23 + $0x6c8] sm:$0xff]  ;;  %v15108_v55 = vld [vmem:[%s19149_s1 + $0x1700] sm:$0xff]  }
 0x2d7   : > { %13800 = vmatpush3.bf16.msra.mxu0 %v15076_v59  ;;  %v15111_v59 = vld [vmem:[%s19149_s1 + $0x17c8] sm:$0xff]  }
 0x2d8   : > { %13801 = vmatprep.subr.bf16.mxu0 %v15078_v61  ;;  %v15112_v61 = vld [vmem:[%s19149_s1 + $0x1708] sm:$0xff]  }
 0x2d9   : > { %13792 = vmatpush3.bf16.msra.mxu1 %v15073_v44  ;;  %v629_v44 = vpack.c.bf16 %v501_v42, %v373_v41 }
 0x2da   : > { %13821 = vmatprep.subr.bf16.mxu1 %v15075_v58 }
 0x2db   : > { %13802 = vmatpush3.bf16.msra.mxu0 %v15080_v0  ;;  %10703 = vmatprep.mubr.bf16.mxu0 %v629_v44  ;;  %v504_v44 = vld [vmem:[%s15647_s23 + $0x6e0] sm:$0xff] }
 0x2dc   : > { %10663 = vmatmul.mubr.bf16.vlgmr.msra.gmra.mrb[84].mxu1 %v626_v56  ;;  %13803 = vmatprep.subr.bf16.mxu0 %v15082_v4  ;;  %v15109_v56 = vld [vmem:[%s19149_s1 + $0x1780] sm:$0xff]   ;;  %v632_v46 = vpack.c.bf16 %v504_v44, %v376_v43 }
 0x2dd   : > { %13822 = vmatpush3.bf16.msra.mxu1 %v15077_v60  ;;  %10744 = vmatprep.mubr.bf16.mxu1 %v631_v48  ;;  %v634_v48 = vpack.c.bf16 %v506_v47, %v378_v45  ;;  %v15170_v45 = vld [vmem:[%s19149_s1 + $0x1940] sm:$0xff]  }
 0x2de   : > { %13823 = vmatprep.subr.bf16.mxu1 %v15079_v62  ;;  %v15172_v47 = vld [vmem:[%s19149_s1 + $0x1900] sm:$0xff]  }
 0x2df   : > { %13804 = vmatpush3.bf16.msra.mxu0 %v15084_v10  ;;  %v15117_v10 = vld [vmem:[%s19149_s1 + $0x1790] sm:$0xff]  }
 0x2e0   : > { %13805 = vmatprep.subr.bf16.mxu0 %v15086_v15 }
 0x2e1   : > { %13824 = vmatpush3.bf16.msra.mxu1 %v15081_v2  ;;  %v15114_v2 = vld [vmem:[%s19149_s1 + $0x1750] sm:$0xff]  }
 0x2e2   : > { %13825 = vmatprep.subr.bf16.mxu1 %v15083_v7 }
 0x2e3   : > { %v13507_v63 = vpop.f32.mrb[60].mxu0  ;;  %13806 = vmatpush3.bf16.msra.mxu0 %v15088_v21  ;;  %v15122_v21 = vld [vmem:[%s19149_s1 + $0x1760] sm:$0xff]  }
 0x2e4   : > { %v13508_v3 = vpop.f32.mrb[61].mxu0  ;;  %13807 = vmatprep.subr.bf16.mxu0 %v15090_v24  ;;  %v15125_v24 = vld [vmem:[%s19149_s1 + $0x17a0] sm:$0xff]  }
 0x2e5   : > { %v13509_v5 = vadd.f32 %v13508_v3, %v13507_v63  ;;  %v13510_v9 = vpop.f32.mrb[62].mxu0  ;;  %13826 = vmatpush3.bf16.msra.mxu1 %v15085_v13  ;;  %v15113_v63 = vld [vmem:[%s19149_s1 + $0x1788] sm:$0xff]  }
 0x2e6   : > { %v13511_v14 = vpop.f32.mrb[63].mxu0 }
 0x2e7   : > { %v10132_v11 = vadd.f32 %v13509_v5, %v17865_v19  ;;  %v13512_v17 = vadd.f32 %v13511_v14, %v13510_v9  ;;  %v15087_v19 = vld [vmem:[%s19149_s1 + $0x16d8] sm:$0xff]   ;;  %13808 = vmatpush3.bf16.msra.mxu0 %v15092_v27  ;;  %v15115_v5 = vld [vmem:[%s19149_s1 + $0x17d0] sm:$0xff]   ;;  %v15128_v27 = vld [vmem:[%s19149_s1 + $0x1728] sm:$0xff]  }
 0x2e8   : > { %13827 = vmatprep.subr.bf16.mxu1 %v15087_v19  ;;  %13809 = vmatprep.subr.bf16.mxu0 %v15094_v29  ;;  %v15118_v14 = vld [vmem:[%s19149_s1 + $0x1758] sm:$0xff]   ;;  %v15130_v29 = vld [vmem:[%s19149_s1 + $0x1770] sm:$0xff]  }
 0x2e9   : > { %v10135_v22 = vadd.f32 %v13512_v17, %v17880_v28  ;;  %13828 = vmatpush3.bf16.msra.mxu1 %v15089_v23  ;;  %v15093_v28 = vld [vmem:[%s19149_s1 + $0x16a0] sm:$0xff]   ;;  %v15121_v19 = vld [vmem:[%s19149_s1 + $0x1798] sm:$0xff]  }
 0x2ea   : > { %13829 = vmatprep.subr.bf16.mxu1 %v15091_v26  ;;  %v15124_v23 = vld [vmem:[%s19149_s1 + $0x1720] sm:$0xff]   ;;  %v15127_v26 = vld [vmem:[%s19149_s1 + $0x17e8] sm:$0xff]  }
 0x2eb   : > { %13810 = vmatpush3.bf16.msra.mxu0 %v15096_v31  ;;  %v15132_v31 = vld [vmem:[%s19149_s1 + $0x1730] sm:$0xff]  }
 0x2ec   : > { %v13529_v1 = vpop.f32.mrb[60].mxu1  ;;  %13811 = vmatprep.subr.bf16.mxu0 %v15098_v33  ;;  %v15134_v33 = vld [vmem:[%s19149_s1 + $0x1778] sm:$0xff]  }
 0x2ed   : > { %v13530_v6 = vpop.f32.mrb[61].mxu1  ;;  %13830 = vmatpush3.bf16.msra.mxu1 %v15093_v28  ;;  %v15129_v28 = vld [vmem:[%s19149_s1 + $0x17a8] sm:$0xff]  }
 0x2ee   : > { %v13531_v8 = vadd.f32 %v13530_v6, %v13529_v1  ;;  %v13532_v12 = vpop.f32.mrb[62].mxu1  ;;  %13831 = vmatprep.subr.bf16.mxu1 %v15095_v30  ;;  %v15131_v30 = vld [vmem:[%s19149_s1 + $0x17f0] sm:$0xff]  }
 0x2ef   : > { %v13533_v18 = vpop.f32.mrb[63].mxu1  ;;  %13812 = vmatpush3.bf16.msra.mxu0 %v15100_v35  ;;  %v15136_v35 = vld [vmem:[%s19149_s1 + $0x1738] sm:$0xff]  }
 0x2f0   : > { %v17978_v16 = vadd.f32 %v13531_v8, %v10132_v11  ;;  %v13534_v20 = vadd.f32 %v13533_v18, %v13532_v12  ;;  %13813 = vmatprep.subr.bf16.mxu0 %v15102_v37  ;;  %v15116_v8 = vld [vmem:[%s19149_s1 + $0x1710] sm:$0xff]   ;;  %v15120_v18 = vld [vmem:[%s19149_s1 + $0x1718] sm:$0xff]   ;;  %v377_v37 = vld [vmem:[%s15647_s23 + $0x2e8] sm:$0xff] }
 0x2f1   : > { %13832 = vmatpush3.bf16.msra.mxu1 %v15097_v32  ;;  %v15133_v32 = vld [vmem:[%s19149_s1 + $0x17b0] sm:$0xff]  }
 0x2f2   : > { %v17993_v25 = vadd.f32 %v13534_v20, %v10135_v22  ;;  %13833 = vmatprep.subr.bf16.mxu1 %v15099_v34  ;;  %v15123_v22 = vld [vmem:[%s19149_s1 + $0x17e0] sm:$0xff]   ;;  %v15135_v34 = vld [vmem:[%s19149_s1 + $0x17f8] sm:$0xff]  }
 0x2f3   : > { %13814 = vmatpush3.bf16.msra.mxu0 %v15104_v39  ;;  %v379_v39 = vld [vmem:[%s15647_s23 + $0x2f8] sm:$0xff] }
 0x2f4   : > { %13843 = vmatprep.subr.bf16.mxu0 %v15106_v53  ;;  %v15142_v53 = vld [vmem:[%s19149_s1 + $0x1848] sm:$0xff]  }
 0x2f5   : > { %13834 = vmatpush3.bf16.msra.mxu1 %v15101_v36  ;;  %v15137_v36 = vld [vmem:[%s19149_s1 + $0x17b8] sm:$0xff]  }
 0x2f6   : > { %13835 = vmatprep.subr.bf16.mxu1 %v15103_v38  ;;  %10704 = vmatmul.mubr.bf16.vlgmr.msra.gmra.mrb[88].mxu0 %v628_v49  ;;  %v505_v38 = vld [vmem:[%s15647_s23 + $0x6e8] sm:$0xff]  ;;  %v15138_v49 = vld [vmem:[%s19149_s1 + $0x1840] sm:$0xff]  }
 0x2f7   : > { %13844 = vmatpush3.bf16.msra.mxu0 %v15108_v55  ;;  %v633_v41 = vpack.c.bf16 %v505_v38, %v377_v37  ;;  %v15143_v55 = vld [vmem:[%s19149_s1 + $0x18c8] sm:$0xff]   ;;  %v511_v37 = vld [vmem:[%s15647_s23 + $0x718] sm:$0xff]  ;;  %v380_v38 = vld [vmem:[%s15647_s23 + $0x300] sm:$0xff] }
 0x2f8   : > { %13845 = vmatprep.subr.bf16.mxu0 %v15110_v57  ;;  %v15144_v57 = vld [vmem:[%s19149_s1 + $0x1808] sm:$0xff]  }
 0x2f9   : > { %13836 = vmatpush3.bf16.msra.mxu1 %v15105_v40  ;;  %v507_v40 = vld [vmem:[%s15647_s23 + $0x6f8] sm:$0xff]  ;;  %10785 = vmatprep.mubr.bf16.mxu0 %v633_v41  ;;  %v382_v41 = vld [vmem:[%s15647_s23 + $0x310] sm:$0xff] }
 0x2fa   : > { %13865 = vmatprep.subr.bf16.mxu1 %v15107_v54  ;;  %v635_v42 = vpack.c.bf16 %v507_v40, %v379_v39  ;;  %v508_v40 = vld [vmem:[%s15647_s23 + $0x700] sm:$0xff] }
 0x2fb   : > { %13846 = vmatpush3.bf16.msra.mxu0 %v15112_v61  ;;  %v636_v43 = vpack.c.bf16 %v508_v40, %v380_v38  ;;  %v386_v38 = vld [vmem:[%s15647_s23 + $0x330] sm:$0xff] }
 0x2fc   : > { %10745 = vmatmul.mubr.bf16.vlgmr.msra.gmra.mrb[88].mxu1 %v630_v52  ;;  %13847 = vmatprep.subr.bf16.mxu0 %v15114_v2  ;;  %v15141_v52 = vld [vmem:[%s19149_s1 + $0x1880] sm:$0xff]  }
 0x2fd   : > { %13866 = vmatpush3.bf16.msra.mxu1 %v15109_v56  ;;  %10826 = vmatprep.mubr.bf16.mxu1 %v635_v42  ;;  %v510_v42 = vld [vmem:[%s15647_s23 + $0x710] sm:$0xff] }
 0x2fe   : > { %13867 = vmatprep.subr.bf16.mxu1 %v15111_v59  ;;  %v15145_v59 = vld [vmem:[%s19149_s1 + $0x1888] sm:$0xff]   ;;  %v638_v44 = vpack.c.bf16 %v510_v42, %v382_v41  ;;  %v15202_v41 = vld [vmem:[%s19149_s1 + $0x1a40] sm:$0xff]  }
 0x2ff   : > { %13848 = vmatpush3.bf16.msra.mxu0 %v15116_v8  ;;  %v15203_v42 = vld [vmem:[%s19149_s1 + $0x1ac0] sm:$0xff]  }
 0x300   : > { %13849 = vmatprep.subr.bf16.mxu0 %v15118_v14  ;;  %v15152_v14 = vld [vmem:[%s19149_s1 + $0x1818] sm:$0xff]  }
 0x301   : > { %13868 = vmatpush3.bf16.msra.mxu1 %v15113_v63 }
 0x302   : > { %13869 = vmatprep.subr.bf16.mxu1 %v15115_v5 }
 0x303   : > { %v13551_v58 = vpop.f32.mrb[64].mxu0  ;;  %13850 = vmatpush3.bf16.msra.mxu0 %v15120_v18  ;;  %v15155_v18 = vld [vmem:[%s19149_s1 + $0x18e0] sm:$0xff]  }
 0x304   : > { %v13552_v62 = vpop.f32.mrb[65].mxu0  ;;  %13851 = vmatprep.subr.bf16.mxu0 %v15122_v21  ;;  %v15158_v21 = vld [vmem:[%s19149_s1 + $0x1868] sm:$0xff]  }
 0x305   : > { %v13553_v0 = vadd.f32 %v13552_v62, %v13551_v58  ;;  %v13554_v4 = vpop.f32.mrb[66].mxu0  ;;  %13870 = vmatpush3.bf16.msra.mxu1 %v15117_v10  ;;  %v15146_v62 = vld [vmem:[%s19149_s1 + $0x1850] sm:$0xff]   ;;  %v15150_v10 = vld [vmem:[%s19149_s1 + $0x1858] sm:$0xff]  }
 0x306   : > { %v13555_v9 = vpop.f32.mrb[67].mxu0 }
 0x307   : > { %v10214_v6 = vadd.f32 %v13553_v0, %v17978_v16  ;;  %v13556_v12 = vadd.f32 %v13555_v9, %v13554_v4  ;;  %v15119_v16 = vld [vmem:[%s19149_s1 + $0x17d8] sm:$0xff]   ;;  %13852 = vmatpush3.bf16.msra.mxu0 %v15124_v23  ;;  %v15148_v4 = vld [vmem:[%s19149_s1 + $0x1810] sm:$0xff]   ;;  %v15160_v23 = vld [vmem:[%s19149_s1 + $0x1828] sm:$0xff]  }
 0x308   : > { %13871 = vmatprep.subr.bf16.mxu1 %v15119_v16 }
 0x309   : > { %v10217_v17 = vadd.f32 %v13556_v12, %v17993_v25  ;;  %13872 = vmatpush3.bf16.msra.mxu1 %v15121_v19  ;;  %v15126_v25 = vld [vmem:[%s19149_s1 + $0x1768] sm:$0xff]   ;;  %v15151_v12 = vld [vmem:[%s19149_s1 + $0x18d8] sm:$0xff]   ;;  %v15156_v19 = vld [vmem:[%s19149_s1 + $0x1820] sm:$0xff]  }
 0x30a   : > { %13873 = vmatprep.subr.bf16.mxu1 %v15123_v22  ;;  %13853 = vmatprep.subr.bf16.mxu0 %v15126_v25  ;;  %v15159_v22 = vld [vmem:[%s19149_s1 + $0x18e8] sm:$0xff]   ;;  %v15162_v25 = vld [vmem:[%s19149_s1 + $0x1870] sm:$0xff]  }
 0x30b   : > { %13854 = vmatpush3.bf16.msra.mxu0 %v15128_v27  ;;  %v15164_v27 = vld [vmem:[%s19149_s1 + $0x1830] sm:$0xff]  }
 0x30c   : > { %13855 = vmatprep.subr.bf16.mxu0 %v15130_v29  ;;  %v15166_v29 = vld [vmem:[%s19149_s1 + $0x1878] sm:$0xff]  }
 0x30d   : > { %13874 = vmatpush3.bf16.msra.mxu1 %v15125_v24  ;;  %v15161_v24 = vld [vmem:[%s19149_s1 + $0x18a8] sm:$0xff]  }
 0x30e   : > { %13875 = vmatprep.subr.bf16.mxu1 %v15127_v26  ;;  %v15163_v26 = vld [vmem:[%s19149_s1 + $0x18f0] sm:$0xff]  }
 0x30f   : > { %v13573_v60 = vpop.f32.mrb[64].mxu1  ;;  %13856 = vmatpush3.bf16.msra.mxu0 %v15132_v31  ;;  %v15168_v31 = vld [vmem:[%s19149_s1 + $0x1838] sm:$0xff]  }
 0x310   : > { %v13574_v1 = vpop.f32.mrb[65].mxu1  ;;  %13857 = vmatprep.subr.bf16.mxu0 %v15134_v33  ;;  %v381_v33 = vld [vmem:[%s15647_s23 + $0x308] sm:$0xff] }
 0x311   : > { %v13575_v3 = vadd.f32 %v13574_v1, %v13573_v60  ;;  %v13576_v7 = vpop.f32.mrb[66].mxu1  ;;  %13876 = vmatpush3.bf16.msra.mxu1 %v15129_v28  ;;  %v15147_v1 = vld [vmem:[%s19149_s1 + $0x18d0] sm:$0xff]  }
 0x312   : > { %v13577_v13 = vpop.f32.mrb[67].mxu1  ;;  %13877 = vmatprep.subr.bf16.mxu1 %v15131_v30  ;;  %v15165_v28 = vld [vmem:[%s19149_s1 + $0x18b0] sm:$0xff]   ;;  %v15167_v30 = vld [vmem:[%s19149_s1 + $0x18f8] sm:$0xff]  }
 0x313   : > { %v18085_v11 = vadd.f32 %v13575_v3, %v10214_v6  ;;  %v13578_v15 = vadd.f32 %v13577_v13, %v13576_v7  ;;  %13858 = vmatpush3.bf16.msra.mxu0 %v15136_v35  ;;  %v15149_v6 = vld [vmem:[%s19149_s1 + $0x1890] sm:$0xff]  }
 0x314   : > { %13887 = vmatprep.subr.bf16.mxu0 %v15138_v49  ;;  %v15174_v49 = vld [vmem:[%s19149_s1 + $0x1948] sm:$0xff]  }
 0x315   : > { %v18100_v20 = vadd.f32 %v13578_v15, %v10217_v17  ;;  %13878 = vmatpush3.bf16.msra.mxu1 %v15133_v32  ;;  %v15153_v15 = vld [vmem:[%s19149_s1 + $0x1898] sm:$0xff]   ;;  %v15154_v17 = vld [vmem:[%s19149_s1 + $0x1860] sm:$0xff]  }
 0x316   : > { %13879 = vmatprep.subr.bf16.mxu1 %v15135_v34  ;;  %10786 = vmatmul.mubr.bf16.vlgmr.msra.gmra.mrb[92].mxu0 %v632_v46  ;;  %v15169_v32 = vld [vmem:[%s19149_s1 + $0x18b8] sm:$0xff]   ;;  %v509_v34 = vld [vmem:[%s15647_s23 + $0x708] sm:$0xff]  ;;  %v15171_v46 = vld [vmem:[%s19149_s1 + $0x19c0] sm:$0xff]  }
 0x317   : > { %13888 = vmatpush3.bf16.msra.mxu0 %v15140_v51  ;;  %v637_v35 = vpack.c.bf16 %v509_v34, %v381_v33  ;;  %v515_v33 = vld [vmem:[%s15647_s23 + $0x738] sm:$0xff]  ;;  %v384_v34 = vld [vmem:[%s15647_s23 + $0x320] sm:$0xff] }
 0x318   : > { %13889 = vmatprep.subr.bf16.mxu0 %v15142_v53 }
 0x319   : > { %13880 = vmatpush3.bf16.msra.mxu1 %v15137_v36  ;;  %v383_v36 = vld [vmem:[%s15647_s23 + $0x318] sm:$0xff]  ;;  %10867 = vmatprep.mubr.bf16.mxu0 %v637_v35  ;;  %v512_v35 = vld [vmem:[%s15647_s23 + $0x720] sm:$0xff] }
 0x31a   : > { %13909 = vmatprep.subr.bf16.mxu1 %v15139_v50  ;;  %v639_v39 = vpack.c.bf16 %v511_v37, %v383_v36  ;;  %v15175_v50 = vld [vmem:[%s19149_s1 + $0x19c8] sm:$0xff]   ;;  %v640_v37 = vpack.c.bf16 %v512_v35, %v384_v34  ;;  %v518_v35 = vld [vmem:[%s15647_s23 + $0x750] sm:$0xff] }
 0x31b   : > { %13890 = vmatpush3.bf16.msra.mxu0 %v15144_v57 }
 0x31c   : > { %10827 = vmatmul.mubr.bf16.vlgmr.msra.gmra.mrb[92].mxu1 %v634_v48  ;;  %13891 = vmatprep.subr.bf16.mxu0 %v15146_v62  ;;  %v15173_v48 = vld [vmem:[%s19149_s1 + $0x1980] sm:$0xff]   ;;  %v15180_v62 = vld [vmem:[%s19149_s1 + $0x1910] sm:$0xff]  }
 0x31d   : > { %13910 = vmatpush3.bf16.msra.mxu1 %v15141_v52  ;;  %10908 = vmatprep.mubr.bf16.mxu1 %v639_v39  ;;  %v15176_v52 = vld [vmem:[%s19149_s1 + $0x1908] sm:$0xff]   ;;  %v514_v39 = vld [vmem:[%s15647_s23 + $0x730] sm:$0xff] }
 0x31e   : > { %13911 = vmatprep.subr.bf16.mxu1 %v15143_v55  ;;  %v642_v40 = vpack.c.bf16 %v514_v39, %v386_v38  ;;  %v15235_v38 = vld [vmem:[%s19149_s1 + $0x1bc0] sm:$0xff]  }
 0x31f   : > { %13892 = vmatpush3.bf16.msra.mxu0 %v15148_v4  ;;  %v15236_v39 = vld [vmem:[%s19149_s1 + $0x1b00] sm:$0xff]  }
 0x320   : > { %13893 = vmatprep.subr.bf16.mxu0 %v15150_v10 }
 0x321   : > { %13912 = vmatpush3.bf16.msra.mxu1 %v15145_v59  ;;  %v15179_v59 = vld [vmem:[%s19149_s1 + $0x19d0] sm:$0xff]  }
 0x322   : > { %13913 = vmatprep.subr.bf16.mxu1 %v15147_v1  ;;  %v15181_v1 = vld [vmem:[%s19149_s1 + $0x1990] sm:$0xff]  }
 0x323   : > { %13894 = vmatpush3.bf16.msra.mxu0 %v15152_v14  ;;  %v15187_v14 = vld [vmem:[%s19149_s1 + $0x19e0] sm:$0xff]  }
 0x324   : > { %13895 = vmatprep.subr.bf16.mxu0 %v15154_v17  ;;  %v15190_v17 = vld [vmem:[%s19149_s1 + $0x1968] sm:$0xff]  }
 0x325   : > { %13914 = vmatpush3.bf16.msra.mxu1 %v15149_v6 }
 0x326   : > { %13915 = vmatprep.subr.bf16.mxu1 %v15151_v12  ;;  %v15186_v12 = vld [vmem:[%s19149_s1 + $0x1960] sm:$0xff]  }
 0x327   : > { %13896 = vmatpush3.bf16.msra.mxu0 %v15156_v19  ;;  %v15192_v19 = vld [vmem:[%s19149_s1 + $0x1928] sm:$0xff]  }
 0x328   : > { %13897 = vmatprep.subr.bf16.mxu0 %v15158_v21  ;;  %v15194_v21 = vld [vmem:[%s19149_s1 + $0x1970] sm:$0xff]  }
 0x329   : > { %v13595_v54 = vpop.f32.mrb[68].mxu0  ;;  %13916 = vmatpush3.bf16.msra.mxu1 %v15153_v15  ;;  %v15188_v15 = vld [vmem:[%s19149_s1 + $0x1920] sm:$0xff]  }
 0x32a   : > { %v13596_v58 = vpop.f32.mrb[69].mxu0  ;;  %13917 = vmatprep.subr.bf16.mxu1 %v15155_v18  ;;  %v15191_v18 = vld [vmem:[%s19149_s1 + $0x19e8] sm:$0xff]  }
 0x32b   : > { %v13597_v60 = vadd.f32 %v13596_v58, %v13595_v54  ;;  %v13598_v0 = vpop.f32.mrb[70].mxu0  ;;  %13898 = vmatpush3.bf16.msra.mxu0 %v15160_v23  ;;  %v15177_v54 = vld [vmem:[%s19149_s1 + $0x1988] sm:$0xff]   ;;  %v15196_v23 = vld [vmem:[%s19149_s1 + $0x1930] sm:$0xff]  }
 0x32c   : > { %v13599_v5 = vpop.f32.mrb[71].mxu0  ;;  %13899 = vmatprep.subr.bf16.mxu0 %v15162_v25  ;;  %v15198_v25 = vld [vmem:[%s19149_s1 + $0x1978] sm:$0xff]  }
 0x32d   : > { %v10296_v2 = vadd.f32 %v13597_v60, %v18085_v11  ;;  %v13600_v8 = vadd.f32 %v13599_v5, %v13598_v0 }
 0x32f   : > { %v13617_v56 = vpop.f32.mrb[68].mxu1  ;;  %v10299_v13 = vadd.f32 %v13600_v8, %v18100_v20  ;;  %v15157_v20 = vld [vmem:[%s19149_s1 + $0x18a0] sm:$0xff]   ;;  %13900 = vmatpush3.bf16.msra.mxu0 %v15164_v27  ;;  %v15200_v27 = vld [vmem:[%s19149_s1 + $0x1938] sm:$0xff]  }
 0x330   : > { %v13618_v61 = vpop.f32.mrb[69].mxu1  ;;  %13918 = vmatpush3.bf16.msra.mxu1 %v15157_v20  ;;  %13901 = vmatprep.subr.bf16.mxu0 %v15166_v29  ;;  %v15193_v20 = vld [vmem:[%s19149_s1 + $0x19a8] sm:$0xff]  }
 0x331   : > { %v13619_v63 = vadd.f32 %v13618_v61, %v13617_v56  ;;  %v13620_v3 = vpop.f32.mrb[70].mxu1  ;;  %13919 = vmatprep.subr.bf16.mxu1 %v15159_v22  ;;  %v15178_v56 = vld [vmem:[%s19149_s1 + $0x1950] sm:$0xff]   ;;  %v385_v29 = vld [vmem:[%s15647_s23 + $0x328] sm:$0xff] }
 0x332   : > { %v13621_v9 = vpop.f32.mrb[71].mxu1  ;;  %v15195_v22 = vld [vmem:[%s19149_s1 + $0x19f0] sm:$0xff]  }
 0x333   : > { %v18195_v7 = vadd.f32 %v13619_v63, %v10296_v2  ;;  %v13622_v11 = vadd.f32 %v13621_v9, %v13620_v3  ;;  %13902 = vmatpush3.bf16.msra.mxu0 %v15168_v31  ;;  %v15182_v3 = vld [vmem:[%s19149_s1 + $0x1958] sm:$0xff]  }
 0x334   : > { %13920 = vmatpush3.bf16.msra.mxu1 %v15161_v24  ;;  %13931 = vmatprep.subr.bf16.mxu0 %v15170_v45  ;;  %v15184_v9 = vld [vmem:[%s19149_s1 + $0x1918] sm:$0xff]   ;;  %v15197_v24 = vld [vmem:[%s19149_s1 + $0x19b0] sm:$0xff]   ;;  %v15206_v45 = vld [vmem:[%s19149_s1 + $0x1a48] sm:$0xff]  }
 0x335   : > { %v18210_v16 = vadd.f32 %v13622_v11, %v10299_v13  ;;  %13921 = vmatprep.subr.bf16.mxu1 %v15163_v26  ;;  %v15185_v11 = vld [vmem:[%s19149_s1 + $0x1998] sm:$0xff]  }
 0x336   : > { %10868 = vmatmul.mubr.bf16.vlgmr.msra.gmra.mrb[96].mxu0 %v636_v43  ;;  %v15199_v26 = vld [vmem:[%s19149_s1 + $0x19f8] sm:$0xff]   ;;  %v15204_v43 = vld [vmem:[%s19149_s1 + $0x1a00] sm:$0xff]  }
 0x337   : > { %13932 = vmatpush3.bf16.msra.mxu0 %v15172_v47  ;;  %v387_v31 = vld [vmem:[%s15647_s23 + $0x338] sm:$0xff]  ;;  %v15207_v47 = vld [vmem:[%s19149_s1 + $0x1ac8] sm:$0xff]  }
 0x338   : > { %13922 = vmatpush3.bf16.msra.mxu1 %v15165_v28  ;;  %13933 = vmatprep.subr.bf16.mxu0 %v15174_v49  ;;  %v15201_v28 = vld [vmem:[%s19149_s1 + $0x19b8] sm:$0xff]   ;;  %v643_v36 = vpack.c.bf16 %v515_v33, %v387_v31  ;;  %v15208_v49 = vld [vmem:[%s19149_s1 + $0x1a08] sm:$0xff]   ;;  %v388_v31 = vld [vmem:[%s15647_s23 + $0x340] sm:$0xff] }
 0x339   : > { %13923 = vmatprep.subr.bf16.mxu1 %v15167_v30  ;;  %v513_v30 = vld [vmem:[%s15647_s23 + $0x728] sm:$0xff]  ;;  %v390_v33 = vld [vmem:[%s15647_s23 + $0x350] sm:$0xff] }
 0x33b   : > { %13934 = vmatpush3.bf16.msra.mxu0 %v15176_v52 }
 0x33c   : > { %13924 = vmatpush3.bf16.msra.mxu1 %v15169_v32  ;;  %13935 = vmatprep.subr.bf16.mxu0 %v15178_v56  ;;  %v641_v32 = vpack.c.bf16 %v513_v30, %v385_v29 }
 0x33d   : > { %13953 = vmatprep.subr.bf16.mxu1 %v15171_v46 }
 0x33e   : > { %10949 = vmatprep.mubr.bf16.mxu0 %v641_v32  ;;  %v516_v32 = vld [vmem:[%s15647_s23 + $0x740] sm:$0xff] }
 0x33f   : > { %10909 = vmatmul.mubr.bf16.vlgmr.msra.gmra.mrb[96].mxu1 %v638_v44  ;;  %13936 = vmatpush3.bf16.msra.mxu0 %v15180_v62  ;;  %v15205_v44 = vld [vmem:[%s19149_s1 + $0x1a80] sm:$0xff]   ;;  %v15213_v62 = vld [vmem:[%s19149_s1 + $0x1a90] sm:$0xff]   ;;  %v644_v34 = vpack.c.bf16 %v516_v32, %v388_v31 }
 0x340   : > { %13954 = vmatpush3.bf16.msra.mxu1 %v15173_v48  ;;  %13937 = vmatprep.subr.bf16.mxu0 %v15182_v3 }
 0x341   : > { %13955 = vmatprep.subr.bf16.mxu1 %v15175_v50  ;;  %10990 = vmatprep.mubr.bf16.mxu1 %v643_v36  ;;  %v646_v36 = vpack.c.bf16 %v518_v35, %v390_v33  ;;  %v15266_v33 = vld [vmem:[%s19149_s1 + $0x1c40] sm:$0xff]  }
 0x342   : > { %v15268_v35 = vld [vmem:[%s19149_s1 + $0x1c00] sm:$0xff]  }
 0x343   : > { %13938 = vmatpush3.bf16.msra.mxu0 %v15184_v9  ;;  %v15218_v9 = vld [vmem:[%s19149_s1 + $0x1a60] sm:$0xff]  }
 0x344   : > { %13956 = vmatpush3.bf16.msra.mxu1 %v15177_v54  ;;  %13939 = vmatprep.subr.bf16.mxu0 %v15186_v12  ;;  %v15210_v54 = vld [vmem:[%s19149_s1 + $0x1a50] sm:$0xff]   ;;  %v15221_v12 = vld [vmem:[%s19149_s1 + $0x1aa0] sm:$0xff]  }
 0x345   : > { %13957 = vmatprep.subr.bf16.mxu1 %v15179_v59 }
 0x347   : > { %13940 = vmatpush3.bf16.msra.mxu0 %v15188_v15  ;;  %v15224_v15 = vld [vmem:[%s19149_s1 + $0x1a28] sm:$0xff]  }
 0x348   : > { %13958 = vmatpush3.bf16.msra.mxu1 %v15181_v1  ;;  %13941 = vmatprep.subr.bf16.mxu0 %v15190_v17  ;;  %v15226_v17 = vld [vmem:[%s19149_s1 + $0x1a70] sm:$0xff]  }
 0x349   : > { %v13639_v51 = vpop.f32.mrb[72].mxu0 }
 0x34a   : > { %v13640_v55 = vpop.f32.mrb[73].mxu0 }
 0x34b   : > { %v13641_v57 = vadd.f32 %v13640_v55, %v13639_v51  ;;  %v13642_v61 = vpop.f32.mrb[74].mxu0  ;;  %13942 = vmatpush3.bf16.msra.mxu0 %v15192_v19  ;;  %v15209_v51 = vld [vmem:[%s19149_s1 + $0x1a88] sm:$0xff]   ;;  %v15228_v19 = vld [vmem:[%s19149_s1 + $0x1a30] sm:$0xff]  }
 0x34c   : > { %v13643_v2 = vpop.f32.mrb[75].mxu0  ;;  %13943 = vmatprep.subr.bf16.mxu0 %v15194_v21  ;;  %v15230_v21 = vld [vmem:[%s19149_s1 + $0x1a78] sm:$0xff]  }
 0x34d   : > { %v10378_v63 = vadd.f32 %v13641_v57, %v18195_v7  ;;  %v13644_v5 = vadd.f32 %v13643_v2, %v13642_v61  ;;  %v15183_v7 = vld [vmem:[%s19149_s1 + $0x19d8] sm:$0xff]   ;;  %v15211_v57 = vld [vmem:[%s19149_s1 + $0x1ad0] sm:$0xff]  }
 0x34e   : > { %13959 = vmatprep.subr.bf16.mxu1 %v15183_v7  ;;  %v15214_v2 = vld [vmem:[%s19149_s1 + $0x1a58] sm:$0xff]  }
 0x34f   : > { %v13661_v53 = vpop.f32.mrb[72].mxu1  ;;  %v10381_v10 = vadd.f32 %v13644_v5, %v18210_v16  ;;  %13960 = vmatpush3.bf16.msra.mxu1 %v15185_v11  ;;  %v15189_v16 = vld [vmem:[%s19149_s1 + $0x19a0] sm:$0xff]   ;;  %13944 = vmatpush3.bf16.msra.mxu0 %v15196_v23  ;;  %v15217_v7 = vld [vmem:[%s19149_s1 + $0x1a98] sm:$0xff]  }
 0x350   : > { %v13662_v58 = vpop.f32.mrb[73].mxu1  ;;  %13961 = vmatprep.subr.bf16.mxu1 %v15187_v14  ;;  %13945 = vmatprep.subr.bf16.mxu0 %v15198_v25  ;;  %v15220_v11 = vld [vmem:[%s19149_s1 + $0x1a20] sm:$0xff]   ;;  %v15223_v14 = vld [vmem:[%s19149_s1 + $0x1ae8] sm:$0xff]   ;;  %v15232_v23 = vld [vmem:[%s19149_s1 + $0x1a38] sm:$0xff]  }
 0x351   : > { %v13663_v60 = vadd.f32 %v13662_v58, %v13661_v53  ;;  %v13664_v0 = vpop.f32.mrb[74].mxu1  ;;  %v389_v25 = vld [vmem:[%s15647_s23 + $0x348] sm:$0xff] }
 0x352   : > { %v13665_v6 = vpop.f32.mrb[75].mxu1 }
 0x353   : > { %v18308_v4 = vadd.f32 %v13663_v60, %v10378_v63  ;;  %v13666_v8 = vadd.f32 %v13665_v6, %v13664_v0  ;;  %13962 = vmatpush3.bf16.msra.mxu1 %v15189_v16  ;;  %13946 = vmatpush3.bf16.msra.mxu0 %v15200_v27  ;;  %v15212_v60 = vld [vmem:[%s19149_s1 + $0x1a10] sm:$0xff]   ;;  %v15216_v6 = vld [vmem:[%s19149_s1 + $0x1a18] sm:$0xff]   ;;  %v15225_v16 = vld [vmem:[%s19149_s1 + $0x1aa8] sm:$0xff]  }
 0x354   : > { %13963 = vmatprep.subr.bf16.mxu1 %v15191_v18  ;;  %13975 = vmatprep.subr.bf16.mxu0 %v15202_v41  ;;  %v15227_v18 = vld [vmem:[%s19149_s1 + $0x1af0] sm:$0xff]   ;;  %v391_v27 = vld [vmem:[%s15647_s23 + $0x358] sm:$0xff]  ;;  %v15238_v41 = vld [vmem:[%s19149_s1 + $0x1b48] sm:$0xff]  }
 0x355   : > { %v18323_v13 = vadd.f32 %v13666_v8, %v10381_v10  ;;  %v15219_v10 = vld [vmem:[%s19149_s1 + $0x1ae0] sm:$0xff]  }
 0x356   : > { %10950 = vmatmul.mubr.bf16.vlgmr.msra.gmra.mrb[100].mxu0 %v640_v37  ;;  %v15234_v37 = vld [vmem:[%s19149_s1 + $0x1b40] sm:$0xff]  }
 0x357   : > { %13964 = vmatpush3.bf16.msra.mxu1 %v15193_v20  ;;  %13976 = vmatpush3.bf16.msra.mxu0 %v15204_v43  ;;  %v15229_v20 = vld [vmem:[%s19149_s1 + $0x1ab0] sm:$0xff]   ;;  %v15239_v43 = vld [vmem:[%s19149_s1 + $0x1bc8] sm:$0xff]  }
 0x358   : > { %13965 = vmatprep.subr.bf16.mxu1 %v15195_v22  ;;  %13977 = vmatprep.subr.bf16.mxu0 %v15206_v45  ;;  %v15231_v22 = vld [vmem:[%s19149_s1 + $0x1af8] sm:$0xff]   ;;  %v15240_v45 = vld [vmem:[%s19149_s1 + $0x1b08] sm:$0xff]  }
 0x35b   : > { %13966 = vmatpush3.bf16.msra.mxu1 %v15197_v24  ;;  %13978 = vmatpush3.bf16.msra.mxu0 %v15208_v49  ;;  %v15233_v24 = vld [vmem:[%s19149_s1 + $0x1ab8] sm:$0xff]  }
 0x35c   : > { %13967 = vmatprep.subr.bf16.mxu1 %v15199_v26  ;;  %13979 = vmatprep.subr.bf16.mxu0 %v15210_v54  ;;  %v517_v26 = vld [vmem:[%s15647_s23 + $0x748] sm:$0xff] }
 0x35d   : > { %v645_v29 = vpack.c.bf16 %v517_v26, %v389_v25  ;;  %v523_v25 = vld [vmem:[%s15647_s23 + $0x778] sm:$0xff]  ;;  %v392_v26 = vld [vmem:[%s15647_s23 + $0x360] sm:$0xff] }
 0x35f   : > { %13968 = vmatpush3.bf16.msra.mxu1 %v15201_v28  ;;  %13980 = vmatpush3.bf16.msra.mxu0 %v15212_v60  ;;  %v519_v28 = vld [vmem:[%s15647_s23 + $0x758] sm:$0xff] }
 0x360   : > { %13997 = vmatprep.subr.bf16.mxu1 %v15203_v42  ;;  %13981 = vmatprep.subr.bf16.mxu0 %v15214_v2  ;;  %v647_v30 = vpack.c.bf16 %v519_v28, %v391_v27  ;;  %v15248_v2 = vld [vmem:[%s19149_s1 + $0x1b18] sm:$0xff]   ;;  %v520_v28 = vld [vmem:[%s15647_s23 + $0x760] sm:$0xff] }
 0x361   : > { %11031 = vmatprep.mubr.bf16.mxu0 %v645_v29  ;;  %v394_v29 = vld [vmem:[%s15647_s23 + $0x370] sm:$0xff]  ;;  %v648_v31 = vpack.c.bf16 %v520_v28, %v392_v26 }
 0x362   : > { %10991 = vmatmul.mubr.bf16.vlgmr.msra.gmra.mrb[100].mxu1 %v642_v40  ;;  %v15237_v40 = vld [vmem:[%s19149_s1 + $0x1b80] sm:$0xff]   ;;  %v398_v26 = vld [vmem:[%s15647_s23 + $0x390] sm:$0xff] }
 0x363   : > { %13998 = vmatpush3.bf16.msra.mxu1 %v15205_v44  ;;  %13982 = vmatpush3.bf16.msra.mxu0 %v15216_v6  ;;  %v15251_v6 = vld [vmem:[%s19149_s1 + $0x1be0] sm:$0xff]  }
 0x364   : > { %13999 = vmatprep.subr.bf16.mxu1 %v15207_v47  ;;  %13983 = vmatprep.subr.bf16.mxu0 %v15218_v9  ;;  %v15241_v47 = vld [vmem:[%s19149_s1 + $0x1b88] sm:$0xff]  }
 0x365   : > { %11072 = vmatprep.mubr.bf16.mxu1 %v647_v30  ;;  %v15254_v9 = vld [vmem:[%s19149_s1 + $0x1b68] sm:$0xff]   ;;  %v522_v30 = vld [vmem:[%s15647_s23 + $0x770] sm:$0xff] }
 0x366   : > { %v650_v32 = vpack.c.bf16 %v522_v30, %v394_v29  ;;  %v15298_v29 = vld [vmem:[%s19149_s1 + $0x1d40] sm:$0xff]  }
 0x367   : > { %14000 = vmatpush3.bf16.msra.mxu1 %v15209_v51  ;;  %13984 = vmatpush3.bf16.msra.mxu0 %v15220_v11  ;;  %v15256_v11 = vld [vmem:[%s19149_s1 + $0x1b28] sm:$0xff]   ;;  %v15299_v30 = vld [vmem:[%s19149_s1 + $0x1dc0] sm:$0xff]  }
 0x368   : > { %14001 = vmatprep.subr.bf16.mxu1 %v15211_v57 }
 0x369   : > { %v13683_v46 = vpop.f32.mrb[76].mxu0 }
 0x36a   : > { %v13684_v50 = vpop.f32.mrb[77].mxu0 }
 0x36b   : > { %v13685_v52 = vadd.f32 %v13684_v50, %v13683_v46  ;;  %v13686_v56 = vpop.f32.mrb[78].mxu0  ;;  %14002 = vmatpush3.bf16.msra.mxu1 %v15213_v62  ;;  %v15242_v50 = vld [vmem:[%s19149_s1 + $0x1b50] sm:$0xff]   ;;  %v15246_v62 = vld [vmem:[%s19149_s1 + $0x1b58] sm:$0xff]  }
 0x36c   : > { %v13687_v61 = vpop.f32.mrb[79].mxu0 }
 0x36d   : > { %v10460_v58 = vadd.f32 %v13685_v52, %v18308_v4  ;;  %v13688_v0 = vadd.f32 %v13687_v61, %v13686_v56  ;;  %v15215_v4 = vld [vmem:[%s19149_s1 + $0x1ad8] sm:$0xff]   ;;  %v15244_v56 = vld [vmem:[%s19149_s1 + $0x1b10] sm:$0xff]  }
 0x36e   : > { %14003 = vmatprep.subr.bf16.mxu1 %v15215_v4 }
 0x36f   : > { %v13705_v48 = vpop.f32.mrb[76].mxu1  ;;  %v10463_v5 = vadd.f32 %v13688_v0, %v18323_v13  ;;  %14004 = vmatpush3.bf16.msra.mxu1 %v15217_v7  ;;  %v15222_v13 = vld [vmem:[%s19149_s1 + $0x1a68] sm:$0xff]   ;;  %v15247_v0 = vld [vmem:[%s19149_s1 + $0x1bd8] sm:$0xff]   ;;  %v15252_v7 = vld [vmem:[%s19149_s1 + $0x1b20] sm:$0xff]  }
 0x370   : > { %v13706_v53 = vpop.f32.mrb[77].mxu1  ;;  %14005 = vmatprep.subr.bf16.mxu1 %v15219_v10  ;;  %13985 = vmatprep.subr.bf16.mxu0 %v15222_v13  ;;  %v15255_v10 = vld [vmem:[%s19149_s1 + $0x1be8] sm:$0xff]   ;;  %v15258_v13 = vld [vmem:[%s19149_s1 + $0x1b70] sm:$0xff]  }
 0x371   : > { %v13707_v55 = vadd.f32 %v13706_v53, %v13705_v48  ;;  %v13708_v59 = vpop.f32.mrb[78].mxu1  ;;  %13986 = vmatpush3.bf16.msra.mxu0 %v15224_v15  ;;  %v15243_v53 = vld [vmem:[%s19149_s1 + $0x1bd0] sm:$0xff]  }
 0x372   : > { %v13709_v1 = vpop.f32.mrb[79].mxu1  ;;  %13987 = vmatprep.subr.bf16.mxu0 %v15226_v17  ;;  %v15260_v15 = vld [vmem:[%s19149_s1 + $0x1b30] sm:$0xff]   ;;  %v15262_v17 = vld [vmem:[%s19149_s1 + $0x1b78] sm:$0xff]  }
 0x373   : > { %v18415_v63 = vadd.f32 %v13707_v55, %v10460_v58  ;;  %v13710_v3 = vadd.f32 %v13709_v1, %v13708_v59  ;;  %14006 = vmatpush3.bf16.msra.mxu1 %v15221_v12  ;;  %v15245_v58 = vld [vmem:[%s19149_s1 + $0x1b90] sm:$0xff]   ;;  %v15257_v12 = vld [vmem:[%s19149_s1 + $0x1ba8] sm:$0xff]  }
 0x374   : > { %14007 = vmatprep.subr.bf16.mxu1 %v15223_v14  ;;  %v15259_v14 = vld [vmem:[%s19149_s1 + $0x1bf0] sm:$0xff]  }
 0x375   : > { %v18430_v8 = vadd.f32 %v13710_v3, %v10463_v5  ;;  %13988 = vmatpush3.bf16.msra.mxu0 %v15228_v19  ;;  %v15249_v3 = vld [vmem:[%s19149_s1 + $0x1b98] sm:$0xff]   ;;  %v15250_v5 = vld [vmem:[%s19149_s1 + $0x1b60] sm:$0xff]  }
 0x376   : > { %13989 = vmatprep.subr.bf16.mxu0 %v15230_v21  ;;  %v15264_v19 = vld [vmem:[%s19149_s1 + $0x1b38] sm:$0xff]   ;;  %v393_v21 = vld [vmem:[%s15647_s23 + $0x368] sm:$0xff] }
 0x377   : > { %14008 = vmatpush3.bf16.msra.mxu1 %v15225_v16  ;;  %v15261_v16 = vld [vmem:[%s19149_s1 + $0x1bb0] sm:$0xff]  }
 0x378   : > { %14009 = vmatprep.subr.bf16.mxu1 %v15227_v18  ;;  %v15263_v18 = vld [vmem:[%s19149_s1 + $0x1bf8] sm:$0xff]  }
 0x379   : > { %13990 = vmatpush3.bf16.msra.mxu0 %v15232_v23 }
 0x37a   : > { %14019 = vmatprep.subr.bf16.mxu0 %v15234_v37  ;;  %v15270_v37 = vld [vmem:[%s19149_s1 + $0x1c48] sm:$0xff]  }
 0x37b   : > { %14010 = vmatpush3.bf16.msra.mxu1 %v15229_v20  ;;  %v15265_v20 = vld [vmem:[%s19149_s1 + $0x1bb8] sm:$0xff]  }
 0x37c   : > { %14011 = vmatprep.subr.bf16.mxu1 %v15231_v22  ;;  %11032 = vmatmul.mubr.bf16.vlgmr.msra.gmra.mrb[104].mxu0 %v644_v34  ;;  %v521_v22 = vld [vmem:[%s15647_s23 + $0x768] sm:$0xff]  ;;  %v15267_v34 = vld [vmem:[%s19149_s1 + $0x1cc0] sm:$0xff]  }
 0x37d   : > { %14020 = vmatpush3.bf16.msra.mxu0 %v15236_v39  ;;  %v649_v23 = vpack.c.bf16 %v521_v22, %v393_v21  ;;  %v527_v21 = vld [vmem:[%s15647_s23 + $0x798] sm:$0xff]  ;;  %v396_v22 = vld [vmem:[%s15647_s23 + $0x380] sm:$0xff] }
 0x37e   : > { %14021 = vmatprep.subr.bf16.mxu0 %v15238_v41 }
 0x37f   : > { %14012 = vmatpush3.bf16.msra.mxu1 %v15233_v24  ;;  %v395_v24 = vld [vmem:[%s15647_s23 + $0x378] sm:$0xff]  ;;  %11113 = vmatprep.mubr.bf16.mxu0 %v649_v23  ;;  %v524_v23 = vld [vmem:[%s15647_s23 + $0x780] sm:$0xff] }
 0x380   : > { %14041 = vmatprep.subr.bf16.mxu1 %v15235_v38  ;;  %v651_v27 = vpack.c.bf16 %v523_v25, %v395_v24  ;;  %v15271_v38 = vld [vmem:[%s19149_s1 + $0x1cc8] sm:$0xff]   ;;  %v652_v25 = vpack.c.bf16 %v524_v23, %v396_v22  ;;  %v530_v23 = vld [vmem:[%s15647_s23 + $0x7b0] sm:$0xff] }
 0x381   : > { %14022 = vmatpush3.bf16.msra.mxu0 %v15240_v45 }
 0x382   : > { %11073 = vmatmul.mubr.bf16.vlgmr.msra.gmra.mrb[104].mxu1 %v646_v36  ;;  %14023 = vmatprep.subr.bf16.mxu0 %v15242_v50  ;;  %v15269_v36 = vld [vmem:[%s19149_s1 + $0x1c80] sm:$0xff]   ;;  %v15276_v50 = vld [vmem:[%s19149_s1 + $0x1c10] sm:$0xff]  }
 0x383   : > { %14042 = vmatpush3.bf16.msra.mxu1 %v15237_v40  ;;  %11154 = vmatprep.mubr.bf16.mxu1 %v651_v27  ;;  %v15272_v40 = vld [vmem:[%s19149_s1 + $0x1c08] sm:$0xff]   ;;  %v526_v27 = vld [vmem:[%s15647_s23 + $0x790] sm:$0xff] }
 0x384   : > { %14043 = vmatprep.subr.bf16.mxu1 %v15239_v43  ;;  %v654_v28 = vpack.c.bf16 %v526_v27, %v398_v26  ;;  %v15331_v26 = vld [vmem:[%s19149_s1 + $0x1ec0] sm:$0xff]  }
 0x385   : > { %14024 = vmatpush3.bf16.msra.mxu0 %v15244_v56  ;;  %v15332_v27 = vld [vmem:[%s19149_s1 + $0x1e00] sm:$0xff]  }
 0x386   : > { %14025 = vmatprep.subr.bf16.mxu0 %v15246_v62 }
 0x387   : > { %14044 = vmatpush3.bf16.msra.mxu1 %v15241_v47  ;;  %v15275_v47 = vld [vmem:[%s19149_s1 + $0x1cd0] sm:$0xff]  }
 0x388   : > { %14045 = vmatprep.subr.bf16.mxu1 %v15243_v53  ;;  %v15277_v53 = vld [vmem:[%s19149_s1 + $0x1c90] sm:$0xff]  }
 0x389   : > { %v13727_v42 = vpop.f32.mrb[80].mxu0  ;;  %14026 = vmatpush3.bf16.msra.mxu0 %v15248_v2  ;;  %v15283_v2 = vld [vmem:[%s19149_s1 + $0x1ce0] sm:$0xff]  }
 0x38a   : > { %v13728_v46 = vpop.f32.mrb[81].mxu0  ;;  %14027 = vmatprep.subr.bf16.mxu0 %v15250_v5  ;;  %v15286_v5 = vld [vmem:[%s19149_s1 + $0x1c68] sm:$0xff]  }
 0x38b   : > { %v13729_v48 = vadd.f32 %v13728_v46, %v13727_v42  ;;  %v13730_v52 = vpop.f32.mrb[82].mxu0  ;;  %14046 = vmatpush3.bf16.msra.mxu1 %v15245_v58  ;;  %v15273_v42 = vld [vmem:[%s19149_s1 + $0x1c88] sm:$0xff]  }
 0x38c   : > { %v13731_v57 = vpop.f32.mrb[83].mxu0  ;;  %14047 = vmatprep.subr.bf16.mxu1 %v15247_v0  ;;  %v15282_v0 = vld [vmem:[%s19149_s1 + $0x1c60] sm:$0xff]  }
 0x38d   : > { %v10542_v54 = vadd.f32 %v13729_v48, %v18415_v63  ;;  %v13732_v60 = vadd.f32 %v13731_v57, %v13730_v52  ;;  %14028 = vmatpush3.bf16.msra.mxu0 %v15252_v7  ;;  %v15288_v7 = vld [vmem:[%s19149_s1 + $0x1c28] sm:$0xff]  }
 0x38e   : > { %14029 = vmatprep.subr.bf16.mxu0 %v15254_v9  ;;  %v15290_v9 = vld [vmem:[%s19149_s1 + $0x1c70] sm:$0xff]  }
 0x38f   : > { %v13749_v44 = vpop.f32.mrb[80].mxu1  ;;  %v10545_v1 = vadd.f32 %v13732_v60, %v18430_v8  ;;  %14048 = vmatpush3.bf16.msra.mxu1 %v15249_v3  ;;  %v15253_v8 = vld [vmem:[%s19149_s1 + $0x1ba0] sm:$0xff]  }
 0x390   : > { %v13750_v49 = vpop.f32.mrb[81].mxu1  ;;  %14049 = vmatprep.subr.bf16.mxu1 %v15251_v6  ;;  %v15284_v3 = vld [vmem:[%s19149_s1 + $0x1c20] sm:$0xff]   ;;  %v15287_v6 = vld [vmem:[%s19149_s1 + $0x1ce8] sm:$0xff]  }
 0x391   : > { %v13751_v51 = vadd.f32 %v13750_v49, %v13749_v44  ;;  %v13752_v55 = vpop.f32.mrb[82].mxu1  ;;  %14030 = vmatpush3.bf16.msra.mxu0 %v15256_v11  ;;  %v15274_v44 = vld [vmem:[%s19149_s1 + $0x1c50] sm:$0xff]  }
 0x392   : > { %v13753_v61 = vpop.f32.mrb[83].mxu1  ;;  %14031 = vmatprep.subr.bf16.mxu0 %v15258_v13  ;;  %v15292_v11 = vld [vmem:[%s19149_s1 + $0x1c30] sm:$0xff]   ;;  %v15294_v13 = vld [vmem:[%s19149_s1 + $0x1c78] sm:$0xff]  }
 0x393   : > { %v18525_v59 = vadd.f32 %v13751_v51, %v10542_v54  ;;  %v13754_v63 = vadd.f32 %v13753_v61, %v13752_v55  ;;  %14050 = vmatpush3.bf16.msra.mxu1 %v15253_v8  ;;  %v15278_v55 = vld [vmem:[%s19149_s1 + $0x1c58] sm:$0xff]   ;;  %v15289_v8 = vld [vmem:[%s19149_s1 + $0x1ca8] sm:$0xff]  }
 0x394   : > { %14051 = vmatprep.subr.bf16.mxu1 %v15255_v10  ;;  %v15280_v61 = vld [vmem:[%s19149_s1 + $0x1c18] sm:$0xff]   ;;  %v15291_v10 = vld [vmem:[%s19149_s1 + $0x1cf0] sm:$0xff]  }
 0x395   : > { %v18540_v4 = vadd.f32 %v13754_v63, %v10545_v1  ;;  %14032 = vmatpush3.bf16.msra.mxu0 %v15260_v15  ;;  %v15281_v63 = vld [vmem:[%s19149_s1 + $0x1c98] sm:$0xff]  }
 0x396   : > { %14033 = vmatprep.subr.bf16.mxu0 %v15262_v17  ;;  %v15296_v15 = vld [vmem:[%s19149_s1 + $0x1c38] sm:$0xff]   ;;  %v397_v17 = vld [vmem:[%s15647_s23 + $0x388] sm:$0xff] }
 0x397   : > { %14052 = vmatpush3.bf16.msra.mxu1 %v15257_v12  ;;  %v15293_v12 = vld [vmem:[%s19149_s1 + $0x1cb0] sm:$0xff]  }
 0x398   : > { %14053 = vmatprep.subr.bf16.mxu1 %v15259_v14  ;;  %v15295_v14 = vld [vmem:[%s19149_s1 + $0x1cf8] sm:$0xff]  }
 0x399   : > { %14034 = vmatpush3.bf16.msra.mxu0 %v15264_v19  ;;  %v399_v19 = vld [vmem:[%s15647_s23 + $0x398] sm:$0xff] }
 0x39a   : > { %14063 = vmatprep.subr.bf16.mxu0 %v15266_v33  ;;  %v655_v24 = vpack.c.bf16 %v527_v21, %v399_v19  ;;  %v15302_v33 = vld [vmem:[%s19149_s1 + $0x1d48] sm:$0xff]   ;;  %v400_v19 = vld [vmem:[%s15647_s23 + $0x3a0] sm:$0xff]  ;;  %v402_v21 = vld [vmem:[%s15647_s23 + $0x3b0] sm:$0xff] }
 0x39b   : > { %14054 = vmatpush3.bf16.msra.mxu1 %v15261_v16  ;;  %v15297_v16 = vld [vmem:[%s19149_s1 + $0x1cb8] sm:$0xff]  }
 0x39c   : > { %14055 = vmatprep.subr.bf16.mxu1 %v15263_v18  ;;  %11114 = vmatmul.mubr.bf16.vlgmr.msra.gmra.mrb[108].mxu0 %v648_v31  ;;  %v525_v18 = vld [vmem:[%s15647_s23 + $0x788] sm:$0xff]  ;;  %v15300_v31 = vld [vmem:[%s19149_s1 + $0x1d00] sm:$0xff]  }
 0x39d   : > { %14064 = vmatpush3.bf16.msra.mxu0 %v15268_v35  ;;  %v15303_v35 = vld [vmem:[%s19149_s1 + $0x1dc8] sm:$0xff]  }
 0x39e   : > { %14065 = vmatprep.subr.bf16.mxu0 %v15270_v37  ;;  %v15304_v37 = vld [vmem:[%s19149_s1 + $0x1d08] sm:$0xff]  }
 0x39f   : > { %14056 = vmatpush3.bf16.msra.mxu1 %v15265_v20  ;;  %v653_v20 = vpack.c.bf16 %v525_v18, %v397_v17 }
 0x3a0   : > { %14085 = vmatprep.subr.bf16.mxu1 %v15267_v34 }
 0x3a1   : > { %14066 = vmatpush3.bf16.msra.mxu0 %v15272_v40  ;;  %11195 = vmatprep.mubr.bf16.mxu0 %v653_v20  ;;  %v528_v20 = vld [vmem:[%s15647_s23 + $0x7a0] sm:$0xff] }
 0x3a2   : > { %11155 = vmatmul.mubr.bf16.vlgmr.msra.gmra.mrb[108].mxu1 %v650_v32  ;;  %14067 = vmatprep.subr.bf16.mxu0 %v15274_v44  ;;  %v15301_v32 = vld [vmem:[%s19149_s1 + $0x1d80] sm:$0xff]   ;;  %v656_v22 = vpack.c.bf16 %v528_v20, %v400_v19 }
 0x3a3   : > { %14086 = vmatpush3.bf16.msra.mxu1 %v15269_v36  ;;  %11236 = vmatprep.mubr.bf16.mxu1 %v655_v24  ;;  %v658_v24 = vpack.c.bf16 %v530_v23, %v402_v21  ;;  %v15362_v21 = vld [vmem:[%s19149_s1 + $0x1f40] sm:$0xff]  }
 0x3a4   : > { %14087 = vmatprep.subr.bf16.mxu1 %v15271_v38  ;;  %v15364_v23 = vld [vmem:[%s19149_s1 + $0x1f00] sm:$0xff]  }
 0x3a5   : > { %14068 = vmatpush3.bf16.msra.mxu0 %v15276_v50  ;;  %v15309_v50 = vld [vmem:[%s19149_s1 + $0x1d90] sm:$0xff]  }
 0x3a6   : > { %14069 = vmatprep.subr.bf16.mxu0 %v15278_v55 }
 0x3a7   : > { %14088 = vmatpush3.bf16.msra.mxu1 %v15273_v42  ;;  %v15306_v42 = vld [vmem:[%s19149_s1 + $0x1d50] sm:$0xff]  }
 0x3a8   : > { %14089 = vmatprep.subr.bf16.mxu1 %v15275_v47 }
 0x3a9   : > { %v13771_v39 = vpop.f32.mrb[84].mxu0  ;;  %14070 = vmatpush3.bf16.msra.mxu0 %v15280_v61  ;;  %v15314_v61 = vld [vmem:[%s19149_s1 + $0x1d60] sm:$0xff]  }
 0x3aa   : > { %v13772_v43 = vpop.f32.mrb[85].mxu0  ;;  %14071 = vmatprep.subr.bf16.mxu0 %v15282_v0  ;;  %v15317_v0 = vld [vmem:[%s19149_s1 + $0x1da0] sm:$0xff]  }
 0x3ab   : > { %v13773_v45 = vadd.f32 %v13772_v43, %v13771_v39  ;;  %v13774_v49 = vpop.f32.mrb[86].mxu0  ;;  %14090 = vmatpush3.bf16.msra.mxu1 %v15277_v53  ;;  %v15305_v39 = vld [vmem:[%s19149_s1 + $0x1d88] sm:$0xff]  }
 0x3ac   : > { %v13775_v54 = vpop.f32.mrb[87].mxu0 }
 0x3ad   : > { %v10624_v51 = vadd.f32 %v13773_v45, %v18525_v59  ;;  %v13776_v57 = vadd.f32 %v13775_v54, %v13774_v49  ;;  %v15279_v59 = vld [vmem:[%s19149_s1 + $0x1cd8] sm:$0xff]   ;;  %14072 = vmatpush3.bf16.msra.mxu0 %v15284_v3  ;;  %v15307_v45 = vld [vmem:[%s19149_s1 + $0x1dd0] sm:$0xff]   ;;  %v15320_v3 = vld [vmem:[%s19149_s1 + $0x1d28] sm:$0xff]  }
 0x3ae   : > { %14091 = vmatprep.subr.bf16.mxu1 %v15279_v59  ;;  %14073 = vmatprep.subr.bf16.mxu0 %v15286_v5  ;;  %v15310_v54 = vld [vmem:[%s19149_s1 + $0x1d58] sm:$0xff]   ;;  %v15322_v5 = vld [vmem:[%s19149_s1 + $0x1d70] sm:$0xff]  }
 0x3af   : > { %v13793_v41 = vpop.f32.mrb[84].mxu1  ;;  %v10627_v62 = vadd.f32 %v13776_v57, %v18540_v4  ;;  %14092 = vmatpush3.bf16.msra.mxu1 %v15281_v63  ;;  %v15285_v4 = vld [vmem:[%s19149_s1 + $0x1ca0] sm:$0xff]   ;;  %v15313_v59 = vld [vmem:[%s19149_s1 + $0x1d98] sm:$0xff]  }
 0x3b0   : > { %v13794_v46 = vpop.f32.mrb[85].mxu1  ;;  %14093 = vmatprep.subr.bf16.mxu1 %v15283_v2  ;;  %v15316_v63 = vld [vmem:[%s19149_s1 + $0x1d20] sm:$0xff]   ;;  %v15319_v2 = vld [vmem:[%s19149_s1 + $0x1de8] sm:$0xff]  }
 0x3b1   : > { %v13795_v48 = vadd.f32 %v13794_v46, %v13793_v41  ;;  %v13796_v52 = vpop.f32.mrb[86].mxu1  ;;  %14074 = vmatpush3.bf16.msra.mxu0 %v15288_v7  ;;  %v15324_v7 = vld [vmem:[%s19149_s1 + $0x1d30] sm:$0xff]  }
 0x3b2   : > { %v13797_v58 = vpop.f32.mrb[87].mxu1  ;;  %14075 = vmatprep.subr.bf16.mxu0 %v15290_v9  ;;  %v15326_v9 = vld [vmem:[%s19149_s1 + $0x1d78] sm:$0xff]  }
 0x3b3   : > { %v18638_v56 = vadd.f32 %v13795_v48, %v10624_v51  ;;  %v13798_v60 = vadd.f32 %v13797_v58, %v13796_v52  ;;  %14094 = vmatpush3.bf16.msra.mxu1 %v15285_v4  ;;  %v15308_v48 = vld [vmem:[%s19149_s1 + $0x1d10] sm:$0xff]   ;;  %v15312_v58 = vld [vmem:[%s19149_s1 + $0x1d18] sm:$0xff]   ;;  %v15321_v4 = vld [vmem:[%s19149_s1 + $0x1da8] sm:$0xff]  }
 0x3b4   : > { %14095 = vmatprep.subr.bf16.mxu1 %v15287_v6  ;;  %v15323_v6 = vld [vmem:[%s19149_s1 + $0x1df0] sm:$0xff]  }
 0x3b5   : > { %v18653_v1 = vadd.f32 %v13798_v60, %v10627_v62  ;;  %14076 = vmatpush3.bf16.msra.mxu0 %v15292_v11  ;;  %v15315_v62 = vld [vmem:[%s19149_s1 + $0x1de0] sm:$0xff]   ;;  %v15328_v11 = vld [vmem:[%s19149_s1 + $0x1d38] sm:$0xff]  }
 0x3b6   : > { %14077 = vmatprep.subr.bf16.mxu0 %v15294_v13  ;;  %v401_v13 = vld [vmem:[%s15647_s23 + $0x3a8] sm:$0xff] }
 0x3b7   : > { %14096 = vmatpush3.bf16.msra.mxu1 %v15289_v8  ;;  %v15325_v8 = vld [vmem:[%s19149_s1 + $0x1db0] sm:$0xff]  }
 0x3b8   : > { %14097 = vmatprep.subr.bf16.mxu1 %v15291_v10  ;;  %v15327_v10 = vld [vmem:[%s19149_s1 + $0x1df8] sm:$0xff]  }
 0x3b9   : > { %14078 = vmatpush3.bf16.msra.mxu0 %v15296_v15  ;;  %v403_v15 = vld [vmem:[%s15647_s23 + $0x3b8] sm:$0xff] }
 0x3ba   : > { %14107 = vmatprep.subr.bf16.mxu0 %v15298_v29  ;;  %v15334_v29 = vld [vmem:[%s19149_s1 + $0x1e48] sm:$0xff]  }
 0x3bb   : > { %14098 = vmatpush3.bf16.msra.mxu1 %v15293_v12  ;;  %v15329_v12 = vld [vmem:[%s19149_s1 + $0x1db8] sm:$0xff]  }
 0x3bc   : > { %14099 = vmatprep.subr.bf16.mxu1 %v15295_v14  ;;  %11196 = vmatmul.mubr.bf16.vlgmr.msra.gmra.mrb[112].mxu0 %v652_v25  ;;  %v529_v14 = vld [vmem:[%s15647_s23 + $0x7a8] sm:$0xff]  ;;  %v15330_v25 = vld [vmem:[%s19149_s1 + $0x1e40] sm:$0xff]  }
 0x3bd   : > { %14108 = vmatpush3.bf16.msra.mxu0 %v15300_v31  ;;  %v657_v17 = vpack.c.bf16 %v529_v14, %v401_v13  ;;  %v15335_v31 = vld [vmem:[%s19149_s1 + $0x1ec8] sm:$0xff]   ;;  %v535_v13 = vld [vmem:[%s15647_s23 + $0x7d8] sm:$0xff]  ;;  %v404_v14 = vld [vmem:[%s15647_s23 + $0x3c0] sm:$0xff] }
 0x3be   : > { %14109 = vmatprep.subr.bf16.mxu0 %v15302_v33  ;;  %v15336_v33 = vld [vmem:[%s19149_s1 + $0x1e08] sm:$0xff]  }
 0x3bf   : > { %14100 = vmatpush3.bf16.msra.mxu1 %v15297_v16  ;;  %v531_v16 = vld [vmem:[%s15647_s23 + $0x7b8] sm:$0xff]  ;;  %11277 = vmatprep.mubr.bf16.mxu0 %v657_v17  ;;  %v406_v17 = vld [vmem:[%s15647_s23 + $0x3d0] sm:$0xff] }
 0x3c0   : > { %14129 = vmatprep.subr.bf16.mxu1 %v15299_v30  ;;  %v659_v18 = vpack.c.bf16 %v531_v16, %v403_v15  ;;  %v532_v16 = vld [vmem:[%s15647_s23 + $0x7c0] sm:$0xff] }
 0x3c1   : > { %14110 = vmatpush3.bf16.msra.mxu0 %v15304_v37  ;;  %v660_v19 = vpack.c.bf16 %v532_v16, %v404_v14  ;;  %v410_v14 = vld [vmem:[%s15647_s23 + $0x3f0] sm:$0xff] }
 0x3c2   : > { %11237 = vmatmul.mubr.bf16.vlgmr.msra.gmra.mrb[112].mxu1 %v654_v28  ;;  %14111 = vmatprep.subr.bf16.mxu0 %v15306_v42  ;;  %v15333_v28 = vld [vmem:[%s19149_s1 + $0x1e80] sm:$0xff]  }
 0x3c3   : > { %14130 = vmatpush3.bf16.msra.mxu1 %v15301_v32  ;;  %11318 = vmatprep.mubr.bf16.mxu1 %v659_v18  ;;  %v534_v18 = vld [vmem:[%s15647_s23 + $0x7d0] sm:$0xff] }
 0x3c4   : > { %14131 = vmatprep.subr.bf16.mxu1 %v15303_v35  ;;  %v15337_v35 = vld [vmem:[%s19149_s1 + $0x1e88] sm:$0xff]   ;;  %v662_v20 = vpack.c.bf16 %v534_v18, %v406_v17 }
 0x3c5   : > { %14112 = vmatpush3.bf16.msra.mxu0 %v15308_v48 }
 0x3c6   : > { %14113 = vmatprep.subr.bf16.mxu0 %v15310_v54  ;;  %v15344_v54 = vld [vmem:[%s19149_s1 + $0x1e18] sm:$0xff]  }
 0x3c7   : > { %14132 = vmatpush3.bf16.msra.mxu1 %v15305_v39 }
 0x3c8   : > { %14133 = vmatprep.subr.bf16.mxu1 %v15307_v45 }
 0x3c9   : > { %v13815_v34 = vpop.f32.mrb[88].mxu0  ;;  %14114 = vmatpush3.bf16.msra.mxu0 %v15312_v58  ;;  %v15347_v58 = vld [vmem:[%s19149_s1 + $0x1ee0] sm:$0xff]  }
 0x3ca   : > { %v13816_v38 = vpop.f32.mrb[89].mxu0  ;;  %14115 = vmatprep.subr.bf16.mxu0 %v15314_v61  ;;  %v15350_v61 = vld [vmem:[%s19149_s1 + $0x1e68] sm:$0xff]  }
 0x3cb   : > { %v13817_v40 = vadd.f32 %v13816_v38, %v13815_v34  ;;  %v13818_v44 = vpop.f32.mrb[90].mxu0  ;;  %14134 = vmatpush3.bf16.msra.mxu1 %v15309_v50  ;;  %v15338_v38 = vld [vmem:[%s19149_s1 + $0x1e50] sm:$0xff]   ;;  %v15342_v50 = vld [vmem:[%s19149_s1 + $0x1e58] sm:$0xff]  }
 0x3cc   : > { %v13819_v49 = vpop.f32.mrb[91].mxu0 }
 0x3cd   : > { %v10706_v46 = vadd.f32 %v13817_v40, %v18638_v56  ;;  %v13820_v52 = vadd.f32 %v13819_v49, %v13818_v44  ;;  %v15311_v56 = vld [vmem:[%s19149_s1 + $0x1dd8] sm:$0xff]   ;;  %14116 = vmatpush3.bf16.msra.mxu0 %v15316_v63  ;;  %v15340_v44 = vld [vmem:[%s19149_s1 + $0x1e10] sm:$0xff]   ;;  %v15352_v63 = vld [vmem:[%s19149_s1 + $0x1e28] sm:$0xff]  }
 0x3ce   : > { %14135 = vmatprep.subr.bf16.mxu1 %v15311_v56 }
 0x3cf   : > { %v13837_v36 = vpop.f32.mrb[88].mxu1  ;;  %v10709_v57 = vadd.f32 %v13820_v52, %v18653_v1  ;;  %14136 = vmatpush3.bf16.msra.mxu1 %v15313_v59  ;;  %v15318_v1 = vld [vmem:[%s19149_s1 + $0x1d68] sm:$0xff]   ;;  %v15343_v52 = vld [vmem:[%s19149_s1 + $0x1ed8] sm:$0xff]   ;;  %v15348_v59 = vld [vmem:[%s19149_s1 + $0x1e20] sm:$0xff]  }
 0x3d0   : > { %v13838_v41 = vpop.f32.mrb[89].mxu1  ;;  %14137 = vmatprep.subr.bf16.mxu1 %v15315_v62  ;;  %14117 = vmatprep.subr.bf16.mxu0 %v15318_v1  ;;  %v15351_v62 = vld [vmem:[%s19149_s1 + $0x1ee8] sm:$0xff]   ;;  %v15354_v1 = vld [vmem:[%s19149_s1 + $0x1e70] sm:$0xff]  }
 0x3d1   : > { %v13839_v43 = vadd.f32 %v13838_v41, %v13837_v36  ;;  %v13840_v47 = vpop.f32.mrb[90].mxu1  ;;  %14118 = vmatpush3.bf16.msra.mxu0 %v15320_v3  ;;  %v15339_v41 = vld [vmem:[%s19149_s1 + $0x1ed0] sm:$0xff]  }
 0x3d2   : > { %v13841_v53 = vpop.f32.mrb[91].mxu1  ;;  %14119 = vmatprep.subr.bf16.mxu0 %v15322_v5  ;;  %v15356_v3 = vld [vmem:[%s19149_s1 + $0x1e30] sm:$0xff]   ;;  %v15358_v5 = vld [vmem:[%s19149_s1 + $0x1e78] sm:$0xff]  }
 0x3d3   : > { %v18745_v51 = vadd.f32 %v13839_v43, %v10706_v46  ;;  %v13842_v55 = vadd.f32 %v13841_v53, %v13840_v47  ;;  %14138 = vmatpush3.bf16.msra.mxu1 %v15317_v0  ;;  %v15341_v46 = vld [vmem:[%s19149_s1 + $0x1e90] sm:$0xff]   ;;  %v15353_v0 = vld [vmem:[%s19149_s1 + $0x1ea8] sm:$0xff]  }
 0x3d4   : > { %14139 = vmatprep.subr.bf16.mxu1 %v15319_v2  ;;  %v15355_v2 = vld [vmem:[%s19149_s1 + $0x1ef0] sm:$0xff]  }
 0x3d5   : > { %v18760_v60 = vadd.f32 %v13842_v55, %v10709_v57  ;;  %14120 = vmatpush3.bf16.msra.mxu0 %v15324_v7  ;;  %v15345_v55 = vld [vmem:[%s19149_s1 + $0x1e98] sm:$0xff]   ;;  %v15346_v57 = vld [vmem:[%s19149_s1 + $0x1e60] sm:$0xff]  }
 0x3d6   : > { %14121 = vmatprep.subr.bf16.mxu0 %v15326_v9  ;;  %v15360_v7 = vld [vmem:[%s19149_s1 + $0x1e38] sm:$0xff]   ;;  %v405_v9 = vld [vmem:[%s15647_s23 + $0x3c8] sm:$0xff] }
 0x3d7   : > { %14140 = vmatpush3.bf16.msra.mxu1 %v15321_v4  ;;  %v15357_v4 = vld [vmem:[%s19149_s1 + $0x1eb0] sm:$0xff]  }
 0x3d8   : > { %14141 = vmatprep.subr.bf16.mxu1 %v15323_v6  ;;  %v15359_v6 = vld [vmem:[%s19149_s1 + $0x1ef8] sm:$0xff]  }
 0x3d9   : > { %14122 = vmatpush3.bf16.msra.mxu0 %v15328_v11 }
 0x3da   : > { %14151 = vmatprep.subr.bf16.mxu0 %v15330_v25  ;;  %v15366_v25 = vld [vmem:[%s19149_s1 + $0x1f48] sm:$0xff]  }
 0x3db   : > { %14142 = vmatpush3.bf16.msra.mxu1 %v15325_v8  ;;  %v15361_v8 = vld [vmem:[%s19149_s1 + $0x1eb8] sm:$0xff]  }
 0x3dc   : > { %14143 = vmatprep.subr.bf16.mxu1 %v15327_v10  ;;  %11278 = vmatmul.mubr.bf16.vlgmr.msra.gmra.mrb[116].mxu0 %v656_v22  ;;  %v533_v10 = vld [vmem:[%s15647_s23 + $0x7c8] sm:$0xff]  ;;  %v15363_v22 = vld [vmem:[%s19149_s1 + $0x1fc0] sm:$0xff]  }
 0x3dd   : > { %14152 = vmatpush3.bf16.msra.mxu0 %v15332_v27  ;;  %v661_v11 = vpack.c.bf16 %v533_v10, %v405_v9  ;;  %v539_v9 = vld [vmem:[%s15647_s23 + $0x7f8] sm:$0xff]  ;;  %v408_v10 = vld [vmem:[%s15647_s23 + $0x3e0] sm:$0xff] }
 0x3de   : > { %14153 = vmatprep.subr.bf16.mxu0 %v15334_v29 }
 0x3df   : > { %14144 = vmatpush3.bf16.msra.mxu1 %v15329_v12  ;;  %v407_v12 = vld [vmem:[%s15647_s23 + $0x3d8] sm:$0xff]  ;;  %11359 = vmatprep.mubr.bf16.mxu0 %v661_v11  ;;  %v536_v11 = vld [vmem:[%s15647_s23 + $0x7e0] sm:$0xff] }
 0x3e0   : > { %14173 = vmatprep.subr.bf16.mxu1 %v15331_v26  ;;  %v663_v15 = vpack.c.bf16 %v535_v13, %v407_v12  ;;  %v15367_v26 = vld [vmem:[%s19149_s1 + $0x1fc8] sm:$0xff]   ;;  %v664_v13 = vpack.c.bf16 %v536_v11, %v408_v10  ;;  %v11499_v10 = vld [vmem:[%s19151_s3 + $0x30] sm:$0xff]  ;;  %v11500_v11 = vld [vmem:[%s19151_s3 + $0x38] sm:$0xff] }
 0x3e1   : > { %14154 = vmatpush3.bf16.msra.mxu0 %v15336_v33 }
 0x3e2   : > { %11319 = vmatmul.mubr.bf16.vlgmr.msra.gmra.mrb[116].mxu1 %v658_v24  ;;  %14155 = vmatprep.subr.bf16.mxu0 %v15338_v38  ;;  %v15365_v24 = vld [vmem:[%s19149_s1 + $0x1f80] sm:$0xff]   ;;  %v15372_v38 = vld [vmem:[%s19149_s1 + $0x1f10] sm:$0xff]  }
 0x3e3   : > { %14174 = vmatpush3.bf16.msra.mxu1 %v15333_v28  ;;  %11400 = vmatprep.mubr.bf16.mxu1 %v663_v15  ;;  %v15368_v28 = vld [vmem:[%s19149_s1 + $0x1f08] sm:$0xff]   ;;  %v538_v15 = vld [vmem:[%s15647_s23 + $0x7f0] sm:$0xff] }
 0x3e4   : > { %14175 = vmatprep.subr.bf16.mxu1 %v15335_v31  ;;  %v666_v16 = vpack.c.bf16 %v538_v15, %v410_v14  ;;  %v11593_v14 = vld [vmem:[%s19153_s5 + $0x8] sm:$0xff]  ;;  %v11594_v15 = vld [vmem:[%s19153_s5 + $0x10] sm:$0xff] }
 0x3e5   : > { %14156 = vmatpush3.bf16.msra.mxu0 %v15340_v44 }
 0x3e6   : > { %14157 = vmatprep.subr.bf16.mxu0 %v15342_v50 }
 0x3e7   : > { %14176 = vmatpush3.bf16.msra.mxu1 %v15337_v35  ;;  %v15371_v35 = vld [vmem:[%s19149_s1 + $0x1fd0] sm:$0xff]  }
 0x3e8   : > { %14177 = vmatprep.subr.bf16.mxu1 %v15339_v41  ;;  %v15373_v41 = vld [vmem:[%s19149_s1 + $0x1f90] sm:$0xff]  }
 0x3e9   : > { %v13859_v30 = vpop.f32.mrb[92].mxu0  ;;  %14158 = vmatpush3.bf16.msra.mxu0 %v15344_v54  ;;  %v15379_v54 = vld [vmem:[%s19149_s1 + $0x1fe0] sm:$0xff]  }
 0x3ea   : > { %v13860_v34 = vpop.f32.mrb[93].mxu0  ;;  %14159 = vmatprep.subr.bf16.mxu0 %v15346_v57  ;;  %v15382_v57 = vld [vmem:[%s19149_s1 + $0x1f68] sm:$0xff]  }
 0x3eb   : > { %v13861_v36 = vadd.f32 %v13860_v34, %v13859_v30  ;;  %v13862_v40 = vpop.f32.mrb[94].mxu0  ;;  %14178 = vmatpush3.bf16.msra.mxu1 %v15341_v46  ;;  %v15369_v30 = vld [vmem:[%s19149_s1 + $0x1f88] sm:$0xff]  }
 0x3ec   : > { %v13863_v45 = vpop.f32.mrb[95].mxu0  ;;  %14179 = vmatprep.subr.bf16.mxu1 %v15343_v52  ;;  %v15378_v52 = vld [vmem:[%s19149_s1 + $0x1f60] sm:$0xff]  }
 0x3ed   : > { %v10788_v42 = vadd.f32 %v13861_v36, %v18745_v51  ;;  %v13864_v48 = vadd.f32 %v13863_v45, %v13862_v40  ;;  %14160 = vmatpush3.bf16.msra.mxu0 %v15348_v59  ;;  %v15384_v59 = vld [vmem:[%s19149_s1 + $0x1f28] sm:$0xff]  }
 0x3ee   : > { %14161 = vmatprep.subr.bf16.mxu0 %v15350_v61  ;;  %v15386_v61 = vld [vmem:[%s19149_s1 + $0x1f70] sm:$0xff]  }
 0x3ef   : > { %v13881_v32 = vpop.f32.mrb[92].mxu1  ;;  %v10791_v53 = vadd.f32 %v13864_v48, %v18760_v60  ;;  %14180 = vmatpush3.bf16.msra.mxu1 %v15345_v55  ;;  %v15349_v60 = vld [vmem:[%s19149_s1 + $0x1ea0] sm:$0xff]  }
 0x3f0   : > { %v13882_v37 = vpop.f32.mrb[93].mxu1  ;;  %14181 = vmatprep.subr.bf16.mxu1 %v15347_v58  ;;  %v15380_v55 = vld [vmem:[%s19149_s1 + $0x1f20] sm:$0xff]   ;;  %v15383_v58 = vld [vmem:[%s19149_s1 + $0x1fe8] sm:$0xff]  }
 0x3f1   : > { %v13883_v39 = vadd.f32 %v13882_v37, %v13881_v32  ;;  %v13884_v43 = vpop.f32.mrb[94].mxu1  ;;  %14162 = vmatpush3.bf16.msra.mxu0 %v15352_v63  ;;  %v15370_v32 = vld [vmem:[%s19149_s1 + $0x1f50] sm:$0xff]  }
 0x3f2   : > { %v13885_v49 = vpop.f32.mrb[95].mxu1  ;;  %14163 = vmatprep.subr.bf16.mxu0 %v15354_v1  ;;  %v15388_v63 = vld [vmem:[%s19149_s1 + $0x1f30] sm:$0xff]   ;;  %v15390_v1 = vld [vmem:[%s19149_s1 + $0x1f78] sm:$0xff]  }
 0x3f3   : > { %v18855_v47 = vadd.f32 %v13883_v39, %v10788_v42  ;;  %v13886_v51 = vadd.f32 %v13885_v49, %v13884_v43  ;;  %14182 = vmatpush3.bf16.msra.mxu1 %v15349_v60  ;;  %v15374_v43 = vld [vmem:[%s19149_s1 + $0x1f58] sm:$0xff]   ;;  %v15385_v60 = vld [vmem:[%s19149_s1 + $0x1fa8] sm:$0xff]  }
 0x3f4   : > { %14183 = vmatprep.subr.bf16.mxu1 %v15351_v62  ;;  %v15376_v49 = vld [vmem:[%s19149_s1 + $0x1f18] sm:$0xff]   ;;  %v15387_v62 = vld [vmem:[%s19149_s1 + $0x1ff0] sm:$0xff]  }
 0x3f5   : > { %v18870_v56 = vadd.f32 %v13886_v51, %v10791_v53  ;;  %14164 = vmatpush3.bf16.msra.mxu0 %v15356_v3  ;;  %v15377_v51 = vld [vmem:[%s19149_s1 + $0x1f98] sm:$0xff]  }
 0x3f6   : > { %14165 = vmatprep.subr.bf16.mxu0 %v15358_v5  ;;  %v15392_v3 = vld [vmem:[%s19149_s1 + $0x1f38] sm:$0xff]   ;;  %v409_v5 = vld [vmem:[%s15647_s23 + $0x3e8] sm:$0xff] }
 0x3f7   : > { %14184 = vmatpush3.bf16.msra.mxu1 %v15353_v0  ;;  %v15389_v0 = vld [vmem:[%s19149_s1 + $0x1fb0] sm:$0xff]  }
 0x3f8   : > { %14185 = vmatprep.subr.bf16.mxu1 %v15355_v2  ;;  %v15391_v2 = vld [vmem:[%s19149_s1 + $0x1ff8] sm:$0xff]  }
 0x3f9   : > { %14166 = vmatpush3.bf16.msra.mxu0 %v15360_v7  ;;  %v411_v7 = vld [vmem:[%s15647_s23 + $0x3f8] sm:$0xff] }
 0x3fa   : > { %14195 = vmatprep.subr.bf16.mxu0 %v15362_v21  ;;  %v667_v12 = vpack.c.bf16 %v539_v9, %v411_v7  ;;  %v11497_v7 = vld [vmem:[%s19151_s3 + $0x20] sm:$0xff] }
 0x3fb   : > { %14186 = vmatpush3.bf16.msra.mxu1 %v15357_v4  ;;  %v15393_v4 = vld [vmem:[%s19149_s1 + $0x1fb8] sm:$0xff]  }
 0x3fc   : > { %14187 = vmatprep.subr.bf16.mxu1 %v15359_v6  ;;  %11360 = vmatmul.mubr.bf16.vlgmr.msra.gmra.mrb[120].mxu0 %v660_v19  ;;  %v537_v6 = vld [vmem:[%s15647_s23 + $0x7e8] sm:$0xff] }
 0x3fd   : > { %14196 = vmatpush3.bf16.msra.mxu0 %v15364_v23 }
 0x3fe   : > { %14197 = vmatprep.subr.bf16.mxu0 %v15366_v25 }
 0x3ff   : > { %14188 = vmatpush3.bf16.msra.mxu1 %v15361_v8  ;;  %v665_v8 = vpack.c.bf16 %v537_v6, %v409_v5  ;;  %v11496_v5 = vld [vmem:[%s19151_s3 + $0x18] sm:$0xff] }
 0x400   : > { %14217 = vmatprep.subr.bf16.mxu1 %v15363_v22 }
 0x401   : > { %14198 = vmatpush3.bf16.msra.mxu0 %v15368_v28  ;;  %11441 = vmatprep.mubr.bf16.mxu0 %v665_v8  ;;  %v11498_v8 = vld [vmem:[%s19151_s3 + $0x28] sm:$0xff] }
 0x402   : > { %11401 = vmatmul.mubr.bf16.vlgmr.msra.gmra.mrb[120].mxu1 %v662_v20  ;;  %14199 = vmatprep.subr.bf16.mxu0 %v15370_v32  ;;  %v14305_v9 = vpack.c.bf16 %v11498_v8, %v11497_v7 }
 0x403   : > { %14218 = vmatpush3.bf16.msra.mxu1 %v15365_v24  ;;  %11482 = vmatprep.mubr.bf16.mxu1 %v667_v12  ;;  %v14309_v12 = vpack.c.bf16 %v11500_v11, %v11499_v10 }
 0x404   : > { %14219 = vmatprep.subr.bf16.mxu1 %v15367_v26 }
 0x405   : > { %14200 = vmatpush3.bf16.msra.mxu0 %v15372_v38 }
 0x406   : > { %14201 = vmatprep.subr.bf16.mxu0 %v15374_v43 }
 0x407   : > { %14220 = vmatpush3.bf16.msra.mxu1 %v15369_v30 }
 0x408   : > { %14221 = vmatprep.subr.bf16.mxu1 %v15371_v35 }
 0x409   : > { %v13903_v27 = vpop.f32.mrb[96].mxu0  ;;  %14202 = vmatpush3.bf16.msra.mxu0 %v15376_v49  ;;  %v11493_v49 = vld [vmem:[%s19151_s3] sm:$0xff] }
 0x40a   : > { %v13904_v31 = vpop.f32.mrb[97].mxu0  ;;  %14203 = vmatprep.subr.bf16.mxu0 %v15378_v52 }
 0x40b   : > { %v13905_v33 = vadd.f32 %v13904_v31, %v13903_v27  ;;  %v13906_v37 = vpop.f32.mrb[98].mxu0  ;;  %14222 = vmatpush3.bf16.msra.mxu1 %v15373_v41 }
 0x40c   : > { %v13907_v42 = vpop.f32.mrb[99].mxu0 }
 0x40d   : > { %v10870_v39 = vadd.f32 %v13905_v33, %v18855_v47  ;;  %v13908_v45 = vadd.f32 %v13907_v42, %v13906_v37  ;;  %v15375_v47 = vld [vmem:[%s19149_s1 + $0x1fd8] sm:$0xff]   ;;  %14204 = vmatpush3.bf16.msra.mxu0 %v15380_v55 }
 0x40e   : > { %14223 = vmatprep.subr.bf16.mxu1 %v15375_v47  ;;  %14205 = vmatprep.subr.bf16.mxu0 %v15382_v57 }
 0x40f   : > { %v10873_v50 = vadd.f32 %v13908_v45, %v18870_v56  ;;  %14224 = vmatpush3.bf16.msra.mxu1 %v15377_v51  ;;  %v15381_v56 = vld [vmem:[%s19149_s1 + $0x1fa0] sm:$0xff]  }
 0x410   : > { %14225 = vmatprep.subr.bf16.mxu1 %v15379_v54 }
 0x411   : > { %14206 = vmatpush3.bf16.msra.mxu0 %v15384_v59 }
 0x412   : > { %v13925_v29 = vpop.f32.mrb[96].mxu1  ;;  %14207 = vmatprep.subr.bf16.mxu0 %v15386_v61 }
 0x413   : > { %v13926_v34 = vpop.f32.mrb[97].mxu1  ;;  %14226 = vmatpush3.bf16.msra.mxu1 %v15381_v56 }
 0x414   : > { %v13927_v36 = vadd.f32 %v13926_v34, %v13925_v29  ;;  %v13928_v40 = vpop.f32.mrb[98].mxu1  ;;  %14227 = vmatprep.subr.bf16.mxu1 %v15383_v58 }
 0x415   : > { %v13929_v46 = vpop.f32.mrb[99].mxu1  ;;  %14208 = vmatpush3.bf16.msra.mxu0 %v15388_v63 }
 0x416   : > { %v18968_v44 = vadd.f32 %v13927_v36, %v10870_v39  ;;  %v13930_v48 = vadd.f32 %v13929_v46, %v13928_v40  ;;  %14209 = vmatprep.subr.bf16.mxu0 %v15390_v1 }
 0x417   : > { %14228 = vmatpush3.bf16.msra.mxu1 %v15385_v60 }
 0x418   : > { %v18983_v53 = vadd.f32 %v13930_v48, %v10873_v50  ;;  %14229 = vmatprep.subr.bf16.mxu1 %v15387_v62  ;;  %v11494_v50 = vld [vmem:[%s19151_s3 + $0x8] sm:$0xff] }
 0x419   : > { %14210 = vmatpush3.bf16.msra.mxu0 %v15392_v3  ;;  %v14297_v51 = vpack.c.bf16 %v11494_v50, %v11493_v49 }
 0x41b   : > { %14230 = vmatpush3.bf16.msra.mxu1 %v15389_v0  ;;  %14298 = vmatprep.subr.bf16.mxu0 %v14297_v51 }
 0x41c   : > { %14231 = vmatprep.subr.bf16.mxu1 %v15391_v2  ;;  %11442 = vmatmul.mubr.bf16.vlgmr.msra.gmra.mrb[124].mxu0 %v664_v13  ;;  %v11592_v13 = vld [vmem:[%s19153_s5] sm:$0xff] }
 0x41d   : > { %14300 = vmatpush3.bf16.msra.mxu0 %v14297_v51 }
 0x41f   : > { %14232 = vmatpush3.bf16.msra.mxu1 %v15393_v4  ;;  %v11495_v4 = vld [vmem:[%s19151_s3 + $0x10] sm:$0xff] }
 0x420   : > { %v14301_v6 = vpack.c.bf16 %v11496_v5, %v11495_v4 }
 0x422   : > { %11483 = vmatmul.mubr.bf16.vlgmr.msra.gmra.mrb[124].mxu1 %v666_v16  ;;  %14302 = vmatprep.subr.bf16.mxu0 %v14301_v6  ;;  %v14313_v16 = vpack.c.bf16 %v11593_v14, %v11592_v13 }
 0x423   : > { %14304 = vmatpush3.bf16.msra.mxu0 %v14301_v6 }
 0x424   : > { %14306 = vmatprep.subr.bf16.mxu0 %v14305_v9  ;;  %14314 = vmatprep.subr.bf16.mxu1 %v14313_v16 }
 0x425   : > { %14316 = vmatpush3.bf16.msra.mxu1 %v14313_v16 }
 0x427   : > { %14308 = vmatpush3.bf16.msra.mxu0 %v14305_v9 }
 0x428   : > { %14310 = vmatprep.subr.bf16.mxu0 %v14309_v12 }
 0x429   : > { %v13947_v17 = vpop.f32.mrb[100].mxu0 }
 0x42a   : > { %v13948_v19 = vpop.f32.mrb[101].mxu0 }
 0x42b   : > { %v13949_v20 = vadd.f32 %v13948_v19, %v13947_v17  ;;  %v13950_v22 = vpop.f32.mrb[102].mxu0  ;;  %14312 = vmatpush3.bf16.msra.mxu0 %v14309_v12  ;;  %v11595_v17 = vld [vmem:[%s19153_s5 + $0x18] sm:$0xff]  ;;  %v11596_v19 = vld [vmem:[%s19153_s5 + $0x20] sm:$0xff] }
 0x42c   : > { %v13951_v25 = vpop.f32.mrb[103].mxu0 }
 0x42d   : > { %v10952_v26 = vadd.f32 %v13949_v20, %v18968_v44  ;;  %v13952_v27 = vadd.f32 %v13951_v25, %v13950_v22  ;;  %v11597_v20 = vld [vmem:[%s19153_s5 + $0x28] sm:$0xff] }
 0x42f   : > { %v10955_v31 = vadd.f32 %v13952_v27, %v18983_v53 }
 0x435   : > { %v13969_v18 = vpop.f32.mrb[100].mxu1 }
 0x436   : > { %v13970_v21 = vpop.f32.mrb[101].mxu1 }
 0x437   : > { %v13971_v23 = vadd.f32 %v13970_v21, %v13969_v18  ;;  %v13972_v24 = vpop.f32.mrb[102].mxu1  ;;  %v14317_v18 = vpack.c.bf16 %v11595_v17, %v11594_v15  ;;  %v14321_v21 = vpack.c.bf16 %v11597_v20, %v11596_v19 }
 0x438   : > { %v13973_v28 = vpop.f32.mrb[103].mxu1 }
 0x439   : > { %v13974_v29 = vadd.f32 %v13973_v28, %v13972_v24  ;;  %v10993_v30 = vadd.f32 %v13971_v23, %v10952_v26  ;;  %14318 = vmatprep.subr.bf16.mxu1 %v14317_v18 }
 0x43a   : > { %14320 = vmatpush3.bf16.msra.mxu1 %v14317_v18 }
 0x43b   : > { %v10996_v32 = vadd.f32 %v13974_v29, %v10955_v31  ;;  %14322 = vmatprep.subr.bf16.mxu1 %v14321_v21 }
 0x43e   : > { %14324 = vmatpush3.bf16.msra.mxu1 %v14321_v21 }
 0x44f   : > { %v13991_v33 = vpop.f32.mrb[104].mxu0 }
 0x450   : > { %v13992_v35 = vpop.f32.mrb[105].mxu0 }
 0x451   : > { %v13993_v36 = vadd.f32 %v13992_v35, %v13991_v33  ;;  %v13994_v38 = vpop.f32.mrb[106].mxu0 }
 0x452   : > { %v13995_v41 = vpop.f32.mrb[107].mxu0 }
 0x453   : > { %v11034_v42 = vadd.f32 %v13993_v36, %v10993_v30  ;;  %v13996_v43 = vadd.f32 %v13995_v41, %v13994_v38 }
 0x455   : > { %v14013_v34 = vpop.f32.mrb[104].mxu1  ;;  %v11037_v47 = vadd.f32 %v13996_v43, %v10996_v32 }
 0x456   : > { %v14014_v37 = vpop.f32.mrb[105].mxu1 }
 0x457   : > { %v14015_v39 = vadd.f32 %v14014_v37, %v14013_v34  ;;  %v14016_v40 = vpop.f32.mrb[106].mxu1 }
 0x458   : > { %v14017_v45 = vpop.f32.mrb[107].mxu1 }
 0x459   : > { %v14018_v44 = vadd.f32 %v14017_v45, %v14016_v40  ;;  %v11075_v46 = vadd.f32 %v14015_v39, %v11034_v42 }
 0x45b   : > { %v11078_v48 = vadd.f32 %v14018_v44, %v11037_v47 }
 0x46f   : > { %v14035_v52 = vpop.f32.mrb[108].mxu0 }
 0x470   : > { %v14036_v54 = vpop.f32.mrb[109].mxu0 }
 0x471   : > { %v14037_v56 = vadd.f32 %v14036_v54, %v14035_v52  ;;  %v14038_v58 = vpop.f32.mrb[110].mxu0 }
 0x472   : > { %v14039_v60 = vpop.f32.mrb[111].mxu0 }
 0x473   : > { %v11116_v62 = vadd.f32 %v14037_v56, %v11075_v46  ;;  %v14040_v63 = vadd.f32 %v14039_v60, %v14038_v58 }
 0x475   : > { %v14057_v53 = vpop.f32.mrb[108].mxu1  ;;  %v11119_v2 = vadd.f32 %v14040_v63, %v11078_v48 }
 0x476   : > { %v14058_v55 = vpop.f32.mrb[109].mxu1 }
 0x477   : > { %v14059_v57 = vadd.f32 %v14058_v55, %v14057_v53  ;;  %v14060_v59 = vpop.f32.mrb[110].mxu1 }
 0x478   : > { %v14061_v61 = vpop.f32.mrb[111].mxu1 }
 0x479   : > { %v14062_v0 = vadd.f32 %v14061_v61, %v14060_v59  ;;  %v11157_v1 = vadd.f32 %v14059_v57, %v11116_v62 }
 0x47b   : > { %v11160_v3 = vadd.f32 %v14062_v0, %v11119_v2 }
 0x48f   : > { %v14079_v22 = vpop.f32.mrb[112].mxu0 }
 0x490   : > { %v14080_v24 = vpop.f32.mrb[113].mxu0 }
 0x491   : > { %v14081_v25 = vadd.f32 %v14080_v24, %v14079_v22  ;;  %v14082_v27 = vpop.f32.mrb[114].mxu0  ;;  %v11598_v24 = vld [vmem:[%s19153_s5 + $0x30] sm:$0xff] }
 0x492   : > { %v14083_v30 = vpop.f32.mrb[115].mxu0 }
 0x493   : > { %v11198_v31 = vadd.f32 %v14081_v25, %v11157_v1  ;;  %v14084_v32 = vadd.f32 %v14083_v30, %v14082_v27  ;;  %v11599_v25 = vld [vmem:[%s19153_s5 + $0x38] sm:$0xff]  ;;  %v12809_v27 = vld [vmem:[%s19152_s4] ss:$0 sm:$0xff] }
 0x495   : > { %v14101_v23 = vpop.f32.mrb[112].mxu1  ;;  %v11201_v36 = vadd.f32 %v14084_v32, %v11160_v3 }
 0x496   : > { %v14102_v26 = vpop.f32.mrb[113].mxu1 }
 0x497   : > { %v14103_v28 = vadd.f32 %v14102_v26, %v14101_v23  ;;  %v14104_v29 = vpop.f32.mrb[114].mxu1  ;;  %v14325_v26 = vpack.c.bf16 %v11599_v25, %v11598_v24 }
 0x498   : > { %v14105_v33 = vpop.f32.mrb[115].mxu1 }
 0x499   : > { %v14106_v34 = vadd.f32 %v14105_v33, %v14104_v29  ;;  %v11239_v35 = vadd.f32 %v14103_v28, %v11198_v31  ;;  %14326 = vmatprep.subr.bf16.mxu1 %v14325_v26 }
 0x49a   : > { %14328 = vmatpush3.bf16.msra.mxu1 %v14325_v26 }
 0x49b   : > { %v11242_v37 = vadd.f32 %v14106_v34, %v11201_v36  ;;  %v12812_v34 = vld [vmem:[%s19154_s6] ss:$0 sm:$0xff] }
 0x4af   : > { %v14123_v38 = vpop.f32.mrb[116].mxu0 }
 0x4b0   : > { %v14124_v40 = vpop.f32.mrb[117].mxu0 }
 0x4b1   : > { %v14125_v41 = vadd.f32 %v14124_v40, %v14123_v38  ;;  %v14126_v43 = vpop.f32.mrb[118].mxu0 }
 0x4b2   : > { %v14127_v46 = vpop.f32.mrb[119].mxu0 }
 0x4b3   : > { %v11280_v47 = vadd.f32 %v14125_v41, %v11239_v35  ;;  %v14128_v48 = vadd.f32 %v14127_v46, %v14126_v43 }
 0x4b5   : > { %v14145_v39 = vpop.f32.mrb[116].mxu1  ;;  %v11283_v52 = vadd.f32 %v14128_v48, %v11242_v37 }
 0x4b6   : > { %v14146_v42 = vpop.f32.mrb[117].mxu1 }
 0x4b7   : > { %v14147_v45 = vadd.f32 %v14146_v42, %v14145_v39  ;;  %v14148_v44 = vpop.f32.mrb[118].mxu1 }
 0x4b8   : > { %v14149_v49 = vpop.f32.mrb[119].mxu1 }
 0x4b9   : > { %v14150_v50 = vadd.f32 %v14149_v49, %v14148_v44  ;;  %v11321_v51 = vadd.f32 %v14147_v45, %v11280_v47 }
 0x4bb   : > { %v11324_v53 = vadd.f32 %v14150_v50, %v11283_v52 }
 0x4cf   : > { %v14167_v54 = vpop.f32.mrb[120].mxu0 }
 0x4d0   : > { %v14168_v56 = vpop.f32.mrb[121].mxu0 }
 0x4d1   : > { %v14169_v58 = vadd.f32 %v14168_v56, %v14167_v54  ;;  %v14170_v60 = vpop.f32.mrb[122].mxu0 }
 0x4d2   : > { %v14171_v62 = vpop.f32.mrb[123].mxu0 }
 0x4d3   : > { %v11362_v0 = vadd.f32 %v14169_v58, %v11321_v51  ;;  %v14172_v1 = vadd.f32 %v14171_v62, %v14170_v60 }
 0x4d5   : > { %v14189_v55 = vpop.f32.mrb[120].mxu1  ;;  %v11365_v4 = vadd.f32 %v14172_v1, %v11324_v53 }
 0x4d6   : > { %v14190_v57 = vpop.f32.mrb[121].mxu1 }
 0x4d7   : > { %v14191_v59 = vadd.f32 %v14190_v57, %v14189_v55  ;;  %v14192_v61 = vpop.f32.mrb[122].mxu1 }
 0x4d8   : > { %v14193_v63 = vpop.f32.mrb[123].mxu1 }
 0x4d9   : > { %v14194_v2 = vadd.f32 %v14193_v63, %v14192_v61  ;;  %v11403_v3 = vadd.f32 %v14191_v59, %v11362_v0 }
 0x4db   : > { %v11406_v5 = vadd.f32 %v14194_v2, %v11365_v4 }
 0x4ef   : > { %v14211_v6 = vpop.f32.mrb[124].mxu0 }
 0x4f0   : > { %v14212_v8 = vpop.f32.mrb[125].mxu0 }
 0x4f1   : > { %v14213_v9 = vadd.f32 %v14212_v8, %v14211_v6  ;;  %v14214_v11 = vpop.f32.mrb[126].mxu0 }
 0x4f2   : > { %v14215_v14 = vpop.f32.mrb[127].mxu0 }
 0x4f3   : > { %v11444_v15 = vadd.f32 %v14213_v9, %v11403_v3  ;;  %v14216_v16 = vadd.f32 %v14215_v14, %v14214_v11 }
 0x4f5   : > { %v14233_v7 = vpop.f32.mrb[124].mxu1  ;;  %v11447_v20 = vadd.f32 %v14216_v16, %v11406_v5 }
 0x4f6   : > { %v14234_v10 = vpop.f32.mrb[125].mxu1 }
 0x4f7   : > { %v14235_v12 = vadd.f32 %v14234_v10, %v14233_v7  ;;  %v14236_v13 = vpop.f32.mrb[126].mxu1 }
 0x4f8   : > { %v14237_v17 = vpop.f32.mrb[127].mxu1 }
 0x4f9   : > { %v14238_v18 = vadd.f32 %v14237_v17, %v14236_v13  ;;  %v11485_v19 = vadd.f32 %v14235_v12, %v11444_v15 }
 0x4fb   : > { %v11491_v21 = vmax.f32 %v11485_v19, 0.0  ;;  %v11488_v22 = vadd.f32 %v14238_v18, %v11447_v20 }
 0x4fd   : > { %v11492_v23 = vmax.f32 %v11488_v22, 0.0  ;;  %14275 = vmatprep.mubr.msk.f32.mxu0 %vm11508_vm0, %v11491_v21 }
 0x4ff   : > { %14276 = vmatmul.mubr.msk.f32.vlgmr.msra.gmra.mrb[128].mxu0 %vm11508_vm0, %v11492_v23 }
 0x5d2   : > { %v14277_v28 = vpop.f32.mrb[128].mxu0 }
 0x5d3   : > { %v11587_v29 = vadd.f32 %v14277_v28, %v12809_v27  ;;  %v11581_v30 = vpop.f32.mrb[129].mxu0 }
 0x5d4   : > { %v11582_v31 = vadd.f32 %v12809_v27, %v11581_v30 }
 0x5d5   : > { %v11591_v33 = vmax.f32 %v11587_v29, 0.0 }
 0x5d6   : > { %v11590_v32 = vmax.f32 %v11582_v31, 0.0 }
 0x5d8   : > { %14294 = vmatprep.mubr.msk.f32.mxu1 %vm11508_vm0, %v11590_v32 }
 0x5d9   : > { %14295 = vmatmul.mubr.msk.f32.vlgmr.msra.gmra.mrb[128].mxu1 %vm11508_vm0, %v11591_v33 }
 0x6ac   : > { %v14296_v35 = vpop.f32.mrb[128].mxu1 }
 0x6ad   : > { %v11685_v36 = vadd.f32 %v14296_v35, %v12812_v34  ;;  %v11679_v37 = vpop.f32.mrb[129].mxu1 }
 0x6ae   : > { %v11680_v38 = vadd.f32 %v12812_v34, %v11679_v37 }
 0x6af   : > { %15394 = vtanh.f32 %v11685_v36 }
 0x6b0   : > { %15396 = vtanh.f32 %v11680_v38 }
 0x6b9   : > { %v15395_v39 = vpop.eup %15394 }
 0x6ba   : > { %v15397_v40 = vpop.eup %15396 }
 0x6bb   : > { %v12829_v41 = vpack.c.bf16 %v15395_v39, %v15397_v40 }
 0x6bd   : > { %12830 = vst [vmem:[%s274_s21] sm:$0xff] %v12829_v41  }
 0x6be   : > { %15411 = shalt.err (!%p15408_p3)
}
 0x6bf   : > { %s15412_s15 = scalar_lea.hbm %s19103_s29, 128  ;;  %s15416_s19 = scalar_lea.hbm %s19155_s7, 256 }
 0x6c0   : > { %p15413_p4 = scmp.ne.s32.totalorder %s19103_s29, %s15412_s15  ;;  %p15417_p9 = scmp.lt.u32.totalorder %s19103_s29, %s19155_s7 }
 0x6c1   : > { %p15418_p10 = scmp.lt.u32.totalorder %s15416_s19, %s15412_s15  ;;  %p15420_p12 = scmp.lt.u32.totalorder %s15412_s15, %s19103_s29 }
 0x6c2   : > { %p15414_p7 = pnand %p15413_p4, %p15543_p5 }
 0x6c3   : > { %p15419_p11 = por %p15418_p10, %p15417_p9 }
 0x6c4   : > { %p15415_p8 = pneg %p15414_p7 }
 0x6c5   : > { %p15421_p13 = por %p15420_p12, %p15419_p11 }
 0x6c7   : > { %p15422_p0 = pnand %p15421_p13, %p15415_p8 }
 0x6c9   : > { %15425 = shalt.err (!%p15422_p0)
}
 0x6ca   : > { %s15463_s17 = smov 64   ;;  %s15464_s23 = smov 4  }
 0x6cb   : > { %14329 = dma.vmem_to_hbm [thread:$0]  (%p15543_p5), %s19105_s22, 128, %s19103_s29, %s19107_s8, %s15463_s17, %s15463_s17, %s15464_s23  }
 0x6cc PF: > { %p14335_p1 = scmp.ge.s32.totalorder %s15460_s27, 2  ;;  %s11729_s9 = sand.u32 1, %s15448_s24  }
 0x6cd   : > { %s11730_s28 = scalar_lea.sflag [#allocation3], %s11729_s9 }
 0x6ce   : > { %p14332_p2 = pnand %p14335_p1, %p15547_p6 }
 0x6d0   : > { %15443 = dma.done.wait (!%p14332_p2), %s11730_s28, 128  }
 0x6d1   : > { %15445 = vsyncadd (!%p14332_p2), %s11730_s28, 4294967168  ;;  %p17_p3 = scmp.ge.s32.totalorder %s15530_s30, 4   ;;  %s19158_s24 = smov %s15452_s25 }
 0x6d2   : > { %s19159_s25 = smov %s15456_s26  ;;  %s19160_s26 = smov %s15541_s10 }
 0x6d3   : > { %s19161_s27 = smov %s15530_s30  ;;  %19 = sbr.rel (!%p17_p3) target bundleno = 3 (0x3), region = 83 }
 0x6da   :  { %11735 = vsyncpa [#allocation3], 1 }
 0x6db   :  { %11737 = vsyncpa [#allocation3 + $0x1], 1 }

</bundles_post_ra>
